<compile_context>
chip_gen: v7x
topology: tpu7x:2x2x1
jax: 0.10.0
libtpu: 0.0.40
codegen_flags: <defaults>
</compile_context>

<pallas_src>
import functools
import math

import jax
import jax.numpy as jnp
import numpy as np
from jax.experimental import pallas as pl
from jax.experimental.pallas import tpu as pltpu


def _attn_block_kernel(x_ref, gn_ref, gmat_ref, w_ref, b_ref, o_ref, *,
                       eps, num_groups):
    # x_ref   : (1, HW, C)   input (flattened NHWC)
    # gn_ref  : (2, C)       row 0 = GroupNorm gamma, row 1 = beta
    # gmat_ref: (C, C)       block-diagonal ones: gmat[i,j] = 1 iff same group
    # w_ref   : (4, C, C)    [Wq^T, Wk^T, Wv^T, Wproj^T]  (Cin, Cout) each
    # b_ref   : (4, C)       [bq, bk, bv, bproj]
    # o_ref   : (1, HW, C)   output (flattened NHWC)
    _, HW, C = x_ref.shape
    cg = C // num_groups

    xb = x_ref[0].astype(jnp.float32)                       # (HW, C)

    # ---- GroupNorm(num_groups, eps, affine=True) --------------------------
    s1 = jnp.sum(xb, axis=0, keepdims=True)                  # (1, C)
    s2 = jnp.sum(xb * xb, axis=0, keepdims=True)             # (1, C)
    gmat = gmat_ref[...]                                     # (C, C)
    gs1 = jnp.dot(s1, gmat, preferred_element_type=jnp.float32)   # per-group sum
    gs2 = jnp.dot(s2, gmat, preferred_element_type=jnp.float32)   # per-group sumsq
    inv_n = 1.0 / float(HW * cg)
    mean = gs1 * inv_n                                        # (1, C) group mean
    var = gs2 * inv_n - mean * mean                           # biased variance
    inv_std = jax.lax.rsqrt(var + eps)
    gamma = gn_ref[0:1, :]
    beta = gn_ref[1:2, :]
    hn = (xb - mean) * (inv_std * gamma) + beta               # (HW, C)

    # ---- q / k / v 1x1 convolutions (channel matmuls) ----------------------
    q = jnp.dot(hn, w_ref[0], preferred_element_type=jnp.float32) + b_ref[0:1, :]
    k = jnp.dot(hn, w_ref[1], preferred_element_type=jnp.float32) + b_ref[1:2, :]
    v = jnp.dot(hn, w_ref[2], preferred_element_type=jnp.float32) + b_ref[2:3, :]

    # ---- scaled dot-product attention over spatial positions --------------
    scale = float(C) ** (-0.5)
    logits = jax.lax.dot_general(                             # (HW, HW), lane-dense
        q, k, (((1,), (1,)), ((), ())),
        preferred_element_type=jnp.float32) * scale
    m = jnp.max(logits, axis=-1, keepdims=True)
    p = jnp.exp(logits - m)
    p = p / jnp.sum(p, axis=-1, keepdims=True)                # softmax over keys
    attn = jnp.dot(p, v, preferred_element_type=jnp.float32)  # (HW, C), K = HW

    # ---- proj_out 1x1 conv + residual --------------------------------------
    out = jnp.dot(attn, w_ref[3], preferred_element_type=jnp.float32) + b_ref[3:4, :]
    o_ref[0] = (xb + out).astype(o_ref.dtype)


def attn_block_forward(x_nchw, gn_gamma, gn_beta, wq, bq, wk, bk, wv, bv, wp, bp,
                       *, num_groups=32, eps=1e-6):
    """Equivalent of AttnBlock.forward on NCHW input.

    wq/wk/wv/wp are the PyTorch Conv2d(C, C, 1) weights squeezed to (Cout, Cin);
    bq/bk/bv/bp are the corresponding (C,) biases.
    """
    N, C, H, W = x_nchw.shape
    assert C % num_groups == 0, "GroupNorm(32) requires channels divisible by 32"
    HW = H * W
    dt = x_nchw.dtype

    # Pure layout glue (no FLOPs): NCHW -> (N, HW, C).
    x_seq = jnp.transpose(x_nchw, (0, 2, 3, 1)).reshape(N, HW, C)

    gn = jnp.stack([gn_gamma, gn_beta]).astype(jnp.float32)           # (2, C)
    cg = C // num_groups
    gmat = jnp.kron(jnp.eye(num_groups, dtype=jnp.float32),
                    jnp.ones((cg, cg), jnp.float32))                   # (C, C)
    # 1x1 conv (Cout, Cin) -> matmul weight (Cin, Cout).
    w_stack = jnp.stack([wq.T, wk.T, wv.T, wp.T]).astype(jnp.float32)  # (4, C, C)
    b_stack = jnp.stack([bq, bk, bv, bp]).astype(jnp.float32)          # (4, C)

    kernel = functools.partial(_attn_block_kernel, eps=float(eps),
                               num_groups=num_groups)

    out_seq = pl.pallas_call(
        kernel,
        out_shape=jax.ShapeDtypeStruct((N, HW, C), dt),
        grid_spec=pltpu.PrefetchScalarGridSpec(
            num_scalar_prefetch=0,
            grid=(N,),                                   # one image per grid step
            in_specs=[
                pl.BlockSpec((1, HW, C), lambda n: (n, 0, 0)),
                pl.BlockSpec((2, C), lambda n: (0, 0)),
                pl.BlockSpec((C, C), lambda n: (0, 0)),
                pl.BlockSpec((4, C, C), lambda n: (0, 0, 0)),
                pl.BlockSpec((4, C), lambda n: (0, 0)),
            ],
            out_specs=pl.BlockSpec((1, HW, C), lambda n: (n, 0, 0)),
        ),
        compiler_params=pltpu.CompilerParams(
            dimension_semantics=("parallel",)),
    )(x_seq, gn, gmat, w_stack, b_stack)

    return jnp.transpose(out_seq.reshape(N, H, W, C), (0, 3, 1, 2))


if __name__ == "__main__":
    # Small shapes consistent with the module. GroupNorm(num_groups=32) requires
    # channels to be a multiple of 32, so use C=64 (2 channels per group).
    N, C, H, W = 2, 64, 16, 16
    key = jax.random.PRNGKey(0)
    keys = jax.random.split(key, 11)

    x = jax.random.normal(keys[0], (N, C, H, W), jnp.float32)

    # Deterministic PyTorch-style Conv2d(C, C, 1) params (uniform in +-1/sqrt(fan_in)).
    bound = 1.0 / math.sqrt(C)

    def conv_params(kw, kb):
        w = jax.random.uniform(kw, (C, C), jnp.float32, -bound, bound)
        b = jax.random.uniform(kb, (C,), jnp.float32, -bound, bound)
        return w, b

    wq, bq = conv_params(keys[1], keys[2])
    wk, bk = conv_params(keys[3], keys[4])
    wv, bv = conv_params(keys[5], keys[6])
    wp, bp = conv_params(keys[7], keys[8])
    gamma = 1.0 + 0.1 * jax.random.normal(keys[9], (C,), jnp.float32)
    beta = 0.1 * jax.random.normal(keys[10], (C,), jnp.float32)

    out = attn_block_forward(x, gamma, beta, wq, bq, wk, bk, wv, bv, wp, bp)
    out = jax.block_until_ready(out)
    assert out.shape == (N, C, H, W)

    # ---------------- pure-JAX reference (mirrors the PyTorch forward) ------
    G = 32
    xg = x.reshape(N, G, C // G, H, W)
    mean = xg.mean(axis=(2, 3, 4), keepdims=True)
    var = ((xg - mean) ** 2).mean(axis=(2, 3, 4), keepdims=True)
    hn = ((xg - mean) / jnp.sqrt(var + 1e-6)).reshape(N, C, H, W)
    hn = hn * gamma[None, :, None, None] + beta[None, :, None, None]

    def conv1x1(h, w, b):
        return jnp.einsum('nchw,oc->nohw', h, w,
                          precision=jax.lax.Precision.HIGHEST) + b[None, :, None, None]

    qr = conv1x1(hn, wq, bq)
    kr = conv1x1(hn, wk, bk)
    vr = conv1x1(hn, wv, bv)
    q2 = qr.reshape(N, C, H * W).transpose(0, 2, 1)            # (N, HW, C)
    k2 = kr.reshape(N, C, H * W)                               # (N, C, HW)
    att = jnp.einsum('nqc,nck->nqk', q2, k2,
                     precision=jax.lax.Precision.HIGHEST) * (float(C) ** -0.5)
    att = jax.nn.softmax(att, axis=2)
    v2 = vr.reshape(N, C, H * W)
    h2 = jnp.einsum('ncj,nqj->ncq', v2, att,
                    precision=jax.lax.Precision.HIGHEST).reshape(N, C, H, W)
    ref = x + conv1x1(h2, wp, bp)

    np.testing.assert_allclose(np.asarray(out), np.asarray(ref),
                               rtol=2e-3, atol=2e-3)

    print("KERNEL_OK")
</pallas_src>

<mosaic_0001>
module attributes {stable_mosaic.version = 11 : i64} {
  func.func @_attn_block_kernel(%arg0: i32, %arg1: memref<1x256x64xf32, #tpu.memory_space<vmem>>, %arg2: memref<2x64xf32, #tpu.memory_space<vmem>>, %arg3: memref<64x64xf32, #tpu.memory_space<vmem>>, %arg4: memref<4x64x64xf32, #tpu.memory_space<vmem>>, %arg5: memref<4x64xf32, #tpu.memory_space<vmem>>, %arg6: memref<1x256x64xf32, #tpu.memory_space<vmem>>) attributes {dimension_semantics = [#tpu.dimension_semantics<parallel>], iteration_bounds = array<i64: 2>, scalar_prefetch = 0 : i64, scratch_operands = 0 : i64, tpu.core_type = #tpu.core_type<tc>, window_params = [{transform_indices = @transform_0, window_bounds = array<i64: 1, 256, 64>}, {pipeline_mode = #tpu.pipeline_mode<synchronous>, transform_indices = @transform_1, window_bounds = array<i64: 2, 64>}, {pipeline_mode = #tpu.pipeline_mode<synchronous>, transform_indices = @transform_2, window_bounds = array<i64: 64, 64>}, {pipeline_mode = #tpu.pipeline_mode<synchronous>, transform_indices = @transform_3, window_bounds = array<i64: 4, 64, 64>}, {pipeline_mode = #tpu.pipeline_mode<synchronous>, transform_indices = @transform_4, window_bounds = array<i64: 4, 64>}, {transform_indices = @transform_5, window_bounds = array<i64: 1, 256, 64>}]} {
    %c0 = arith.constant 0 : index
    %c0_0 = arith.constant 0 : index
    %c0_1 = arith.constant 0 : index
    %0 = vector.load %arg1[%c0, %c0_0, %c0_1] : memref<1x256x64xf32, #tpu.memory_space<vmem>>, vector<1x256x64xf32>
    %1 = vector.shape_cast %0 : vector<1x256x64xf32> to vector<256x64xf32>
    %cst = arith.constant dense<0.000000e+00> : vector<64xf32>
    %2 = vector.multi_reduction <add>, %1, %cst [0] : vector<256x64xf32> to vector<64xf32>
    %3 = vector.shape_cast %2 : vector<64xf32> to vector<1x64xf32>
    %4 = arith.mulf %1, %1 : vector<256x64xf32>
    %cst_2 = arith.constant dense<0.000000e+00> : vector<64xf32>
    %5 = vector.multi_reduction <add>, %4, %cst_2 [0] : vector<256x64xf32> to vector<64xf32>
    %6 = vector.shape_cast %5 : vector<64xf32> to vector<1x64xf32>
    %c0_3 = arith.constant 0 : index
    %c0_4 = arith.constant 0 : index
    %7 = vector.load %arg3[%c0_3, %c0_4] : memref<64x64xf32, #tpu.memory_space<vmem>>, vector<64x64xf32>
    %cst_5 = arith.constant dense<0.000000e+00> : vector<1x64xf32>
    %8 = tpu.matmul %3, %7, %cst_5 {dimension_numbers = #tpu.dot_dimension_numbers<[1], [0], [0], [1], [0, 0, 1, 1], [], []>} : vector<1x64xf32>, vector<64x64xf32>, vector<1x64xf32> -> vector<1x64xf32>
    %cst_6 = arith.constant dense<0.000000e+00> : vector<1x64xf32>
    %9 = tpu.matmul %6, %7, %cst_6 {dimension_numbers = #tpu.dot_dimension_numbers<[1], [0], [0], [1], [0, 0, 1, 1], [], []>} : vector<1x64xf32>, vector<64x64xf32>, vector<1x64xf32> -> vector<1x64xf32>
    %cst_7 = arith.constant 0.001953125 : f32
    %10 = vector.broadcast %cst_7 : f32 to vector<1x64xf32>
    %11 = arith.mulf %8, %10 : vector<1x64xf32>
    %cst_8 = arith.constant 0.001953125 : f32
    %12 = vector.broadcast %cst_8 : f32 to vector<1x64xf32>
    %13 = arith.mulf %9, %12 : vector<1x64xf32>
    %14 = arith.mulf %11, %11 : vector<1x64xf32>
    %15 = arith.subf %13, %14 : vector<1x64xf32>
    %cst_9 = arith.constant 9.99999997E-7 : f32
    %16 = vector.broadcast %cst_9 : f32 to vector<1x64xf32>
    %17 = arith.addf %15, %16 : vector<1x64xf32>
    %18 = math.rsqrt %17 : vector<1x64xf32>
    %c0_10 = arith.constant 0 : index
    %c0_11 = arith.constant 0 : index
    %19 = vector.load %arg2[%c0_10, %c0_11] : memref<2x64xf32, #tpu.memory_space<vmem>>, vector<1x64xf32>
    %c1 = arith.constant 1 : index
    %c0_12 = arith.constant 0 : index
    %20 = vector.load %arg2[%c1, %c0_12] : memref<2x64xf32, #tpu.memory_space<vmem>>, vector<1x64xf32>
    %21 = vector.broadcast %11 : vector<1x64xf32> to vector<256x64xf32>
    %22 = arith.subf %1, %21 : vector<256x64xf32>
    %23 = arith.mulf %18, %19 : vector<1x64xf32>
    %24 = vector.broadcast %23 : vector<1x64xf32> to vector<256x64xf32>
    %25 = arith.mulf %22, %24 : vector<256x64xf32>
    %26 = vector.broadcast %20 : vector<1x64xf32> to vector<256x64xf32>
    %27 = arith.addf %25, %26 : vector<256x64xf32>
    %c0_13 = arith.constant 0 : index
    %c0_14 = arith.constant 0 : index
    %c0_15 = arith.constant 0 : index
    %28 = vector.load %arg4[%c0_13, %c0_14, %c0_15] : memref<4x64x64xf32, #tpu.memory_space<vmem>>, vector<1x64x64xf32>
    %29 = vector.shape_cast %28 : vector<1x64x64xf32> to vector<64x64xf32>
    %cst_16 = arith.constant dense<0.000000e+00> : vector<256x64xf32>
    %30 = tpu.matmul %27, %29, %cst_16 {dimension_numbers = #tpu.dot_dimension_numbers<[1], [0], [0], [1], [0, 0, 1, 1], [], []>} : vector<256x64xf32>, vector<64x64xf32>, vector<256x64xf32> -> vector<256x64xf32>
    %c0_17 = arith.constant 0 : index
    %c0_18 = arith.constant 0 : index
    %31 = vector.load %arg5[%c0_17, %c0_18] : memref<4x64xf32, #tpu.memory_space<vmem>>, vector<1x64xf32>
    %32 = vector.broadcast %31 : vector<1x64xf32> to vector<256x64xf32>
    %33 = arith.addf %30, %32 : vector<256x64xf32>
    %c1_19 = arith.constant 1 : index
    %c0_20 = arith.constant 0 : index
    %c0_21 = arith.constant 0 : index
    %34 = vector.load %arg4[%c1_19, %c0_20, %c0_21] : memref<4x64x64xf32, #tpu.memory_space<vmem>>, vector<1x64x64xf32>
    %35 = vector.shape_cast %34 : vector<1x64x64xf32> to vector<64x64xf32>
    %cst_22 = arith.constant dense<0.000000e+00> : vector<256x64xf32>
    %36 = tpu.matmul %27, %35, %cst_22 {dimension_numbers = #tpu.dot_dimension_numbers<[1], [0], [0], [1], [0, 0, 1, 1], [], []>} : vector<256x64xf32>, vector<64x64xf32>, vector<256x64xf32> -> vector<256x64xf32>
    %c1_23 = arith.constant 1 : index
    %c0_24 = arith.constant 0 : index
    %37 = vector.load %arg5[%c1_23, %c0_24] : memref<4x64xf32, #tpu.memory_space<vmem>>, vector<1x64xf32>
    %38 = vector.broadcast %37 : vector<1x64xf32> to vector<256x64xf32>
    %39 = arith.addf %36, %38 : vector<256x64xf32>
    %c2 = arith.constant 2 : index
    %c0_25 = arith.constant 0 : index
    %c0_26 = arith.constant 0 : index
    %40 = vector.load %arg4[%c2, %c0_25, %c0_26] : memref<4x64x64xf32, #tpu.memory_space<vmem>>, vector<1x64x64xf32>
    %41 = vector.shape_cast %40 : vector<1x64x64xf32> to vector<64x64xf32>
    %cst_27 = arith.constant dense<0.000000e+00> : vector<256x64xf32>
    %42 = tpu.matmul %27, %41, %cst_27 {dimension_numbers = #tpu.dot_dimension_numbers<[1], [0], [0], [1], [0, 0, 1, 1], [], []>} : vector<256x64xf32>, vector<64x64xf32>, vector<256x64xf32> -> vector<256x64xf32>
    %c2_28 = arith.constant 2 : index
    %c0_29 = arith.constant 0 : index
    %43 = vector.load %arg5[%c2_28, %c0_29] : memref<4x64xf32, #tpu.memory_space<vmem>>, vector<1x64xf32>
    %44 = vector.broadcast %43 : vector<1x64xf32> to vector<256x64xf32>
    %45 = arith.addf %42, %44 : vector<256x64xf32>
    %cst_30 = arith.constant dense<0.000000e+00> : vector<256x256xf32>
    %46 = tpu.matmul %33, %39, %cst_30 {dimension_numbers = #tpu.dot_dimension_numbers<[1], [1], [0], [0], [0, 0, 1, 0], [], []>} : vector<256x64xf32>, vector<256x64xf32>, vector<256x256xf32> -> vector<256x256xf32>
    %cst_31 = arith.constant 1.250000e-01 : f32
    %47 = vector.broadcast %cst_31 : f32 to vector<256x256xf32>
    %48 = arith.mulf %46, %47 : vector<256x256xf32>
    %cst_32 = arith.constant dense<0xFF800000> : vector<256xf32>
    %49 = vector.multi_reduction <maximumf>, %48, %cst_32 [1] : vector<256x256xf32> to vector<256xf32>
    %50 = vector.shape_cast %49 : vector<256xf32> to vector<256x1xf32>
    %51 = vector.broadcast %50 : vector<256x1xf32> to vector<256x256xf32>
    %52 = arith.subf %48, %51 : vector<256x256xf32>
    %53 = math.exp %52 : vector<256x256xf32>
    %cst_33 = arith.constant dense<0.000000e+00> : vector<256xf32>
    %54 = vector.multi_reduction <add>, %53, %cst_33 [1] : vector<256x256xf32> to vector<256xf32>
    %55 = vector.shape_cast %54 : vector<256xf32> to vector<256x1xf32>
    %56 = vector.broadcast %55 : vector<256x1xf32> to vector<256x256xf32>
    %57 = arith.divf %53, %56 : vector<256x256xf32>
    %cst_34 = arith.constant dense<0.000000e+00> : vector<256x64xf32>
    %58 = tpu.matmul %57, %45, %cst_34 {dimension_numbers = #tpu.dot_dimension_numbers<[1], [0], [0], [1], [0, 0, 1, 1], [], []>} : vector<256x256xf32>, vector<256x64xf32>, vector<256x64xf32> -> vector<256x64xf32>
    %c3 = arith.constant 3 : index
    %c0_35 = arith.constant 0 : index
    %c0_36 = arith.constant 0 : index
    %59 = vector.load %arg4[%c3, %c0_35, %c0_36] : memref<4x64x64xf32, #tpu.memory_space<vmem>>, vector<1x64x64xf32>
    %60 = vector.shape_cast %59 : vector<1x64x64xf32> to vector<64x64xf32>
    %cst_37 = arith.constant dense<0.000000e+00> : vector<256x64xf32>
    %61 = tpu.matmul %58, %60, %cst_37 {dimension_numbers = #tpu.dot_dimension_numbers<[1], [0], [0], [1], [0, 0, 1, 1], [], []>} : vector<256x64xf32>, vector<64x64xf32>, vector<256x64xf32> -> vector<256x64xf32>
    %c3_38 = arith.constant 3 : index
    %c0_39 = arith.constant 0 : index
    %62 = vector.load %arg5[%c3_38, %c0_39] : memref<4x64xf32, #tpu.memory_space<vmem>>, vector<1x64xf32>
    %63 = vector.broadcast %62 : vector<1x64xf32> to vector<256x64xf32>
    %64 = arith.addf %61, %63 : vector<256x64xf32>
    %65 = arith.addf %1, %64 : vector<256x64xf32>
    %c0_40 = arith.constant 0 : index
    %c0_41 = arith.constant 0 : index
    %c0_42 = arith.constant 0 : index
    %66 = vector.load %arg6[%c0_40, %c0_41, %c0_42] : memref<1x256x64xf32, #tpu.memory_space<vmem>>, vector<1x256x64xf32>
    %67 = vector.shape_cast %66 : vector<1x256x64xf32> to vector<256x64xf32>
    %68 = vector.shape_cast %65 : vector<256x64xf32> to vector<1x256x64xf32>
    tpu.vector_store %arg6[%c0_40, %c0_41, %c0_42], %68 {strides = array<i32>} : memref<1x256x64xf32, #tpu.memory_space<vmem>>, vector<1x256x64xf32>,
    return
  }
  func.func @transform_0(%arg0: i32) -> (i32, i32, i32) {
    %c0_i32 = arith.constant 0 : i32
    %c0_i32_0 = arith.constant 0 : i32
    %c0_i32_1 = arith.constant 0 : i32
    return %arg0, %c0_i32, %c0_i32_0 : i32, i32, i32
  }
  func.func @transform_1(%arg0: i32) -> (i32, i32) {
    %c0_i32 = arith.constant 0 : i32
    %c0_i32_0 = arith.constant 0 : i32
    %c0_i32_1 = arith.constant 0 : i32
    return %c0_i32, %c0_i32_0 : i32, i32
  }
  func.func @transform_2(%arg0: i32) -> (i32, i32) {
    %c0_i32 = arith.constant 0 : i32
    %c0_i32_0 = arith.constant 0 : i32
    %c0_i32_1 = arith.constant 0 : i32
    return %c0_i32, %c0_i32_0 : i32, i32
  }
  func.func @transform_3(%arg0: i32) -> (i32, i32, i32) {
    %c0_i32 = arith.constant 0 : i32
    %c0_i32_0 = arith.constant 0 : i32
    %c0_i32_1 = arith.constant 0 : i32
    %c0_i32_2 = arith.constant 0 : i32
    return %c0_i32, %c0_i32_0, %c0_i32_1 : i32, i32, i32
  }
  func.func @transform_4(%arg0: i32) -> (i32, i32) {
    %c0_i32 = arith.constant 0 : i32
    %c0_i32_0 = arith.constant 0 : i32
    %c0_i32_1 = arith.constant 0 : i32
    return %c0_i32, %c0_i32_0 : i32, i32
  }
  func.func @transform_5(%arg0: i32) -> (i32, i32, i32) {
    %c0_i32 = arith.constant 0 : i32
    %c0_i32_0 = arith.constant 0 : i32
    %c0_i32_1 = arith.constant 0 : i32
    return %arg0, %c0_i32, %c0_i32_0 : i32, i32, i32
  }
}

</mosaic_0001>

<bundles_post_ra>
// kernel: tpu_custom_call.1
= control target key start
LH: loop header
LB: loop body
LE: loop exit
PB: predicated region body
PF: predicated region fallthrough
CT: control target
= control target key end

     0   :  { %s4449_s18 = smov 0   ;;  %s6378_s0 = inlined_call_operand.vmem [shape: f32[2,256,64], index: 0, kind: input, shape index: {}]   ;;  %s6379_s1 = inlined_call_operand.vmem [shape: f32[2,64], index: 1, kind: input, shape index: {}]   ;;  %s6380_s2 = inlined_call_operand.vmem [shape: f32[64,64], index: 2, kind: input, shape index: {}]   ;;  %s6381_s3 = inlined_call_operand.vmem [shape: f32[4,64,64], index: 3, kind: input, shape index: {}]   ;;  %s6382_s4 = inlined_call_operand.vmem [shape: f32[4,64], index: 4, kind: input, shape index: {}]   ;;  %s6383_s5 = inlined_call_operand.vmem [shape: f32[2,256,64], index: 5, kind: output, shape index: {}]  }
   0x1 LB: > { %s3183_s19 = sadd.s32 4294967295, %s4414_s18   ;;  %p3187_p0 = scmp.ge.s32.totalorder %s4414_s18, 1  ;;  %s4414_s18 = sphi %s4449_s18, %s15_s18  }
   0x2   : > { %p187_p1 = scmp.lt.s32.totalorder %s4414_s18, 3 }
   0x4   : > { %p188_p2 = pnand %p3187_p0, %p187_p1 }
   0x6   : > { %191 = sbr.rel (%p188_p2) target bundleno = 1740 (0x6cc), region = 40 }
   0xd   : > { %v428_v0 = vld [vmem:[%s6380_s2] sm:$0xff]  ;;  %v429_v1 = vld [vmem:[%s6380_s2 + $0x8] sm:$0xff]  ;;  %v430_v2 = vld [vmem:[%s6380_s2 + $0x10] sm:$0xff]  ;;  %v4416_v3 = vmov 0.0|0.0   ;;  %p215_p3 = scmp.lt.s32.totalorder %s3183_s19, 1  ;;  %vm4417_vm0 = vmmov 0  }
   0xe   : > { %3987 = vmatprep.subr.bf16.mxu0 %v4416_v3  ;;  %v3988_v4 = vpack.c.bf16 %v429_v1, %v428_v0  ;;  %3999 = vmatprep.subr.bf16.mxu1 %v4416_v3  ;;  %v431_v5 = vld [vmem:[%s6380_s2 + $0x18] sm:$0xff]  ;;  %v4418_v6 = vmov 0.0   ;;  %v432_v8 = vld [vmem:[%s6380_s2 + $0x20] sm:$0xff]  ;;  %v433_v9 = vld [vmem:[%s6380_s2 + $0x28] sm:$0xff]  ;;  %vm257_vm1 = vcmask 523264  }
   0xf   : > { %3709 = vmatprep.mubr.msk.f32.mxu0 %vm4417_vm0, %v4418_v6  ;;  %3728 = vmatprep.mubr.msk.f32.mxu1 %vm4417_vm0, %v4418_v6  ;;  %v3991_v7 = vpack.c.bf16 %v431_v5, %v430_v2  ;;  %s6462_s19 = smov (!%p215_p3, %s3183_s19), 1  ;;  %v3994_v10 = vpack.c.bf16 %v433_v9, %v432_v8  ;;  %v434_v14 = vld [vmem:[%s6380_s2 + $0x30] sm:$0xff]  ;;  %v435_v15 = vld [vmem:[%s6380_s2 + $0x38] sm:$0xff]  ;;  %vm5373_vm2 = vmpackc.low %vm257_vm1, %vm257_vm1 }
  0x10   : > { %3989 = vmatpush3.bf16.msra.mxu0 %v3988_v4  ;;  %4001 = vmatpush3.bf16.msra.mxu1 %v3988_v4  ;;  %s3417_s7 = sshll.u32 %s6462_s19, 8  ;;  %v3997_v23 = vpack.c.bf16 %v435_v15, %v434_v14 }
  0x11   : > { %3990 = vmatprep.subr.bf16.mxu0 %v4416_v3  ;;  %4002 = vmatprep.subr.bf16.mxu1 %v4416_v3  ;;  %s4487_s10 = scalar_lea.vmem %s6378_s0, %s3417_s7  ;;  %s6246_s8 = scalar_lea.vmem %s6383_s5, %s3417_s7 }
  0x12   : > { %v4490_v11 = vld [vmem:[%s4487_s10] sm:$0xff]  ;;  %v4493_v12 = vld [vmem:[%s4487_s10 + $0x8] sm:$0xff]  ;;  %v4496_v13 = vld [vmem:[%s4487_s10 + $0x10] sm:$0xff] }
  0x13   : > { %v4507_v16 = vld [vmem:[%s4487_s10 + $0x18] sm:$0xff]  ;;  %v258_v17 = vsel %vm257_vm1, %v4490_v11, 0.0  ;;  %v259_v18 = vsel %vm257_vm1, %v4493_v12, 0.0  ;;  %v261_v19 = vsel %vm257_vm1, %v4496_v13, 0.0  ;;  %v4516_v20 = vld [vmem:[%s4487_s10 + $0x20] sm:$0xff]  ;;  %v4521_v24 = vld [vmem:[%s4487_s10 + $0x28] sm:$0xff]  ;;  %v327_v43 = vmul.f32 %v4490_v11, %v4490_v11 }
  0x14   : > { %3992 = vmatpush3.bf16.msra.mxu0 %v3991_v7  ;;  %4004 = vmatpush3.bf16.msra.mxu1 %v3991_v7  ;;  %v260_v21 = vadd.f32 %v259_v18, %v258_v17  ;;  %v263_v22 = vsel %vm257_vm1, %v4507_v16, 0.0  ;;  %v265_v26 = vsel %vm257_vm1, %v4516_v20, 0.0  ;;  %v4528_v27 = vld [vmem:[%s4487_s10 + $0x30] sm:$0xff]  ;;  %v267_v29 = vsel %vm257_vm1, %v4521_v24, 0.0  ;;  %v4533_v30 = vld [vmem:[%s4487_s10 + $0x38] sm:$0xff]  ;;  %v4538_v33 = vld [vmem:[%s4487_s10 + $0x40] sm:$0xff] }
  0x15   : > { %3993 = vmatprep.subr.bf16.mxu0 %v4416_v3  ;;  %4005 = vmatprep.subr.bf16.mxu1 %v4416_v3  ;;  %v269_v32 = vsel %vm257_vm1, %v4528_v27, 0.0  ;;  %v271_v35 = vsel %vm257_vm1, %v4533_v30, 0.0  ;;  %v4543_v36 = vld [vmem:[%s4487_s10 + $0x48] sm:$0xff]  ;;  %v273_v38 = vsel %vm257_vm1, %v4538_v33, 0.0  ;;  %v4548_v39 = vld [vmem:[%s4487_s10 + $0x50] sm:$0xff]  ;;  %v4551_v41 = vld [vmem:[%s4487_s10 + $0x58] sm:$0xff]  ;;  %v328_v44 = vmul.f32 %v4493_v12, %v4493_v12 }
  0x16   : > { %v262_v25 = vadd.f32 %v261_v19, %v260_v21  ;;  %v275_v42 = vsel %vm257_vm1, %v4543_v36, 0.0  ;;  %v329_v45 = vmul.f32 %v4496_v13, %v4496_v13  ;;  %v277_v47 = vsel %vm257_vm1, %v4548_v39, 0.0  ;;  %v4566_v49 = vld [vmem:[%s4487_s10 + $0x60] sm:$0xff]  ;;  %v4576_v56 = vld [vmem:[%s4487_s10 + $0x68] sm:$0xff]  ;;  %v4584_v62 = vld [vmem:[%s4487_s10 + $0x70] sm:$0xff] }
  0x17   : > { %v330_v48 = vmul.f32 %v4507_v16, %v4507_v16  ;;  %v279_v51 = vsel %vm257_vm1, %v4551_v41, 0.0  ;;  %v331_v52 = vmul.f32 %v4516_v20, %v4516_v20  ;;  %v359_v53 = vsel %vm257_vm1, %v327_v43, 0.0  ;;  %v4592_v5 = vld [vmem:[%s4487_s10 + $0x78] sm:$0xff]  ;;  %v4600_v14 = vld [vmem:[%s4487_s10 + $0x80] sm:$0xff] }
  0x18   : > { %3995 = vmatpush3.bf16.msra.mxu0 %v3994_v10  ;;  %4007 = vmatpush3.bf16.msra.mxu1 %v3994_v10  ;;  %v264_v28 = vadd.f32 %v263_v22, %v262_v25  ;;  %v360_v54 = vsel %vm257_vm1, %v328_v44, 0.0  ;;  %v362_v55 = vsel %vm257_vm1, %v329_v45, 0.0  ;;  %v281_v59 = vsel %vm257_vm1, %v4566_v49, 0.0  ;;  %v4608_v22 = vld [vmem:[%s4487_s10 + $0x88] sm:$0xff] }
  0x19   : > { %3996 = vmatprep.subr.bf16.mxu0 %v4416_v3  ;;  %4008 = vmatprep.subr.bf16.mxu1 %v4416_v3  ;;  %v361_v58 = vadd.f32 %v360_v54, %v359_v53  ;;  %v332_v60 = vmul.f32 %v4521_v24, %v4521_v24  ;;  %v364_v61 = vsel %vm257_vm1, %v330_v48, 0.0  ;;  %v283_v1 = vsel %vm257_vm1, %v4576_v56, 0.0  ;;  %v4640_v54 = vld [vmem:[%s4487_s10 + $0xa8] sm:$0xff] }
  0x1a   : > { %v266_v31 = vadd.f32 %v265_v26, %v264_v28  ;;  %v333_v2 = vmul.f32 %v4528_v27, %v4528_v27  ;;  %v366_v4 = vsel %vm257_vm1, %v331_v52, 0.0  ;;  %v285_v8 = vsel %vm257_vm1, %v4584_v62, 0.0 }
  0x1b   : > { %v363_v0 = vadd.f32 %v362_v55, %v361_v58  ;;  %v334_v9 = vmul.f32 %v4533_v30, %v4533_v30  ;;  %v368_v10 = vsel %vm257_vm1, %v332_v60, 0.0  ;;  %v287_v18 = vsel %vm257_vm1, %v4592_v5, 0.0 }
  0x1c   : > { %3998 = vmatpush3.bf16.msra.mxu0 %v3997_v23  ;;  %4010 = vmatpush3.bf16.msra.mxu1 %v3997_v23  ;;  %v268_v34 = vadd.f32 %v267_v29, %v266_v31  ;;  %v335_v19 = vmul.f32 %v4538_v33, %v4538_v33  ;;  %v370_v21 = vsel %vm257_vm1, %v333_v2, 0.0  ;;  %v289_v26 = vsel %vm257_vm1, %v4600_v14, 0.0  ;;  %v4616_v31 = vld [vmem:[%s4487_s10 + $0x90] sm:$0xff] }
  0x1d   : > { %v365_v7 = vadd.f32 %v364_v61, %v363_v0  ;;  %v336_v28 = vmul.f32 %v4543_v36, %v4543_v36  ;;  %v372_v29 = vsel %vm257_vm1, %v334_v9, 0.0  ;;  %v293_v44 = vsel %vm257_vm1, %v4616_v31, 0.0  ;;  %v4648_v61 = vld [vmem:[%s4487_s10 + $0xb0] sm:$0xff] }
  0x1e   : > { %v270_v37 = vadd.f32 %v269_v32, %v268_v34  ;;  %v338_v45 = vmul.f32 %v4551_v41, %v4551_v41  ;;  %v339_v52 = vmul.f32 %v4566_v49, %v4566_v49  ;;  %v341_v2 = vmul.f32 %v4584_v62, %v4584_v62 }
  0x1f   : > { %v367_v17 = vadd.f32 %v366_v4, %v365_v7  ;;  %v301_v9 = vsel %vm257_vm1, %v4648_v61, 0.0 }
  0x20   : > { %v272_v40 = vadd.f32 %v271_v35, %v270_v37  ;;  %v291_v35 = vsel %vm257_vm1, %v4608_v22, 0.0  ;;  %v337_v37 = vmul.f32 %v4548_v39, %v4548_v39  ;;  %v380_v60 = vsel %vm257_vm1, %v338_v45, 0.0 }
  0x21   : > { %v369_v25 = vadd.f32 %v368_v10, %v367_v17  ;;  %v382_v4 = vsel %vm257_vm1, %v339_v52, 0.0  ;;  %v342_v10 = vmul.f32 %v4592_v5, %v4592_v5  ;;  %v4664_v17 = vld [vmem:[%s4487_s10 + $0xc0] sm:$0xff] }
  0x22   : > { %v274_v46 = vadd.f32 %v273_v38, %v272_v40  ;;  %v374_v38 = vsel %vm257_vm1, %v335_v19, 0.0  ;;  %v4624_v40 = vld [vmem:[%s4487_s10 + $0x98] sm:$0xff]  ;;  %v378_v53 = vsel %vm257_vm1, %v337_v37, 0.0  ;;  %v4680_v37 = vld [vmem:[%s4487_s10 + $0xd0] sm:$0xff] }
  0x23   : > { %v371_v34 = vadd.f32 %v370_v21, %v369_v25  ;;  %v386_v25 = vsel %vm257_vm1, %v341_v2, 0.0  ;;  %v346_v52 = vmul.f32 %v4624_v40, %v4624_v40 }
  0x24   : > { %v276_v50 = vadd.f32 %v275_v42, %v274_v46  ;;  %v376_v46 = vsel %vm257_vm1, %v336_v28, 0.0 }
  0x25   : > { %v373_v43 = vadd.f32 %v372_v29, %v371_v34  ;;  %v344_v34 = vmul.f32 %v4608_v22, %v4608_v22 }
  0x26   : > { %v278_v57 = vadd.f32 %v277_v47, %v276_v50  ;;  %v4632_v47 = vld [vmem:[%s4487_s10 + $0xa0] sm:$0xff] }
  0x27   : > { %v375_v50 = vadd.f32 %v374_v38, %v373_v43  ;;  %v297_v58 = vsel %vm257_vm1, %v4632_v47, 0.0 }
  0x28   : > { %v280_v63 = vadd.f32 %v279_v51, %v278_v57  ;;  %v295_v51 = vsel %vm257_vm1, %v4624_v40, 0.0 }
  0x29   : > { %v377_v57 = vadd.f32 %v376_v46, %v375_v50  ;;  %v4688_v46 = vld [vmem:[%s4487_s10 + $0xd8] sm:$0xff] }
  0x2a   : > { %v282_v6 = vadd.f32 %v281_v59, %v280_v63  ;;  %v340_v59 = vmul.f32 %v4576_v56, %v4576_v56 }
  0x2b   : > { %v379_v0 = vadd.f32 %v378_v53, %v377_v57  ;;  %v392_v53 = vsel %vm257_vm1, %v344_v34, 0.0 }
  0x2c   : > { %v284_v15 = vadd.f32 %v283_v1, %v282_v6  ;;  %v299_v1 = vsel %vm257_vm1, %v4640_v54, 0.0  ;;  %v4656_v6 = vld [vmem:[%s4487_s10 + $0xb8] sm:$0xff] }
  0x2d   : > { %v303_v21 = vsel %vm257_vm1, %v4656_v6, 0.0 }
  0x2e   : > { %v286_v23 = vadd.f32 %v285_v8, %v284_v15  ;;  %v381_v8 = vadd.f32 %v380_v60, %v379_v0  ;;  %v384_v15 = vsel %vm257_vm1, %v340_v59, 0.0  ;;  %v311_v59 = vsel %vm257_vm1, %v4688_v46, 0.0  ;;  %v4704_v0 = vld [vmem:[%s4487_s10 + $0xe8] sm:$0xff] }
  0x2f   : > { %v347_v60 = vmul.f32 %v4632_v47, %v4632_v47 }
  0x30   : > { %v288_v32 = vadd.f32 %v287_v18, %v286_v23  ;;  %v383_v19 = vadd.f32 %v382_v4, %v381_v8  ;;  %v343_v23 = vmul.f32 %v4600_v14, %v4600_v14  ;;  %v396_v8 = vsel %vm257_vm1, %v346_v52, 0.0 }
  0x32   : > { %v290_v42 = vadd.f32 %v289_v26, %v288_v32  ;;  %v4672_v26 = vld [vmem:[%s4487_s10 + $0xc8] sm:$0xff]  ;;  %v385_v29 = vadd.f32 %v384_v15, %v383_v19  ;;  %v305_v32 = vsel %vm257_vm1, %v4664_v17, 0.0  ;;  %v390_v45 = vsel %vm257_vm1, %v343_v23, 0.0  ;;  %v4720_v23 = vld [vmem:[%s4487_s10 + $0xf8] sm:$0xff] }
  0x33   : > { %v307_v43 = vsel %vm257_vm1, %v4672_v26, 0.0  ;;  %v349_v19 = vmul.f32 %v4648_v61, %v4648_v61 }
  0x34   : > { %v292_v48 = vadd.f32 %v291_v35, %v290_v42  ;;  %v388_v35 = vsel %vm257_vm1, %v342_v10, 0.0  ;;  %v387_v42 = vadd.f32 %v386_v25, %v385_v29 }
  0x36   : > { %v294_v55 = vadd.f32 %v293_v44, %v292_v48  ;;  %v345_v44 = vmul.f32 %v4616_v31, %v4616_v31  ;;  %v389_v50 = vadd.f32 %v388_v35, %v387_v42  ;;  %v319_v42 = vsel %vm257_vm1, %v4720_v23, 0.0 }
  0x38   : > { %v296_v63 = vadd.f32 %v295_v51, %v294_v55  ;;  %v309_v51 = vsel %vm257_vm1, %v4680_v37, 0.0  ;;  %v4696_v55 = vld [vmem:[%s4487_s10 + $0xe0] sm:$0xff] }
  0x39   : > { %v313_v4 = vsel %vm257_vm1, %v4696_v55, 0.0 }
  0x3a   : > { %v298_v7 = vadd.f32 %v297_v58, %v296_v63  ;;  %v391_v58 = vadd.f32 %v390_v45, %v389_v50  ;;  %v394_v63 = vsel %vm257_vm1, %v345_v44, 0.0  ;;  %v402_v44 = vsel %vm257_vm1, %v349_v19, 0.0 }
  0x3b   : > { %v352_v50 = vmul.f32 %v4672_v26, %v4672_v26 }
  0x3c   : > { %v300_v18 = vadd.f32 %v299_v1, %v298_v7  ;;  %v393_v2 = vadd.f32 %v392_v53, %v391_v58  ;;  %v348_v7 = vmul.f32 %v4640_v54, %v4640_v54 }
  0x3e   : > { %v302_v28 = vadd.f32 %v301_v9, %v300_v18  ;;  %v4712_v9 = vld [vmem:[%s4487_s10 + $0xf0] sm:$0xff]  ;;  %v395_v15 = vadd.f32 %v394_v63, %v393_v2  ;;  %v315_v18 = vsel %vm257_vm1, %v4704_v0, 0.0  ;;  %v400_v34 = vsel %vm257_vm1, %v348_v7, 0.0 }
  0x3f   : > { %v317_v29 = vsel %vm257_vm1, %v4712_v9, 0.0  ;;  %v354_v63 = vmul.f32 %v4688_v46, %v4688_v46  ;;  %v355_v7 = vmul.f32 %v4696_v55, %v4696_v55 }
  0x40   : > { %v304_v38 = vadd.f32 %v303_v21, %v302_v28  ;;  %v398_v21 = vsel %vm257_vm1, %v347_v60, 0.0  ;;  %v397_v28 = vadd.f32 %v396_v8, %v395_v15 }
  0x41   : > { %v412_v19 = vsel %vm257_vm1, %v354_v63, 0.0  ;;  %v699_v63 = vld [vmem:[%s6381_s3] sm:$0xff] }
  0x42   : > { %v306_v48 = vadd.f32 %v305_v32, %v304_v38  ;;  %v350_v32 = vmul.f32 %v4656_v6, %v4656_v6  ;;  %v399_v38 = vadd.f32 %v398_v21, %v397_v28  ;;  %v357_v28 = vmul.f32 %v4712_v9, %v4712_v9 }
  0x44   : > { %v308_v57 = vadd.f32 %v307_v43, %v306_v48  ;;  %v351_v43 = vmul.f32 %v4664_v17, %v4664_v17  ;;  %v401_v48 = vadd.f32 %v400_v34, %v399_v38 }
  0x46   : > { %v310_v1 = vadd.f32 %v309_v51, %v308_v57  ;;  %v404_v51 = vsel %vm257_vm1, %v350_v32, 0.0  ;;  %v403_v53 = vadd.f32 %v402_v44, %v401_v48  ;;  %v353_v57 = vmul.f32 %v4680_v37, %v4680_v37 }
  0x47   : > { %v406_v58 = vsel %vm257_vm1, %v351_v43, 0.0  ;;  %v418_v44 = vsel %vm257_vm1, %v357_v28, 0.0  ;;  %v703_v28 = vld [vmem:[%s6381_s3 + $0x20] sm:$0xff] }
  0x48   : > { %v312_v10 = vadd.f32 %v311_v59, %v310_v1  ;;  %v405_v60 = vadd.f32 %v404_v51, %v403_v53  ;;  %v408_v1 = vsel %vm257_vm1, %v352_v50, 0.0  ;;  %v410_v8 = vsel %vm257_vm1, %v353_v57, 0.0 }
  0x4a   : > { %v314_v25 = vadd.f32 %v313_v4, %v312_v10  ;;  %v407_v4 = vadd.f32 %v406_v58, %v405_v60 }
  0x4c   : > { %v316_v35 = vadd.f32 %v315_v18, %v314_v25  ;;  %v409_v15 = vadd.f32 %v408_v1, %v407_v4  ;;  %v356_v18 = vmul.f32 %v4704_v0, %v4704_v0  ;;  %v700_v1 = vld [vmem:[%s6381_s3 + $0x8] sm:$0xff] }
  0x4d   : > { %v4011_v4 = vpack.c.bf16 %v700_v1, %v699_v63 }
  0x4e   : > { %v318_v45 = vadd.f32 %v317_v29, %v316_v35  ;;  %v411_v25 = vadd.f32 %v410_v8, %v409_v15  ;;  %v414_v29 = vsel %vm257_vm1, %v355_v7, 0.0  ;;  %v358_v35 = vmul.f32 %v4720_v23, %v4720_v23  ;;  %v3229_v7 = vld [vmem:[%s6381_s3 + $0x48] sm:$0xff]  ;;  %v702_v15 = vld [vmem:[%s6381_s3 + $0x18] sm:$0xff] }
  0x4f   : > { %v416_v38 = vsel %vm257_vm1, %v356_v18, 0.0  ;;  %4012 = vmatprep.subr.bf16.mxu0 %v4011_v4  ;;  %v3230_v18 = vld [vmem:[%s6381_s3 + $0x50] sm:$0xff] }
  0x50   : > { %v320_v52 = vadd.f32 %v319_v42, %v318_v45  ;;  %v413_v34 = vadd.f32 %v412_v19, %v411_v25  ;;  %v420_v48 = vsel %vm257_vm1, %v358_v35, 0.0  ;;  %v3233_v35 = vld [vmem:[%s6381_s3 + $0x68] sm:$0xff] }
  0x52   : > { %v321_v59 = vrot.slane %v320_v52, 4  ;;  %v415_v43 = vadd.f32 %v414_v29, %v413_v34  ;;  %v704_v29 = vld [vmem:[%s6381_s3 + $0x28] sm:$0xff] }
  0x53   : > { %v4019_v34 = vpack.c.bf16 %v704_v29, %v703_v28  ;;  %v3274_v28 = vld [vmem:[%s6381_s3 + $0xa8] sm:$0xff]  ;;  %v3275_v29 = vld [vmem:[%s6381_s3 + $0xb0] sm:$0xff] }
  0x54   : > { %v322_v2 = vadd.f32 %v321_v59, %v320_v52  ;;  %v417_v45 = vadd.f32 %v416_v38, %v415_v43  ;;  %v706_v43 = vld [vmem:[%s6381_s3 + $0x38] sm:$0xff] }
  0x56   : > { %v323_v10 = vrot.slane %v322_v2, 2  ;;  %v419_v50 = vadd.f32 %v418_v44, %v417_v45  ;;  %v3234_v44 = vld [vmem:[%s6381_s3 + $0x70] sm:$0xff] }
  0x58   : > { %v324_v21 = vadd.f32 %v323_v10, %v322_v2  ;;  %v421_v51 = vadd.f32 %v420_v48, %v419_v50  ;;  %v3228_v2 = vld [vmem:[%s6381_s3 + $0x40] sm:$0xff]  ;;  %v701_v10 = vld [vmem:[%s6381_s3 + $0x10] sm:$0xff]  ;;  %v3235_v48 = vld [vmem:[%s6381_s3 + $0x78] sm:$0xff] }
  0x59   : > { %v4027_v8 = vpack.c.bf16 %v3229_v7, %v3228_v2  ;;  %v4015_v19 = vpack.c.bf16 %v702_v15, %v701_v10  ;;  %v4039_v50 = vpack.c.bf16 %v3235_v48, %v3234_v44 }
  0x5a   : > { %v325_v32 = vrot.slane %v324_v21, 1  ;;  %v422_v52 = vrot.slane %v421_v51, 4 }
  0x5b   : > { %4028 = vmatprep.subr.bf16.mxu1 %v4027_v8 }
  0x5c   : > { %v326_v42 = vadd.f32 %v325_v32, %v324_v21  ;;  %v423_v53 = vadd.f32 %v422_v52, %v421_v51  ;;  %v3231_v21 = vld [vmem:[%s6381_s3 + $0x58] sm:$0xff]  ;;  %v3232_v32 = vld [vmem:[%s6381_s3 + $0x60] sm:$0xff]  ;;  %v3270_v52 = vld [vmem:[%s6381_s3 + $0x88] sm:$0xff] }
  0x5d   : > { %v4031_v25 = vpack.c.bf16 %v3231_v21, %v3230_v18  ;;  %v4035_v38 = vpack.c.bf16 %v3233_v35, %v3232_v32  ;;  %v3269_v51 = vld [vmem:[%s6381_s3 + $0x80] sm:$0xff]  ;;  %v3271_v18 = vld [vmem:[%s6381_s3 + $0x90] sm:$0xff]  ;;  %v3276_v32 = vld [vmem:[%s6381_s3 + $0xb8] sm:$0xff] }
  0x5e   : > { %3710 = vmatmul.mubr.msk.f32.vlgmr.msra.gmra.mrb[0].mxu0 %vm257_vm1, %v326_v42  ;;  %v424_v57 = vrot.slane %v423_v53, 2  ;;  %v705_v42 = vld [vmem:[%s6381_s3 + $0x30] sm:$0xff]  ;;  %v3273_v21 = vld [vmem:[%s6381_s3 + $0xa0] sm:$0xff] }
  0x5f   : > { %4014 = vmatpush3.bf16.msra.mxu0 %v4011_v4  ;;  %v4023_v45 = vpack.c.bf16 %v706_v43, %v705_v42  ;;  %v590_v4 = vlaneseq  ;;  %v4839_v42 = vpack.c.bf16 %v3274_v28, %v3273_v21  ;;  %v4841_v43 = vpack.c.bf16 %v3276_v32, %v3275_v29 }
  0x60   : > { %v425_v58 = vadd.f32 %v424_v57, %v423_v53  ;;  %4016 = vmatprep.subr.bf16.mxu0 %v4015_v19  ;;  %v4811_v53 = vpack.c.bf16 %v3270_v52, %v3269_v51 }
  0x61   : > { %v591_v10 = vshrl.u32 %v590_v4, 7 }
  0x62   : > { %v426_v59 = vrot.slane %v425_v58, 1 }
  0x63   : > { %4018 = vmatpush3.bf16.msra.mxu0 %v4015_v19  ;;  %v592_v15 = vsub.s32 0, %v591_v10  ;;  %v3272_v19 = vld [vmem:[%s6381_s3 + $0x98] sm:$0xff] }
  0x64   : > { %v427_v60 = vadd.f32 %v426_v59, %v425_v58  ;;  %4020 = vmatprep.subr.bf16.mxu0 %v4019_v34 }
  0x66   : > { %3729 = vmatmul.mubr.msk.f32.vlgmr.msra.gmra.mrb[0].mxu1 %vm257_vm1, %v427_v60 }
  0x67   : > { %4030 = vmatpush3.bf16.msra.mxu1 %v4027_v8  ;;  %4022 = vmatpush3.bf16.msra.mxu0 %v4019_v34  ;;  %v588_v34 = vld [vmem:[%s6379_s1] sm:$0x1] }
  0x68   : > { %4032 = vmatprep.subr.bf16.mxu1 %v4031_v25  ;;  %4024 = vmatprep.subr.bf16.mxu0 %v4023_v45 }
  0x6b   : > { %4034 = vmatpush3.bf16.msra.mxu1 %v4031_v25  ;;  %4026 = vmatpush3.bf16.msra.mxu0 %v4023_v45 }
  0x6c   : > { %4036 = vmatprep.subr.bf16.mxu1 %v4035_v38  ;;  %4044 = vmatprep.subr.bf16.mxu0 %v4811_v53 }
  0x6f   : > { %4038 = vmatpush3.bf16.msra.mxu1 %v4035_v38  ;;  %v4837_v38 = vpack.c.bf16 %v3272_v19, %v3271_v18 }
  0x70   : > { %4040 = vmatprep.subr.bf16.mxu1 %v4039_v50 }
  0x73   : > { %4042 = vmatpush3.bf16.msra.mxu1 %v4039_v50 }
 0x131   : > { %v505_v57 = vpop.f32.mrb[0].mxu0 }
 0x132   : > { %v3711_v58 = vpop.f32.mrb[1].mxu0  ;;  %v582_v59 = vmul.f32 0.001953125, %v505_v57 }
 0x134   : > { %v584_v60 = vmul.f32 %v582_v59, %v582_v59  ;;  %v4823_v25 = vrot.slane %v582_v59, %v592_v15 }
 0x136   : > { %v594_v45 = vsub.f32 %v4490_v11, %v4823_v25  ;;  %v595_v48 = vsub.f32 %v4493_v12, %v4823_v25  ;;  %v596_v50 = vsub.f32 %v4496_v13, %v4823_v25  ;;  %v597_v51 = vsub.f32 %v4507_v16, %v4823_v25  ;;  %v4868_v16 = vld [vmem:[%s6379_s1 + $0x1] ss:$0 sm:$0xff] }
 0x137   : > { %v598_v52 = vsub.f32 %v4516_v20, %v4823_v25  ;;  %v599_v57 = vsub.f32 %v4521_v24, %v4823_v25  ;;  %v600_v58 = vsub.f32 %v4528_v27, %v4823_v25  ;;  %v601_v11 = vsub.f32 %v4533_v30, %v4823_v25 }
 0x138   : > { %v602_v12 = vsub.f32 %v4538_v33, %v4823_v25  ;;  %v603_v13 = vsub.f32 %v4543_v36, %v4823_v25  ;;  %v604_v20 = vsub.f32 %v4548_v39, %v4823_v25  ;;  %v605_v24 = vsub.f32 %v4551_v41, %v4823_v25 }
 0x139   : > { %v578_v63 = vpop.f32.mrb[0].mxu1  ;;  %v606_v27 = vsub.f32 %v4566_v49, %v4823_v25  ;;  %v607_v30 = vsub.f32 %v4576_v56, %v4823_v25  ;;  %v608_v4 = vsub.f32 %v4584_v62, %v4823_v25  ;;  %v610_v10 = vsub.f32 %v4600_v14, %v4823_v25 }
 0x13a   : > { %v583_v1 = vmul.f32 0.001953125, %v578_v63  ;;  %v3730_v2 = vpop.f32.mrb[1].mxu1  ;;  %v612_v18 = vsub.f32 %v4616_v31, %v4823_v25  ;;  %v613_v21 = vsub.f32 %v4624_v40, %v4823_v25  ;;  %v614_v28 = vsub.f32 %v4632_v47, %v4823_v25 }
 0x13b   : > { %v615_v29 = vsub.f32 %v4640_v54, %v4823_v25 }
 0x13c   : > { %v585_v7 = vsub.f32 %v583_v1, %v584_v60 }
 0x13e   : > { %v586_v8 = vadd.f32 1e-06, %v585_v7  ;;  %v609_v7 = vsub.f32 %v4592_v5, %v4823_v25 }
 0x140   : > { %4182 = vrsqrt.f32 %v586_v8 }
 0x14a   : > { %v4183_v35 = vpop.eup %4182 }
 0x14b   : > { %v626_v44 = vmul.f32 %v4183_v35, %v588_v34 }
 0x14d   : > { %v4857_v59 = vrot.slane %v626_v44, %v592_v15  ;;  %v611_v15 = vsub.f32 %v4608_v22, %v4823_v25  ;;  %v616_v44 = vsub.f32 %v4648_v61, %v4823_v25 }
 0x14f   : > { %v631_v33 = vmul.f32 %v4857_v59, %v594_v45  ;;  %v632_v36 = vmul.f32 %v4857_v59, %v595_v48  ;;  %v633_v60 = vmul.f32 %v4857_v59, %v596_v50  ;;  %v634_v63 = vmul.f32 %v4857_v59, %v597_v51 }
 0x150   : > { %v635_v1 = vmul.f32 %v4857_v59, %v598_v52  ;;  %v636_v39 = vmul.f32 %v4857_v59, %v599_v57  ;;  %v637_v41 = vmul.f32 %v4857_v59, %v600_v58  ;;  %v4886_v2 = vmul.f32 %v4857_v59, %v601_v11 }
 0x151   : > { %v4889_v49 = vadd.f32 %v4868_v16, %v631_v33  ;;  %v4892_v56 = vadd.f32 %v4868_v16, %v632_v36  ;;  %v4899_v8 = vadd.f32 %v4868_v16, %v633_v60  ;;  %v639_v62 = vmul.f32 %v4857_v59, %v602_v12 }
 0x152   : > { %v4913_v5 = vmul.f32 %v4857_v59, %v603_v13  ;;  %v4916_v19 = vmul.f32 %v4857_v59, %v604_v20  ;;  %v4923_v14 = vmul.f32 %v4857_v59, %v605_v24  ;;  %v4926_v22 = vmul.f32 %v4857_v59, %v606_v27 }
 0x153   : > { %3747 = vmatprep.mubr.msk.f32.mxu0 %vm257_vm1, %v4889_v49  ;;  %3811 = vmatprep.mubr.msk.f32.mxu1 %vm257_vm1, %v4889_v49  ;;  %v4929_v31 = vmul.f32 %v4857_v59, %v607_v30  ;;  %v4942_v32 = vadd.f32 %v4868_v16, %v634_v63  ;;  %v4945_v34 = vadd.f32 %v4868_v16, %v635_v1 }
 0x154   : > { %3748 = vmatmul.mubr.msk.f32.vlgmr.msra.gmra.mrb[2].mxu0 %vm257_vm1, %v4892_v56  ;;  %3812 = vmatmul.mubr.msk.f32.vlgmr.msra.gmra.mrb[2].mxu1 %vm257_vm1, %v4892_v56  ;;  %v4948_v35 = vmul.f32 %v4857_v59, %v608_v4  ;;  %v4954_v40 = vmul.f32 %v4857_v59, %v609_v7  ;;  %v4957_v47 = vmul.f32 %v4857_v59, %v610_v10 }
 0x155   : > { %3750 = vmatprep.mubr.msk.f32.mxu0 %vm257_vm1, %v4899_v8  ;;  %3814 = vmatprep.mubr.msk.f32.mxu1 %vm257_vm1, %v4899_v8  ;;  %v4960_v54 = vmul.f32 %v4857_v59, %v611_v15  ;;  %v4963_v45 = vmul.f32 %v4857_v59, %v612_v18  ;;  %v4971_v61 = vmul.f32 %v4857_v59, %v613_v21 }
 0x156   : > { %4046 = vmatpush3.bf16.msra.mxu0 %v4811_v53  ;;  %v4974_v53 = vmul.f32 %v4857_v59, %v614_v28  ;;  %v617_v48 = vsub.f32 %v4656_v6, %v4823_v25  ;;  %v618_v50 = vsub.f32 %v4664_v17, %v4823_v25  ;;  %v619_v51 = vsub.f32 %v4672_v26, %v4823_v25 }
 0x157   : > { %4048 = vmatprep.subr.bf16.mxu0 %v4837_v38  ;;  %v620_v52 = vsub.f32 %v4680_v37, %v4823_v25  ;;  %v4989_v57 = vadd.f32 %v4868_v16, %v636_v39  ;;  %v4992_v6 = vadd.f32 %v4868_v16, %v637_v41  ;;  %v4995_v58 = vmul.f32 %v4857_v59, %v615_v29 }
 0x158   : > { %3751 = vmatmul.mubr.msk.f32.gmra.mrb[4].mxu0 %vm257_vm1, %v4942_v32  ;;  %3815 = vmatmul.mubr.msk.f32.gmra.mrb[4].mxu1 %vm257_vm1, %v4942_v32  ;;  %v621_v11 = vsub.f32 %v4688_v46, %v4823_v25  ;;  %v5001_v17 = vmul.f32 %v4857_v59, %v616_v44  ;;  %v5004_v26 = vmul.f32 %v4857_v59, %v617_v48 }
 0x159   : > { %3753 = vmatprep.mubr.msk.f32.mxu0 %vm257_vm1, %v4945_v34  ;;  %3817 = vmatprep.mubr.msk.f32.mxu1 %vm257_vm1, %v4945_v34  ;;  %v5007_v37 = vmul.f32 %v4857_v59, %v618_v50  ;;  %v5010_v12 = vmul.f32 %v4857_v59, %v619_v51  ;;  %v5018_v46 = vmul.f32 %v4857_v59, %v620_v52 }
 0x15a   : > { %4050 = vmatpush3.bf16.msra.mxu0 %v4837_v38  ;;  %v5021_v38 = vmul.f32 %v4857_v59, %v621_v11  ;;  %v622_v13 = vsub.f32 %v4696_v55, %v4823_v25  ;;  %v623_v20 = vsub.f32 %v4704_v0, %v4823_v25  ;;  %v624_v24 = vsub.f32 %v4712_v9, %v4823_v25 }
 0x15b   : > { %4052 = vmatprep.subr.bf16.mxu0 %v4839_v42  ;;  %v625_v27 = vsub.f32 %v4720_v23, %v4823_v25  ;;  %v5037_v30 = vadd.f32 %v4868_v16, %v4886_v2  ;;  %v5044_v33 = vadd.f32 %v4868_v16, %v639_v62  ;;  %v5066_v25 = vadd.f32 %v4868_v16, %v4913_v5 }
 0x15c   : > { %3754 = vmatmul.mubr.msk.f32.gmra.mrb[6].mxu0 %vm257_vm1, %v4989_v57  ;;  %3818 = vmatmul.mubr.msk.f32.gmra.mrb[6].mxu1 %vm257_vm1, %v4989_v57  ;;  %v5040_v55 = vmul.f32 %v4857_v59, %v622_v13  ;;  %v5047_v0 = vmul.f32 %v4857_v59, %v623_v20  ;;  %v5050_v9 = vmul.f32 %v4857_v59, %v624_v24 }
 0x15d   : > { %3756 = vmatprep.mubr.msk.f32.mxu0 %vm257_vm1, %v4992_v6  ;;  %3820 = vmatprep.mubr.msk.f32.mxu1 %vm257_vm1, %v4992_v6  ;;  %v5053_v23 = vmul.f32 %v4857_v59, %v625_v27  ;;  %v5088_v59 = vadd.f32 %v4868_v16, %v4926_v22  ;;  %v5100_v36 = vadd.f32 %v4868_v16, %v4929_v31 }
 0x15e   : > { %4054 = vmatpush3.bf16.msra.mxu0 %v4839_v42  ;;  %v5071_v42 = vadd.f32 %v4868_v16, %v4916_v19  ;;  %v5104_v60 = vadd.f32 %v4868_v16, %v4948_v35  ;;  %v5116_v63 = vadd.f32 %v4868_v16, %v4954_v40  ;;  %v5120_v1 = vadd.f32 %v4868_v16, %v4957_v47 }
 0x15f   : > { %4056 = vmatprep.subr.bf16.mxu0 %v4841_v43  ;;  %v684_v39 = vadd.f32 %v4868_v16, %v4960_v54  ;;  %v685_v41 = vadd.f32 %v4868_v16, %v4963_v45  ;;  %v686_v2 = vadd.f32 %v4868_v16, %v4971_v61  ;;  %v687_v4 = vadd.f32 %v4868_v16, %v4974_v53 }
 0x160   : > { %3757 = vmatmul.mubr.msk.f32.gmra.mrb[8].mxu0 %vm257_vm1, %v5037_v30  ;;  %3821 = vmatmul.mubr.msk.f32.gmra.mrb[8].mxu1 %vm257_vm1, %v5037_v30  ;;  %v688_v7 = vadd.f32 %v4868_v16, %v4995_v58  ;;  %v689_v10 = vadd.f32 %v4868_v16, %v5001_v17  ;;  %v690_v15 = vadd.f32 %v4868_v16, %v5004_v26 }
 0x161   : > { %3759 = vmatprep.mubr.msk.f32.mxu0 %vm257_vm1, %v5044_v33  ;;  %3823 = vmatprep.mubr.msk.f32.mxu1 %vm257_vm1, %v5044_v33  ;;  %v691_v18 = vadd.f32 %v4868_v16, %v5007_v37  ;;  %v692_v62 = vadd.f32 %v4868_v16, %v5010_v12  ;;  %v693_v5 = vadd.f32 %v4868_v16, %v5018_v46 }
 0x162   : > { %4058 = vmatpush3.bf16.msra.mxu0 %v4841_v43  ;;  %v5084_v43 = vadd.f32 %v4868_v16, %v4923_v14  ;;  %v694_v19 = vadd.f32 %v4868_v16, %v5021_v38  ;;  %v695_v14 = vadd.f32 %v4868_v16, %v5040_v55  ;;  %v696_v22 = vadd.f32 %v4868_v16, %v5047_v0 }
 0x163   : > { %4107 = vmatprep.subr.bf16.mxu0 %v4416_v3  ;;  %v697_v31 = vadd.f32 %v4868_v16, %v5050_v9  ;;  %v698_v21 = vadd.f32 %v4868_v16, %v5053_v23  ;;  %v5242_v16 = vld [vmem:[%s6382_s4] ss:$0 sm:$0xff] }
 0x164   : > { %3760 = vmatmul.mubr.msk.f32.gmra.mrb[10].mxu0 %vm257_vm1, %v5066_v25  ;;  %3824 = vmatmul.mubr.msk.f32.gmra.mrb[10].mxu1 %vm257_vm1, %v5066_v25 }
 0x165   : > { %3762 = vmatprep.mubr.msk.f32.mxu0 %vm257_vm1, %v5071_v42  ;;  %3826 = vmatprep.mubr.msk.f32.mxu1 %vm257_vm1, %v5071_v42 }
 0x168   : > { %3763 = vmatmul.mubr.msk.f32.gmra.mrb[12].mxu0 %vm257_vm1, %v5084_v43  ;;  %3827 = vmatmul.mubr.msk.f32.gmra.mrb[12].mxu1 %vm257_vm1, %v5084_v43 }
 0x169   : > { %3765 = vmatprep.mubr.msk.f32.mxu0 %vm257_vm1, %v5088_v59  ;;  %3829 = vmatprep.mubr.msk.f32.mxu1 %vm257_vm1, %v5088_v59 }
 0x16c   : > { %3766 = vmatmul.mubr.msk.f32.gmra.mrb[14].mxu0 %vm257_vm1, %v5100_v36  ;;  %3830 = vmatmul.mubr.msk.f32.gmra.mrb[14].mxu1 %vm257_vm1, %v5100_v36 }
 0x16d   : > { %3768 = vmatprep.mubr.msk.f32.mxu0 %vm257_vm1, %v5104_v60  ;;  %3832 = vmatprep.mubr.msk.f32.mxu1 %vm257_vm1, %v5104_v60 }
 0x170   : > { %3769 = vmatmul.mubr.msk.f32.gmra.mrb[16].mxu0 %vm257_vm1, %v5116_v63  ;;  %3833 = vmatmul.mubr.msk.f32.gmra.mrb[16].mxu1 %vm257_vm1, %v5116_v63 }
 0x171   : > { %3771 = vmatprep.mubr.msk.f32.mxu0 %vm257_vm1, %v5120_v1  ;;  %3835 = vmatprep.mubr.msk.f32.mxu1 %vm257_vm1, %v5120_v1 }
 0x174   : > { %3772 = vmatmul.mubr.msk.f32.gmra.mrb[18].mxu0 %vm257_vm1, %v684_v39  ;;  %3836 = vmatmul.mubr.msk.f32.gmra.mrb[18].mxu1 %vm257_vm1, %v684_v39 }
 0x175   : > { %3774 = vmatprep.mubr.msk.f32.mxu0 %vm257_vm1, %v685_v41  ;;  %3838 = vmatprep.mubr.msk.f32.mxu1 %vm257_vm1, %v685_v41 }
 0x178   : > { %3775 = vmatmul.mubr.msk.f32.gmra.mrb[20].mxu0 %vm257_vm1, %v686_v2  ;;  %3839 = vmatmul.mubr.msk.f32.gmra.mrb[20].mxu1 %vm257_vm1, %v686_v2 }
 0x179   : > { %3777 = vmatprep.mubr.msk.f32.mxu0 %vm257_vm1, %v687_v4  ;;  %3841 = vmatprep.mubr.msk.f32.mxu1 %vm257_vm1, %v687_v4 }
 0x17c   : > { %3778 = vmatmul.mubr.msk.f32.gmra.mrb[22].mxu0 %vm257_vm1, %v688_v7  ;;  %3842 = vmatmul.mubr.msk.f32.gmra.mrb[22].mxu1 %vm257_vm1, %v688_v7 }
 0x17d   : > { %3780 = vmatprep.mubr.msk.f32.mxu0 %vm257_vm1, %v689_v10  ;;  %3844 = vmatprep.mubr.msk.f32.mxu1 %vm257_vm1, %v689_v10 }
 0x180   : > { %3781 = vmatmul.mubr.msk.f32.gmra.mrb[24].mxu0 %vm257_vm1, %v690_v15  ;;  %3845 = vmatmul.mubr.msk.f32.gmra.mrb[24].mxu1 %vm257_vm1, %v690_v15 }
 0x181   : > { %3783 = vmatprep.mubr.msk.f32.mxu0 %vm257_vm1, %v691_v18  ;;  %3847 = vmatprep.mubr.msk.f32.mxu1 %vm257_vm1, %v691_v18 }
 0x184   : > { %3784 = vmatmul.mubr.msk.f32.gmra.mrb[26].mxu0 %vm257_vm1, %v692_v62  ;;  %3848 = vmatmul.mubr.msk.f32.gmra.mrb[26].mxu1 %vm257_vm1, %v692_v62 }
 0x185   : > { %3786 = vmatprep.mubr.msk.f32.mxu0 %vm257_vm1, %v693_v5  ;;  %3850 = vmatprep.mubr.msk.f32.mxu1 %vm257_vm1, %v693_v5 }
 0x188   : > { %3787 = vmatmul.mubr.msk.f32.gmra.mrb[28].mxu0 %vm257_vm1, %v694_v19  ;;  %3851 = vmatmul.mubr.msk.f32.gmra.mrb[28].mxu1 %vm257_vm1, %v694_v19 }
 0x189   : > { %3789 = vmatprep.mubr.msk.f32.mxu0 %vm257_vm1, %v695_v14  ;;  %3853 = vmatprep.mubr.msk.f32.mxu1 %vm257_vm1, %v695_v14 }
 0x18c   : > { %3790 = vmatmul.mubr.msk.f32.gmra.mrb[30].mxu0 %vm257_vm1, %v696_v22  ;;  %3854 = vmatmul.mubr.msk.f32.gmra.mrb[30].mxu1 %vm257_vm1, %v696_v22 }
 0x18d   : > { %3792 = vmatprep.mubr.msk.f32.mxu0 %vm257_vm1, %v697_v31  ;;  %3856 = vmatprep.mubr.msk.f32.mxu1 %vm257_vm1, %v697_v31 }
 0x190   : > { %3793 = vmatmul.mubr.msk.f32.gmra.mrb[32].mxu0 %vm257_vm1, %v698_v21  ;;  %3857 = vmatmul.mubr.msk.f32.gmra.mrb[32].mxu1 %vm257_vm1, %v698_v21 }
 0x191   : > { %3875 = vmatprep.mubr.msk.f32.mxu0 %vm257_vm1, %v4889_v49  ;;  %v5247_v49 = vld [vmem:[%s6382_s4 + $0x1] ss:$0 sm:$0xff] }
 0x194   : > { %3876 = vmatmul.mubr.msk.f32.vlgmr.msra.gmra.mrb[34].mxu0 %vm257_vm1, %v4892_v56 }
 0x195   : > { %3878 = vmatprep.mubr.msk.f32.mxu0 %vm257_vm1, %v4899_v8 }
 0x198   : > { %3879 = vmatmul.mubr.msk.f32.gmra.mrb[36].mxu0 %vm257_vm1, %v4942_v32 }
 0x199   : > { %3881 = vmatprep.mubr.msk.f32.mxu0 %vm257_vm1, %v4945_v34 }
 0x19c   : > { %3882 = vmatmul.mubr.msk.f32.gmra.mrb[38].mxu0 %vm257_vm1, %v4989_v57 }
 0x19d   : > { %3884 = vmatprep.mubr.msk.f32.mxu0 %vm257_vm1, %v4992_v6 }
 0x1a0   : > { %3885 = vmatmul.mubr.msk.f32.gmra.mrb[40].mxu0 %vm257_vm1, %v5037_v30 }
 0x1a1   : > { %3887 = vmatprep.mubr.msk.f32.mxu0 %vm257_vm1, %v5044_v33 }
 0x1a4   : > { %3888 = vmatmul.mubr.msk.f32.gmra.mrb[42].mxu0 %vm257_vm1, %v5066_v25 }
 0x1a5   : > { %3890 = vmatprep.mubr.msk.f32.mxu0 %vm257_vm1, %v5071_v42 }
 0x1a8   : > { %3891 = vmatmul.mubr.msk.f32.gmra.mrb[44].mxu0 %vm257_vm1, %v5084_v43 }
 0x1a9   : > { %3893 = vmatprep.mubr.msk.f32.mxu0 %vm257_vm1, %v5088_v59 }
 0x1ac   : > { %3894 = vmatmul.mubr.msk.f32.gmra.mrb[46].mxu0 %vm257_vm1, %v5100_v36 }
 0x1ad   : > { %3896 = vmatprep.mubr.msk.f32.mxu0 %vm257_vm1, %v5104_v60 }
 0x1b0   : > { %3897 = vmatmul.mubr.msk.f32.gmra.mrb[48].mxu0 %vm257_vm1, %v5116_v63 }
 0x1b1   : > { %3899 = vmatprep.mubr.msk.f32.mxu0 %vm257_vm1, %v5120_v1 }
 0x1b4   : > { %3900 = vmatmul.mubr.msk.f32.gmra.mrb[50].mxu0 %vm257_vm1, %v684_v39 }
 0x1b5   : > { %3902 = vmatprep.mubr.msk.f32.mxu0 %vm257_vm1, %v685_v41 }
 0x1b8   : > { %3903 = vmatmul.mubr.msk.f32.gmra.mrb[52].mxu0 %vm257_vm1, %v686_v2 }
 0x1b9   : > { %3905 = vmatprep.mubr.msk.f32.mxu0 %vm257_vm1, %v687_v4 }
 0x1bc   : > { %3906 = vmatmul.mubr.msk.f32.gmra.mrb[54].mxu0 %vm257_vm1, %v688_v7 }
 0x1bd   : > { %3908 = vmatprep.mubr.msk.f32.mxu0 %vm257_vm1, %v689_v10 }
 0x1c0   : > { %3909 = vmatmul.mubr.msk.f32.gmra.mrb[56].mxu0 %vm257_vm1, %v690_v15 }
 0x1c1   : > { %3911 = vmatprep.mubr.msk.f32.mxu0 %vm257_vm1, %v691_v18 }
 0x1c4   : > { %3912 = vmatmul.mubr.msk.f32.gmra.mrb[58].mxu0 %vm257_vm1, %v692_v62 }
 0x1c5   : > { %3914 = vmatprep.mubr.msk.f32.mxu0 %vm257_vm1, %v693_v5 }
 0x1c8   : > { %3915 = vmatmul.mubr.msk.f32.gmra.mrb[60].mxu0 %vm257_vm1, %v694_v19 }
 0x1c9   : > { %3917 = vmatprep.mubr.msk.f32.mxu0 %vm257_vm1, %v695_v14 }
 0x1cc   : > { %3918 = vmatmul.mubr.msk.f32.gmra.mrb[62].mxu0 %vm257_vm1, %v696_v22 }
 0x1cd   : > { %3920 = vmatprep.mubr.msk.f32.mxu0 %vm257_vm1, %v697_v31 }
 0x1d0   : > { %3921 = vmatmul.mubr.msk.f32.gmra.mrb[64].mxu0 %vm257_vm1, %v698_v21 }
 0x227   : > { %v3749_v56 = vpop.f32.mrb[2].mxu0  ;;  %v3813_v8 = vpop.f32.mrb[2].mxu1 }
 0x228   : > { %v5250_v28 = vadd.f32 %v3749_v56, %v5242_v16  ;;  %v5253_v29 = vadd.f32 %v3813_v8, %v5247_v49  ;;  %v874_v32 = vpop.f32.mrb[3].mxu0  ;;  %v1113_v34 = vpop.f32.mrb[3].mxu1 }
 0x229   : > { %v5256_v35 = vadd.f32 %v5242_v16, %v874_v32  ;;  %v5259_v44 = vadd.f32 %v5247_v49, %v1113_v34 }
 0x22b   : > { %v4062_v40 = vpack.c.bf16 %v5253_v29, %v5259_v44  ;;  %v3752_v47 = vpop.f32.mrb[4].mxu0  ;;  %v3816_v54 = vpop.f32.mrb[4].mxu1  ;;  %3589 = vmatprep.mubr.msk.f32.mxu1 %vm257_vm1, %v5256_v35 }
 0x22c   : > { %v5266_v45 = vadd.f32 %v3752_v47, %v5242_v16  ;;  %v5269_v61 = vadd.f32 %v3816_v54, %v5247_v49  ;;  %v884_v53 = vpop.f32.mrb[5].mxu0  ;;  %v1123_v48 = vpop.f32.mrb[5].mxu1 }
 0x22d   : > { %v5272_v50 = vadd.f32 %v5242_v16, %v884_v53  ;;  %v5275_v51 = vadd.f32 %v5247_v49, %v1123_v48 }
 0x22f   : > { %v4068_v52 = vpack.c.bf16 %v5269_v61, %v5275_v51  ;;  %v3755_v57 = vpop.f32.mrb[6].mxu0  ;;  %v3819_v6 = vpop.f32.mrb[6].mxu1 }
 0x230   : > { %v5280_v58 = vadd.f32 %v3755_v57, %v5242_v16  ;;  %v5283_v11 = vadd.f32 %v3819_v6, %v5247_v49  ;;  %v894_v17 = vpop.f32.mrb[7].mxu0  ;;  %v1133_v26 = vpop.f32.mrb[7].mxu1 }
 0x231   : > { %v5286_v37 = vadd.f32 %v5242_v16, %v894_v17  ;;  %v5289_v12 = vadd.f32 %v5247_v49, %v1133_v26 }
 0x233   : > { %v4074_v46 = vpack.c.bf16 %v5283_v11, %v5289_v12  ;;  %v3758_v38 = vpop.f32.mrb[8].mxu0  ;;  %v3822_v13 = vpop.f32.mrb[8].mxu1 }
 0x234   : > { %v5294_v20 = vadd.f32 %v3758_v38, %v5242_v16  ;;  %v5297_v24 = vadd.f32 %v3822_v13, %v5247_v49  ;;  %v904_v27 = vpop.f32.mrb[9].mxu0  ;;  %v1143_v30 = vpop.f32.mrb[9].mxu1 }
 0x235   : > { %v5300_v55 = vadd.f32 %v5242_v16, %v904_v27  ;;  %v5303_v33 = vadd.f32 %v5247_v49, %v1143_v30 }
 0x237   : > { %v4080_v0 = vpack.c.bf16 %v5297_v24, %v5303_v33  ;;  %v3761_v9 = vpop.f32.mrb[10].mxu0  ;;  %v3825_v23 = vpop.f32.mrb[10].mxu1 }
 0x238   : > { %v5308_v25 = vadd.f32 %v3761_v9, %v5242_v16  ;;  %v5311_v42 = vadd.f32 %v3825_v23, %v5247_v49  ;;  %v914_v43 = vpop.f32.mrb[11].mxu0  ;;  %v1153_v59 = vpop.f32.mrb[11].mxu1 }
 0x239   : > { %v5314_v36 = vadd.f32 %v5242_v16, %v914_v43  ;;  %v5317_v60 = vadd.f32 %v5247_v49, %v1153_v59 }
 0x23b   : > { %v4086_v63 = vpack.c.bf16 %v5311_v42, %v5317_v60  ;;  %v3764_v1 = vpop.f32.mrb[12].mxu0  ;;  %v3828_v39 = vpop.f32.mrb[12].mxu1 }
 0x23c   : > { %v5322_v41 = vadd.f32 %v3764_v1, %v5242_v16  ;;  %v5325_v2 = vadd.f32 %v3828_v39, %v5247_v49  ;;  %v924_v4 = vpop.f32.mrb[13].mxu0  ;;  %v1163_v7 = vpop.f32.mrb[13].mxu1 }
 0x23d   : > { %v5328_v10 = vadd.f32 %v5242_v16, %v924_v4  ;;  %v5331_v15 = vadd.f32 %v5247_v49, %v1163_v7 }
 0x23f   : > { %v4092_v18 = vpack.c.bf16 %v5325_v2, %v5331_v15  ;;  %v3767_v62 = vpop.f32.mrb[14].mxu0  ;;  %v3831_v5 = vpop.f32.mrb[14].mxu1 }
 0x240   : > { %v5336_v19 = vadd.f32 %v3767_v62, %v5242_v16  ;;  %v5339_v14 = vadd.f32 %v3831_v5, %v5247_v49  ;;  %v934_v22 = vpop.f32.mrb[15].mxu0  ;;  %v1173_v31 = vpop.f32.mrb[15].mxu1 }
 0x241   : > { %v5342_v21 = vadd.f32 %v5242_v16, %v934_v22  ;;  %v5345_v56 = vadd.f32 %v5247_v49, %v1173_v31 }
 0x243   : > { %v4098_v8 = vpack.c.bf16 %v5339_v14, %v5345_v56  ;;  %v3770_v32 = vpop.f32.mrb[16].mxu0  ;;  %v3834_v34 = vpop.f32.mrb[16].mxu1 }
 0x244   : > { %v5350_v47 = vadd.f32 %v3770_v32, %v5242_v16  ;;  %v5353_v54 = vadd.f32 %v3834_v34, %v5247_v49  ;;  %v944_v53 = vpop.f32.mrb[17].mxu0  ;;  %v1183_v48 = vpop.f32.mrb[17].mxu1 }
 0x245   : > { %v5356_v57 = vadd.f32 %v5242_v16, %v944_v53  ;;  %v5359_v6 = vadd.f32 %v5247_v49, %v1183_v48 }
 0x247   : > { %v4104_v17 = vpack.c.bf16 %v5353_v54, %v5359_v6  ;;  %v3773_v26 = vpop.f32.mrb[18].mxu0  ;;  %v3837_v38 = vpop.f32.mrb[18].mxu1 }
 0x248   : > { %v5364_v13 = vadd.f32 %v3773_v26, %v5242_v16  ;;  %v1199_v27 = vadd.f32 %v3837_v38, %v5247_v49  ;;  %v954_v30 = vpop.f32.mrb[19].mxu0  ;;  %v1193_v9 = vpop.f32.mrb[19].mxu1 }
 0x249   : > { %v5368_v23 = vadd.f32 %v5242_v16, %v954_v30  ;;  %v1194_v43 = vadd.f32 %v5247_v49, %v1193_v9 }
 0x24b   : > { %v4059_v1 = vpack.c.bf16 %v1199_v27, %v1194_v43  ;;  %v3776_v39 = vpop.f32.mrb[20].mxu0  ;;  %v3840_v4 = vpop.f32.mrb[20].mxu1 }
 0x24c   : > { %v5378_v7 = vadd.f32 %v3776_v39, %v5242_v16  ;;  %v1209_v62 = vadd.f32 %v3840_v4, %v5247_v49  ;;  %v964_v5 = vpop.f32.mrb[21].mxu0  ;;  %v1203_v22 = vpop.f32.mrb[21].mxu1 }
 0x24d   : > { %v5382_v31 = vadd.f32 %v5242_v16, %v964_v5  ;;  %v1204_v32 = vadd.f32 %v5247_v49, %v1203_v22  ;;  %4061 = vmatprep.subr.msk.bf16.mxu1 %vm5373_vm2, %v4059_v1 }
 0x24e   : > { %4064 = vmatpush3.bf16.xpose.msk.msra.mxu1 %vm5373_vm2, %v4062_v40 }
 0x24f   : > { %v4065_v34 = vpack.c.bf16 %v1209_v62, %v1204_v32  ;;  %v3779_v53 = vpop.f32.mrb[22].mxu0  ;;  %v3843_v48 = vpop.f32.mrb[22].mxu1 }
 0x250   : > { %v5393_v26 = vadd.f32 %v3779_v53, %v5242_v16  ;;  %v1219_v38 = vadd.f32 %v3843_v48, %v5247_v49  ;;  %v974_v27 = vpop.f32.mrb[23].mxu0  ;;  %v1213_v30 = vpop.f32.mrb[23].mxu1 }
 0x251   : > { %v5397_v9 = vadd.f32 %v5242_v16, %v974_v27  ;;  %v1214_v43 = vadd.f32 %v5247_v49, %v1213_v30  ;;  %4067 = vmatprep.subr.msk.bf16.mxu1 %vm5373_vm2, %v4065_v34 }
 0x253   : > { %v4071_v29 = vpack.c.bf16 %v1219_v38, %v1214_v43  ;;  %v3782_v44 = vpop.f32.mrb[24].mxu0  ;;  %v3846_v40 = vpop.f32.mrb[24].mxu1 }
 0x254   : > { %v5403_v1 = vadd.f32 %v3782_v44, %v5242_v16  ;;  %v1229_v39 = vadd.f32 %v3846_v40, %v5247_v49  ;;  %v984_v4 = vpop.f32.mrb[25].mxu0  ;;  %v1223_v62 = vpop.f32.mrb[25].mxu1 }
 0x255   : > { %v5407_v5 = vadd.f32 %v5242_v16, %v984_v4  ;;  %v1224_v22 = vadd.f32 %v5247_v49, %v1223_v62 }
 0x256   : > { %4070 = vmatpush3.bf16.xpose.msk.msra.mxu1 %vm5373_vm2, %v4068_v52 }
 0x257   : > { %v4077_v32 = vpack.c.bf16 %v1229_v39, %v1224_v22  ;;  %v3785_v34 = vpop.f32.mrb[26].mxu0  ;;  %v3849_v53 = vpop.f32.mrb[26].mxu1  ;;  %4073 = vmatprep.subr.msk.bf16.mxu1 %vm5373_vm2, %v4071_v29 }
 0x258   : > { %v5418_v48 = vadd.f32 %v3785_v34, %v5242_v16  ;;  %v1239_v38 = vadd.f32 %v3849_v53, %v5247_v49  ;;  %v994_v27 = vpop.f32.mrb[27].mxu0  ;;  %v1233_v30 = vpop.f32.mrb[27].mxu1 }
 0x259   : > { %v5422_v43 = vadd.f32 %v5242_v16, %v994_v27  ;;  %v1234_v61 = vadd.f32 %v5247_v49, %v1233_v30 }
 0x25b   : > { %v4083_v51 = vpack.c.bf16 %v1239_v38, %v1234_v61  ;;  %v3788_v52 = vpop.f32.mrb[28].mxu0  ;;  %v3852_v44 = vpop.f32.mrb[28].mxu1 }
 0x25c   : > { %v5426_v40 = vadd.f32 %v3788_v52, %v5242_v16  ;;  %v1249_v29 = vadd.f32 %v3852_v44, %v5247_v49  ;;  %v1004_v39 = vpop.f32.mrb[29].mxu0  ;;  %v1243_v4 = vpop.f32.mrb[29].mxu1 }
 0x25d   : > { %v5430_v62 = vadd.f32 %v5242_v16, %v1004_v39  ;;  %v1244_v22 = vadd.f32 %v5247_v49, %v1243_v4 }
 0x25e   : > { %4076 = vmatpush3.bf16.xpose.msk.msra.mxu1 %vm5373_vm2, %v4074_v46 }
 0x25f   : > { %v4089_v34 = vpack.c.bf16 %v1249_v29, %v1244_v22  ;;  %v3791_v53 = vpop.f32.mrb[30].mxu0  ;;  %v3855_v38 = vpop.f32.mrb[30].mxu1  ;;  %4079 = vmatprep.subr.msk.bf16.mxu1 %vm5373_vm2, %v4077_v32 }
 0x260   : > { %v5441_v27 = vadd.f32 %v3791_v53, %v5242_v16  ;;  %v1259_v30 = vadd.f32 %v3855_v38, %v5247_v49  ;;  %v1014_v61 = vpop.f32.mrb[31].mxu0  ;;  %v1253_v52 = vpop.f32.mrb[31].mxu1 }
 0x261   : > { %v5445_v44 = vadd.f32 %v5242_v16, %v1014_v61  ;;  %v1254_v11 = vadd.f32 %v5247_v49, %v1253_v52  ;;  %v5459_v61 = vld [vmem:[%s6382_s4 + $0x2] ss:$0 sm:$0xff] }
 0x263   : > { %v4095_v12 = vpack.c.bf16 %v1259_v30, %v1254_v11  ;;  %v3794_v46 = vpop.f32.mrb[32].mxu0  ;;  %v3858_v29 = vpop.f32.mrb[32].mxu1 }
 0x264   : > { %v5449_v39 = vadd.f32 %v3794_v46, %v5242_v16  ;;  %v1269_v32 = vadd.f32 %v3858_v29, %v5247_v49  ;;  %v1024_v4 = vpop.f32.mrb[33].mxu0  ;;  %v1263_v22 = vpop.f32.mrb[33].mxu1 }
 0x265   : > { %v5453_v53 = vadd.f32 %v5242_v16, %v1024_v4  ;;  %v1264_v38 = vadd.f32 %v5247_v49, %v1263_v22 }
 0x266   : > { %4082 = vmatpush3.bf16.xpose.msk.msra.mxu1 %vm5373_vm2, %v4080_v0 }
 0x267   : > { %v4101_v30 = vpack.c.bf16 %v1269_v32, %v1264_v38  ;;  %v3877_v52 = vpop.f32.mrb[34].mxu0  ;;  %4085 = vmatprep.subr.msk.bf16.mxu1 %vm5373_vm2, %v4083_v51 }
 0x268   : > { %v1358_v16 = vadd.f32 %v3877_v52, %v5459_v61  ;;  %v1352_v11 = vpop.f32.mrb[35].mxu0 }
 0x269   : > { %v1353_v49 = vadd.f32 %v5459_v61, %v1352_v11 }
 0x26b   : > { %v4108_v46 = vpack.c.bf16 %v1358_v16, %v1353_v49  ;;  %v3880_v29 = vpop.f32.mrb[36].mxu0 }
 0x26c   : > { %v1368_v4 = vadd.f32 %v3880_v29, %v5459_v61  ;;  %v1362_v22 = vpop.f32.mrb[37].mxu0 }
 0x26d   : > { %v1363_v24 = vadd.f32 %v5459_v61, %v1362_v22  ;;  %4109 = vmatpush1.bf16.msra.mxu0 %v4108_v46 }
 0x26e   : > { %4088 = vmatpush3.bf16.xpose.msk.msra.mxu1 %vm5373_vm2, %v4086_v63  ;;  %4110 = vmatprep.subr.bf16.mxu0 %v4416_v3 }
 0x26f   : > { %v4111_v33 = vpack.c.bf16 %v1368_v4, %v1363_v24  ;;  %v3883_v0 = vpop.f32.mrb[38].mxu0  ;;  %4091 = vmatprep.subr.msk.bf16.mxu1 %vm5373_vm2, %v4089_v34 }
 0x270   : > { %v1378_v51 = vadd.f32 %v3883_v0, %v5459_v61  ;;  %v1372_v32 = vpop.f32.mrb[39].mxu0 }
 0x271   : > { %v1373_v38 = vadd.f32 %v5459_v61, %v1372_v32  ;;  %4112 = vmatpush1.bf16.msra.mxu0 %v4111_v33 }
 0x272   : > { %4113 = vmatprep.subr.bf16.mxu0 %v4416_v3 }
 0x273   : > { %v4114_v52 = vpack.c.bf16 %v1378_v51, %v1373_v38  ;;  %v3886_v42 = vpop.f32.mrb[40].mxu0 }
 0x274   : > { %v1388_v60 = vadd.f32 %v3886_v42, %v5459_v61  ;;  %v1382_v63 = vpop.f32.mrb[41].mxu0 }
 0x275   : > { %v1383_v16 = vadd.f32 %v5459_v61, %v1382_v63  ;;  %4115 = vmatpush1.bf16.msra.mxu0 %v4114_v52 }
 0x276   : > { %4094 = vmatpush3.bf16.xpose.msk.msra.mxu1 %vm5373_vm2, %v4092_v18  ;;  %4116 = vmatprep.subr.bf16.mxu0 %v4416_v3 }
 0x277   : > { %v4117_v34 = vpack.c.bf16 %v1388_v60, %v1383_v16  ;;  %v3889_v11 = vpop.f32.mrb[42].mxu0  ;;  %4097 = vmatprep.subr.msk.bf16.mxu1 %vm5373_vm2, %v4095_v12 }
 0x278   : > { %v1398_v49 = vadd.f32 %v3889_v11, %v5459_v61  ;;  %v1392_v46 = vpop.f32.mrb[43].mxu0 }
 0x279   : > { %v1393_v29 = vadd.f32 %v5459_v61, %v1392_v46  ;;  %4118 = vmatpush1.bf16.msra.mxu0 %v4117_v34 }
 0x27a   : > { %4119 = vmatprep.subr.bf16.mxu0 %v4416_v3 }
 0x27b   : > { %v4120_v4 = vpack.c.bf16 %v1398_v49, %v1393_v29  ;;  %v3892_v2 = vpop.f32.mrb[44].mxu0 }
 0x27c   : > { %v1408_v15 = vadd.f32 %v3892_v2, %v5459_v61  ;;  %v1402_v18 = vpop.f32.mrb[45].mxu0 }
 0x27d   : > { %v1403_v22 = vadd.f32 %v5459_v61, %v1402_v18  ;;  %4121 = vmatpush1.bf16.msra.mxu0 %v4120_v4 }
 0x27e   : > { %4100 = vmatpush3.bf16.xpose.msk.msra.mxu1 %vm5373_vm2, %v4098_v8  ;;  %4122 = vmatprep.subr.bf16.mxu0 %v4416_v3 }
 0x27f   : > { %v4123_v12 = vpack.c.bf16 %v1408_v15, %v1403_v22  ;;  %v3895_v24 = vpop.f32.mrb[46].mxu0  ;;  %4103 = vmatprep.subr.msk.bf16.mxu1 %vm5373_vm2, %v4101_v30 }
 0x280   : > { %v1418_v33 = vadd.f32 %v3895_v24, %v5459_v61  ;;  %v1412_v0 = vpop.f32.mrb[47].mxu0 }
 0x281   : > { %v1413_v51 = vadd.f32 %v5459_v61, %v1412_v0  ;;  %4124 = vmatpush1.bf16.msra.mxu0 %v4123_v12 }
 0x282   : > { %4125 = vmatprep.subr.bf16.mxu0 %v4416_v3 }
 0x283   : > { %v4126_v32 = vpack.c.bf16 %v1418_v33, %v1413_v51  ;;  %v3898_v14 = vpop.f32.mrb[48].mxu0 }
 0x284   : > { %v1428_v56 = vadd.f32 %v3898_v14, %v5459_v61  ;;  %v1422_v8 = vpop.f32.mrb[49].mxu0 }
 0x285   : > { %v1423_v38 = vadd.f32 %v5459_v61, %v1422_v8  ;;  %4127 = vmatpush1.bf16.msra.mxu0 %v4126_v32 }
 0x286   : > { %4106 = vmatpush3.bf16.xpose.msk.msra.mxu1 %vm5373_vm2, %v4104_v17  ;;  %4128 = vmatprep.subr.bf16.mxu0 %v4416_v3 }
 0x287   : > { %v4129_v30 = vpack.c.bf16 %v1428_v56, %v1423_v38  ;;  %v3901_v52 = vpop.f32.mrb[50].mxu0 }
 0x288   : > { %v1438_v42 = vadd.f32 %v3901_v52, %v5459_v61  ;;  %v1432_v60 = vpop.f32.mrb[51].mxu0 }
 0x289   : > { %v1433_v63 = vadd.f32 %v5459_v61, %v1432_v60  ;;  %4130 = vmatpush1.bf16.msra.mxu0 %v4129_v30 }
 0x28a   : > { %4131 = vmatprep.subr.bf16.mxu0 %v4416_v3 }
 0x28b   : > { %v4132_v16 = vpack.c.bf16 %v1438_v42, %v1433_v63  ;;  %v3904_v34 = vpop.f32.mrb[52].mxu0 }
 0x28c   : > { %v1448_v11 = vadd.f32 %v3904_v34, %v5459_v61  ;;  %v1442_v54 = vpop.f32.mrb[53].mxu0 }
 0x28d   : > { %v1443_v6 = vadd.f32 %v5459_v61, %v1442_v54  ;;  %3590 = vmatmul.mubr.msk.f32.vlgmr.msra.gmra.mrb[34].mxu1 %vm257_vm1, %v5256_v35  ;;  %4133 = vmatpush1.bf16.msra.mxu0 %v4132_v16 }
 0x28e   : > { %3591 = vmatprep.mubr.msk.f32.mxu1 %vm257_vm1, %v5250_v28  ;;  %4134 = vmatprep.subr.bf16.mxu0 %v4416_v3 }
 0x28f   : > { %v4135_v17 = vpack.c.bf16 %v1448_v11, %v1443_v6  ;;  %v3907_v59 = vpop.f32.mrb[54].mxu0 }
 0x290   : > { %v1458_v49 = vadd.f32 %v3907_v59, %v5459_v61  ;;  %v1452_v46 = vpop.f32.mrb[55].mxu0 }
 0x291   : > { %v1453_v29 = vadd.f32 %v5459_v61, %v1452_v46  ;;  %3592 = vmatmul.mubr.msk.f32.gmra.mrb[36].mxu1 %vm257_vm1, %v5250_v28  ;;  %4136 = vmatpush1.bf16.msra.mxu0 %v4135_v17 }
 0x292   : > { %3593 = vmatprep.mubr.msk.f32.mxu1 %vm257_vm1, %v5272_v50  ;;  %4137 = vmatprep.subr.bf16.mxu0 %v4416_v3 }
 0x293   : > { %v4138_v35 = vpack.c.bf16 %v1458_v49, %v1453_v29  ;;  %v3910_v4 = vpop.f32.mrb[56].mxu0 }
 0x294   : > { %v1468_v2 = vadd.f32 %v3910_v4, %v5459_v61  ;;  %v1462_v15 = vpop.f32.mrb[57].mxu0 }
 0x295   : > { %v1463_v18 = vadd.f32 %v5459_v61, %v1462_v15  ;;  %3594 = vmatmul.mubr.msk.f32.gmra.mrb[38].mxu1 %vm257_vm1, %v5272_v50  ;;  %4139 = vmatpush1.bf16.msra.mxu0 %v4138_v35 }
 0x296   : > { %3595 = vmatprep.mubr.msk.f32.mxu1 %vm257_vm1, %v5266_v45  ;;  %4140 = vmatprep.subr.bf16.mxu0 %v4416_v3 }
 0x297   : > { %v4141_v28 = vpack.c.bf16 %v1468_v2, %v1463_v18  ;;  %v3913_v22 = vpop.f32.mrb[58].mxu0 }
 0x298   : > { %v1478_v12 = vadd.f32 %v3913_v22, %v5459_v61  ;;  %v1472_v24 = vpop.f32.mrb[59].mxu0 }
 0x299   : > { %v1473_v33 = vadd.f32 %v5459_v61, %v1472_v24  ;;  %3596 = vmatmul.mubr.msk.f32.gmra.mrb[40].mxu1 %vm257_vm1, %v5266_v45  ;;  %4142 = vmatpush1.bf16.msra.mxu0 %v4141_v28 }
 0x29a   : > { %3597 = vmatprep.mubr.msk.f32.mxu1 %vm257_vm1, %v5286_v37  ;;  %4143 = vmatprep.subr.bf16.mxu0 %v4416_v3 }
 0x29b   : > { %v4144_v50 = vpack.c.bf16 %v1478_v12, %v1473_v33  ;;  %v3916_v0 = vpop.f32.mrb[60].mxu0 }
 0x29c   : > { %v1488_v51 = vadd.f32 %v3916_v0, %v5459_v61  ;;  %v1482_v32 = vpop.f32.mrb[61].mxu0 }
 0x29d   : > { %v1483_v14 = vadd.f32 %v5459_v61, %v1482_v32  ;;  %3598 = vmatmul.mubr.msk.f32.gmra.mrb[42].mxu1 %vm257_vm1, %v5286_v37  ;;  %4145 = vmatpush1.bf16.msra.mxu0 %v4144_v50 }
 0x29e   : > { %3599 = vmatprep.mubr.msk.f32.mxu1 %vm257_vm1, %v5280_v58  ;;  %4146 = vmatprep.subr.bf16.mxu0 %v4416_v3 }
 0x29f   : > { %v4147_v45 = vpack.c.bf16 %v1488_v51, %v1483_v14  ;;  %v3919_v56 = vpop.f32.mrb[62].mxu0 }
 0x2a0   : > { %v1498_v8 = vadd.f32 %v3919_v56, %v5459_v61  ;;  %v1492_v38 = vpop.f32.mrb[63].mxu0 }
 0x2a1   : > { %v1493_v30 = vadd.f32 %v5459_v61, %v1492_v38  ;;  %3600 = vmatmul.mubr.msk.f32.gmra.mrb[44].mxu1 %vm257_vm1, %v5280_v58  ;;  %4148 = vmatpush1.bf16.msra.mxu0 %v4147_v45 }
 0x2a2   : > { %3601 = vmatprep.mubr.msk.f32.mxu1 %vm257_vm1, %v5300_v55  ;;  %4149 = vmatprep.subr.bf16.mxu0 %v4416_v3 }
 0x2a3   : > { %v4150_v37 = vpack.c.bf16 %v1498_v8, %v1493_v30  ;;  %v3922_v52 = vpop.f32.mrb[64].mxu0 }
 0x2a4   : > { %v1508_v42 = vadd.f32 %v3922_v52, %v5459_v61  ;;  %v1502_v60 = vpop.f32.mrb[65].mxu0 }
 0x2a5   : > { %v1503_v63 = vadd.f32 %v5459_v61, %v1502_v60  ;;  %3602 = vmatmul.mubr.msk.f32.gmra.mrb[46].mxu1 %vm257_vm1, %v5300_v55  ;;  %4151 = vmatpush1.bf16.msra.mxu0 %v4150_v37 }
 0x2a6   : > { %3603 = vmatprep.mubr.msk.f32.mxu1 %vm257_vm1, %v5294_v20  ;;  %4152 = vmatprep.subr.bf16.mxu0 %v4416_v3 }
 0x2a7   : > { %v4153_v58 = vpack.c.bf16 %v1508_v42, %v1503_v63 }
 0x2a9   : > { %3604 = vmatmul.mubr.msk.f32.gmra.mrb[48].mxu1 %vm257_vm1, %v5294_v20  ;;  %4154 = vmatpush1.bf16.msra.mxu0 %v4153_v58 }
 0x2aa   : > { %3605 = vmatprep.mubr.msk.f32.mxu1 %vm257_vm1, %v5314_v36 }
 0x2ad   : > { %3606 = vmatmul.mubr.msk.f32.gmra.mrb[50].mxu1 %vm257_vm1, %v5314_v36 }
 0x2ae   : > { %3607 = vmatprep.mubr.msk.f32.mxu1 %vm257_vm1, %v5308_v25 }
 0x2b1   : > { %3608 = vmatmul.mubr.msk.f32.gmra.mrb[52].mxu1 %vm257_vm1, %v5308_v25 }
 0x2b2   : > { %3609 = vmatprep.mubr.msk.f32.mxu1 %vm257_vm1, %v5328_v10 }
 0x2b5   : > { %3610 = vmatmul.mubr.msk.f32.gmra.mrb[54].mxu1 %vm257_vm1, %v5328_v10 }
 0x2b6   : > { %3611 = vmatprep.mubr.msk.f32.mxu1 %vm257_vm1, %v5322_v41 }
 0x2b9   : > { %3612 = vmatmul.mubr.msk.f32.gmra.mrb[56].mxu1 %vm257_vm1, %v5322_v41 }
 0x2ba   : > { %3613 = vmatprep.mubr.msk.f32.mxu1 %vm257_vm1, %v5342_v21 }
 0x2bd   : > { %3614 = vmatmul.mubr.msk.f32.gmra.mrb[58].mxu1 %vm257_vm1, %v5342_v21 }
 0x2be   : > { %3615 = vmatprep.mubr.msk.f32.mxu1 %vm257_vm1, %v5336_v19 }
 0x2c1   : > { %3616 = vmatmul.mubr.msk.f32.gmra.mrb[60].mxu1 %vm257_vm1, %v5336_v19 }
 0x2c2   : > { %3617 = vmatprep.mubr.msk.f32.mxu1 %vm257_vm1, %v5356_v57 }
 0x2c5   : > { %3618 = vmatmul.mubr.msk.f32.gmra.mrb[62].mxu1 %vm257_vm1, %v5356_v57 }
 0x2c6   : > { %3619 = vmatprep.mubr.msk.f32.mxu1 %vm257_vm1, %v5350_v47 }
 0x2c9   : > { %3620 = vmatmul.mubr.msk.f32.gmra.mrb[64].mxu1 %vm257_vm1, %v5350_v47 }
 0x2ca   : > { %3621 = vmatprep.mubr.msk.f32.mxu1 %vm257_vm1, %v5368_v23 }
 0x2cd   : > { %3622 = vmatmul.mubr.msk.f32.gmra.mrb[66].mxu1 %vm257_vm1, %v5368_v23 }
 0x2ce   : > { %3623 = vmatprep.mubr.msk.f32.mxu1 %vm257_vm1, %v5364_v13 }
 0x2d1   : > { %3624 = vmatmul.mubr.msk.f32.gmra.mrb[68].mxu1 %vm257_vm1, %v5364_v13 }
 0x2d2   : > { %3625 = vmatprep.mubr.msk.f32.mxu1 %vm257_vm1, %v5382_v31 }
 0x2d5   : > { %3626 = vmatmul.mubr.msk.f32.gmra.mrb[70].mxu1 %vm257_vm1, %v5382_v31 }
 0x2d6   : > { %3627 = vmatprep.mubr.msk.f32.mxu1 %vm257_vm1, %v5378_v7 }
 0x2d9   : > { %3628 = vmatmul.mubr.msk.f32.gmra.mrb[72].mxu1 %vm257_vm1, %v5378_v7 }
 0x2da   : > { %3629 = vmatprep.mubr.msk.f32.mxu1 %vm257_vm1, %v5397_v9 }
 0x2dd   : > { %3630 = vmatmul.mubr.msk.f32.gmra.mrb[74].mxu1 %vm257_vm1, %v5397_v9 }
 0x2de   : > { %3631 = vmatprep.mubr.msk.f32.mxu1 %vm257_vm1, %v5393_v26 }
 0x2e1   : > { %3632 = vmatmul.mubr.msk.f32.gmra.mrb[76].mxu1 %vm257_vm1, %v5393_v26 }
 0x2e2   : > { %3633 = vmatprep.mubr.msk.f32.mxu1 %vm257_vm1, %v5407_v5 }
 0x2e5   : > { %3634 = vmatmul.mubr.msk.f32.gmra.mrb[78].mxu1 %vm257_vm1, %v5407_v5 }
 0x2e6   : > { %3635 = vmatprep.mubr.msk.f32.mxu1 %vm257_vm1, %v5403_v1 }
 0x2e9   : > { %3636 = vmatmul.mubr.msk.f32.gmra.mrb[80].mxu1 %vm257_vm1, %v5403_v1 }
 0x2ea   : > { %3637 = vmatprep.mubr.msk.f32.mxu1 %vm257_vm1, %v5422_v43 }
 0x2ed   : > { %3638 = vmatmul.mubr.msk.f32.gmra.mrb[82].mxu1 %vm257_vm1, %v5422_v43 }
 0x2ee   : > { %3639 = vmatprep.mubr.msk.f32.mxu1 %vm257_vm1, %v5418_v48 }
 0x2f1   : > { %3640 = vmatmul.mubr.msk.f32.gmra.mrb[84].mxu1 %vm257_vm1, %v5418_v48 }
 0x2f2   : > { %3641 = vmatprep.mubr.msk.f32.mxu1 %vm257_vm1, %v5430_v62 }
 0x2f5   : > { %3642 = vmatmul.mubr.msk.f32.gmra.mrb[86].mxu1 %vm257_vm1, %v5430_v62 }
 0x2f6   : > { %3643 = vmatprep.mubr.msk.f32.mxu1 %vm257_vm1, %v5426_v40 }
 0x2f9   : > { %3644 = vmatmul.mubr.msk.f32.gmra.mrb[88].mxu1 %vm257_vm1, %v5426_v40 }
 0x2fa   : > { %3645 = vmatprep.mubr.msk.f32.mxu1 %vm257_vm1, %v5445_v44 }
 0x2fd   : > { %3646 = vmatmul.mubr.msk.f32.gmra.mrb[90].mxu1 %vm257_vm1, %v5445_v44 }
 0x2fe   : > { %3647 = vmatprep.mubr.msk.f32.mxu1 %vm257_vm1, %v5441_v27 }
 0x301   : > { %3648 = vmatmul.mubr.msk.f32.gmra.mrb[92].mxu1 %vm257_vm1, %v5441_v27 }
 0x302   : > { %3649 = vmatprep.mubr.msk.f32.mxu1 %vm257_vm1, %v5453_v53 }
 0x305   : > { %3650 = vmatmul.mubr.msk.f32.gmra.mrb[94].mxu1 %vm257_vm1, %v5453_v53 }
 0x306   : > { %3651 = vmatprep.mubr.msk.f32.mxu1 %vm257_vm1, %v5449_v39 }
 0x309   : > { %3652 = vmatmul.mubr.msk.f32.gmra.mrb[96].mxu1 %vm257_vm1, %v5449_v39 }
 0x360   : > { %v1769_v3 = vpop.f32.mrb[34].mxu1 }
 0x361   : > { %v5667_v20 = vmul.f32 0.125, %v1769_v3  ;;  %v1771_v55 = vpop.f32.mrb[35].mxu1 }
 0x362   : > { %v5669_v25 = vmul.f32 0.125, %v1771_v55 }
 0x364   : > { %v1775_v36 = vpop.f32.mrb[36].mxu1  ;;  %v2024_v41 = vmax.f32 %v5667_v20, %v5669_v25 }
 0x365   : > { %v5673_v10 = vmul.f32 0.125, %v1775_v36  ;;  %v1777_v19 = vpop.f32.mrb[37].mxu1 }
 0x366   : > { %v5675_v21 = vmul.f32 0.125, %v1777_v19  ;;  %2025 = vmax.xlane.f32.xlu0 %v2024_v41 }
 0x368   : > { %v1781_v47 = vpop.f32.mrb[38].mxu1  ;;  %v2027_v57 = vmax.f32 %v5673_v10, %v5675_v21 }
 0x369   : > { %v5679_v13 = vmul.f32 0.125, %v1781_v47  ;;  %v1783_v23 = vpop.f32.mrb[39].mxu1 }
 0x36a   : > { %v5681_v7 = vmul.f32 0.125, %v1783_v23  ;;  %2028 = vmax.xlane.f32.xlu0 %v2027_v57 }
 0x36c   : > { %v1787_v31 = vpop.f32.mrb[40].mxu1  ;;  %v2030_v26 = vmax.f32 %v5679_v13, %v5681_v7 }
 0x36d   : > { %v5685_v9 = vmul.f32 0.125, %v1787_v31  ;;  %v1789_v1 = vpop.f32.mrb[41].mxu1 }
 0x36e   : > { %v5687_v5 = vmul.f32 0.125, %v1789_v1  ;;  %2031 = vmax.xlane.f32.xlu1 %v2030_v26 }
 0x370   : > { %v1793_v48 = vpop.f32.mrb[42].mxu1  ;;  %v2033_v43 = vmax.f32 %v5685_v9, %v5687_v5 }
 0x371   : > { %v5691_v40 = vmul.f32 0.125, %v1793_v48  ;;  %v1795_v62 = vpop.f32.mrb[43].mxu1 }
 0x372   : > { %v5693_v27 = vmul.f32 0.125, %v1795_v62  ;;  %2034 = vmax.xlane.f32.xlu1 %v2033_v43 }
 0x374   : > { %v1799_v44 = vpop.f32.mrb[44].mxu1  ;;  %v2036_v39 = vmax.f32 %v5691_v40, %v5693_v27 }
 0x375   : > { %v5697_v53 = vmul.f32 0.125, %v1799_v44  ;;  %v1801_v61 = vpop.f32.mrb[45].mxu1 }
 0x376   : > { %v5699_v16 = vmul.f32 0.125, %v1801_v61  ;;  %2037 = vmax.xlane.f32.xlu0 %v2036_v39 }
 0x378   : > { %v1805_v34 = vpop.f32.mrb[46].mxu1  ;;  %v2039_v11 = vmax.f32 %v5697_v53, %v5699_v16 }
 0x379   : > { %v5703_v54 = vmul.f32 0.125, %v1805_v34  ;;  %v1807_v6 = vpop.f32.mrb[47].mxu1 }
 0x37a   : > { %v5705_v17 = vmul.f32 0.125, %v1807_v6  ;;  %2040 = vmax.xlane.f32.xlu1 %v2039_v11 }
 0x37c   : > { %v1811_v59 = vpop.f32.mrb[48].mxu1  ;;  %v2042_v49 = vmax.f32 %v5703_v54, %v5705_v17 }
 0x37d   : > { %v5709_v46 = vmul.f32 0.125, %v1811_v59  ;;  %v1813_v29 = vpop.f32.mrb[49].mxu1 }
 0x37e   : > { %v5711_v35 = vmul.f32 0.125, %v1813_v29  ;;  %2043 = vmax.xlane.f32.xlu0 %v2042_v49 }
 0x380   : > { %v1817_v4 = vpop.f32.mrb[50].mxu1  ;;  %v2045_v2 = vmax.f32 %v5709_v46, %v5711_v35 }
 0x381   : > { %v5715_v15 = vmul.f32 0.125, %v1817_v4  ;;  %v1819_v18 = vpop.f32.mrb[51].mxu1 }
 0x382   : > { %v5717_v28 = vmul.f32 0.125, %v1819_v18  ;;  %2046 = vmax.xlane.f32.xlu1 %v2045_v2 }
 0x384   : > { %v1823_v22 = vpop.f32.mrb[52].mxu1  ;;  %v2048_v12 = vmax.f32 %v5715_v15, %v5717_v28 }
 0x385   : > { %v5721_v24 = vmul.f32 0.125, %v1823_v22  ;;  %v1825_v33 = vpop.f32.mrb[53].mxu1 }
 0x386   : > { %v5723_v50 = vmul.f32 0.125, %v1825_v33  ;;  %2049 = vmax.xlane.f32.xlu0 %v2048_v12 }
 0x388   : > { %v1829_v0 = vpop.f32.mrb[54].mxu1  ;;  %v2051_v51 = vmax.f32 %v5721_v24, %v5723_v50 }
 0x389   : > { %v5727_v32 = vmul.f32 0.125, %v1829_v0  ;;  %v1831_v14 = vpop.f32.mrb[55].mxu1 }
 0x38a   : > { %v5729_v45 = vmul.f32 0.125, %v1831_v14  ;;  %2052 = vmax.xlane.f32.xlu1 %v2051_v51 }
 0x38c   : > { %v1835_v56 = vpop.f32.mrb[56].mxu1  ;;  %v2054_v8 = vmax.f32 %v5727_v32, %v5729_v45 }
 0x38d   : > { %v5733_v38 = vmul.f32 0.125, %v1835_v56  ;;  %v1837_v30 = vpop.f32.mrb[57].mxu1 }
 0x38e   : > { %v5735_v37 = vmul.f32 0.125, %v1837_v30  ;;  %2055 = vmax.xlane.f32.xlu0 %v2054_v8 }
 0x390   : > { %v1841_v52 = vpop.f32.mrb[58].mxu1  ;;  %v2057_v42 = vmax.f32 %v5733_v38, %v5735_v37 }
 0x391   : > { %v5739_v60 = vmul.f32 0.125, %v1841_v52  ;;  %v1843_v63 = vpop.f32.mrb[59].mxu1 }
 0x392   : > { %v5741_v58 = vmul.f32 0.125, %v1843_v63  ;;  %2058 = vmax.xlane.f32.xlu1 %v2057_v42 }
 0x394   : > { %v1847_v3 = vpop.f32.mrb[60].mxu1  ;;  %v2060_v55 = vmax.f32 %v5739_v60, %v5741_v58 }
 0x395   : > { %v5745_v36 = vmul.f32 0.125, %v1847_v3  ;;  %v1849_v41 = vpop.f32.mrb[61].mxu1 }
 0x396   : > { %v5747_v19 = vmul.f32 0.125, %v1849_v41  ;;  %2061 = vmax.xlane.f32.xlu0 %v2060_v55 }
 0x398   : > { %v1853_v47 = vpop.f32.mrb[62].mxu1  ;;  %v2063_v57 = vmax.f32 %v5745_v36, %v5747_v19 }
 0x399   : > { %v5751_v23 = vmul.f32 0.125, %v1853_v47  ;;  %v1855_v31 = vpop.f32.mrb[63].mxu1 }
 0x39a   : > { %v5753_v26 = vmul.f32 0.125, %v1855_v31  ;;  %2064 = vmax.xlane.f32.xlu1 %v2063_v57 }
 0x39c   : > { %v1859_v1 = vpop.f32.mrb[64].mxu1  ;;  %v2066_v48 = vmax.f32 %v5751_v23, %v5753_v26 }
 0x39d   : > { %v5757_v43 = vmul.f32 0.125, %v1859_v1  ;;  %v1861_v62 = vpop.f32.mrb[65].mxu1 }
 0x39e   : > { %v5759_v44 = vmul.f32 0.125, %v1861_v62  ;;  %2067 = vmax.xlane.f32.xlu0 %v2066_v48 }
 0x3a0   : > { %v1865_v39 = vpop.f32.mrb[66].mxu1  ;;  %v2069_v61 = vmax.f32 %v5757_v43, %v5759_v44 }
 0x3a1   : > { %v5763_v34 = vmul.f32 0.125, %v1865_v39  ;;  %v1867_v11 = vpop.f32.mrb[67].mxu1 }
 0x3a2   : > { %v5765_v6 = vmul.f32 0.125, %v1867_v11  ;;  %2070 = vmax.xlane.f32.xlu1 %v2069_v61 }
 0x3a4   : > { %v1871_v59 = vpop.f32.mrb[68].mxu1  ;;  %v2072_v49 = vmax.f32 %v5763_v34, %v5765_v6 }
 0x3a5   : > { %v5769_v29 = vmul.f32 0.125, %v1871_v59  ;;  %v1873_v4 = vpop.f32.mrb[69].mxu1 }
 0x3a6   : > { %v5771_v2 = vmul.f32 0.125, %v1873_v4  ;;  %2073 = vmax.xlane.f32.xlu0 %v2072_v49 }
 0x3a8   : > { %v1877_v18 = vpop.f32.mrb[70].mxu1  ;;  %v2075_v22 = vmax.f32 %v5769_v29, %v5771_v2 }
 0x3a9   : > { %v5775_v12 = vmul.f32 0.125, %v1877_v18  ;;  %v1879_v33 = vpop.f32.mrb[71].mxu1 }
 0x3aa   : > { %v5777_v0 = vmul.f32 0.125, %v1879_v33  ;;  %2076 = vmax.xlane.f32.xlu1 %v2075_v22 }
 0x3ac   : > { %v1883_v51 = vpop.f32.mrb[72].mxu1  ;;  %v2078_v14 = vmax.f32 %v5775_v12, %v5777_v0 }
 0x3ad   : > { %v5781_v56 = vmul.f32 0.125, %v1883_v51  ;;  %v1885_v8 = vpop.f32.mrb[73].mxu1 }
 0x3ae   : > { %v5783_v30 = vmul.f32 0.125, %v1885_v8  ;;  %2079 = vmax.xlane.f32.xlu0 %v2078_v14 }
 0x3b0   : > { %v1889_v52 = vpop.f32.mrb[74].mxu1  ;;  %v2081_v42 = vmax.f32 %v5781_v56, %v5783_v30 }
 0x3b1   : > { %v5787_v63 = vmul.f32 0.125, %v1889_v52  ;;  %v1891_v3 = vpop.f32.mrb[75].mxu1 }
 0x3b2   : > { %v5789_v55 = vmul.f32 0.125, %v1891_v3  ;;  %2082 = vmax.xlane.f32.xlu1 %v2081_v42 }
 0x3b4   : > { %v1895_v41 = vpop.f32.mrb[76].mxu1  ;;  %v2084_v47 = vmax.f32 %v5787_v63, %v5789_v55 }
 0x3b5   : > { %v5793_v57 = vmul.f32 0.125, %v1895_v41  ;;  %v1897_v31 = vpop.f32.mrb[77].mxu1 }
 0x3b6   : > { %v5795_v1 = vmul.f32 0.125, %v1897_v31  ;;  %2085 = vmax.xlane.f32.xlu0 %v2084_v47 }
 0x3b8   : > { %v1901_v48 = vpop.f32.mrb[78].mxu1  ;;  %v2087_v62 = vmax.f32 %v5793_v57, %v5795_v1 }
 0x3b9   : > { %v5799_v39 = vmul.f32 0.125, %v1901_v48  ;;  %v1903_v61 = vpop.f32.mrb[79].mxu1 }
 0x3ba   : > { %v5801_v11 = vmul.f32 0.125, %v1903_v61  ;;  %2088 = vmax.xlane.f32.xlu1 %v2087_v62 }
 0x3bc   : > { %v1907_v59 = vpop.f32.mrb[80].mxu1  ;;  %v2090_v49 = vmax.f32 %v5799_v39, %v5801_v11 }
 0x3bd   : > { %v5805_v4 = vmul.f32 0.125, %v1907_v59  ;;  %v1909_v18 = vpop.f32.mrb[81].mxu1 }
 0x3be   : > { %v5807_v22 = vmul.f32 0.125, %v1909_v18  ;;  %2091 = vmax.xlane.f32.xlu0 %v2090_v49 }
 0x3c0   : > { %v1913_v33 = vpop.f32.mrb[82].mxu1  ;;  %v2093_v51 = vmax.f32 %v5805_v4, %v5807_v22 }
 0x3c1   : > { %v5811_v14 = vmul.f32 0.125, %v1913_v33  ;;  %v1915_v8 = vpop.f32.mrb[83].mxu1 }
 0x3c2   : > { %v5813_v52 = vmul.f32 0.125, %v1915_v8  ;;  %2094 = vmax.xlane.f32.xlu0 %v2093_v51 }
 0x3c4   : > { %v1919_v42 = vpop.f32.mrb[84].mxu1  ;;  %v2096_v3 = vmax.f32 %v5811_v14, %v5813_v52 }
 0x3c5   : > { %v5817_v41 = vmul.f32 0.125, %v1919_v42  ;;  %v1921_v47 = vpop.f32.mrb[85].mxu1 }
 0x3c6   : > { %v5819_v31 = vmul.f32 0.125, %v1921_v47  ;;  %2097 = vmax.xlane.f32.xlu0 %v2096_v3 }
 0x3c7   : > { %6411 = vst [vmem:[#allocation2_spill] sm:$0xff] %v5817_v41 }
 0x3c8   : > { %6412 = vst [vmem:[#allocation3_spill] sm:$0xff] %v5819_v31  ;;  %v1925_v48 = vpop.f32.mrb[86].mxu1  ;;  %v2099_v62 = vmax.f32 %v5817_v41, %v5819_v31 }
 0x3c9   : > { %v5823_v61 = vmul.f32 0.125, %v1925_v48  ;;  %v1927_v59 = vpop.f32.mrb[87].mxu1 }
 0x3ca   : > { %v5825_v49 = vmul.f32 0.125, %v1927_v59  ;;  %2100 = vmax.xlane.f32.xlu0 %v2099_v62 }
 0x3cb   : > { %6413 = vst [vmem:[#allocation4_spill] sm:$0xff] %v5823_v61 }
 0x3cc   : > { %6414 = vst [vmem:[#allocation5_spill] sm:$0xff] %v5825_v49  ;;  %v1931_v18 = vpop.f32.mrb[88].mxu1  ;;  %v2102_v33 = vmax.f32 %v5823_v61, %v5825_v49 }
 0x3cd   : > { %v5829_v51 = vmul.f32 0.125, %v1931_v18  ;;  %v1933_v8 = vpop.f32.mrb[89].mxu1 }
 0x3ce   : > { %v5831_v42 = vmul.f32 0.125, %v1933_v8  ;;  %2103 = vmax.xlane.f32.xlu0 %v2102_v33 }
 0x3cf   : > { %6415 = vst [vmem:[#allocation6_spill] sm:$0xff] %v5829_v51 }
 0x3d0   : > { %6416 = vst [vmem:[#allocation7_spill] sm:$0xff] %v5831_v42  ;;  %v1937_v3 = vpop.f32.mrb[90].mxu1  ;;  %v2105_v47 = vmax.f32 %v5829_v51, %v5831_v42 }
 0x3d1   : > { %v5835_v48 = vmul.f32 0.125, %v1937_v3  ;;  %v1939_v31 = vpop.f32.mrb[91].mxu1 }
 0x3d2   : > { %v5837_v59 = vmul.f32 0.125, %v1939_v31  ;;  %2106 = vmax.xlane.f32.xlu0 %v2105_v47 }
 0x3d3   : > { %6417 = vst [vmem:[#allocation8_spill] sm:$0xff] %v5835_v48 }
 0x3d4   : > { %6418 = vst [vmem:[#allocation9_spill] sm:$0xff] %v5837_v59  ;;  %v1943_v62 = vpop.f32.mrb[92].mxu1  ;;  %v2108_v49 = vmax.f32 %v5835_v48, %v5837_v59 }
 0x3d5   : > { %v5841_v18 = vmul.f32 0.125, %v1943_v62  ;;  %v1945_v61 = vpop.f32.mrb[93].mxu1 }
 0x3d6   : > { %v5843_v8 = vmul.f32 0.125, %v1945_v61  ;;  %2109 = vmax.xlane.f32.xlu0 %v2108_v49 }
 0x3d7   : > { %6419 = vst [vmem:[#allocation10_spill] sm:$0xff] %v5841_v18 }
 0x3d8   : > { %6420 = vst [vmem:[#allocation11_spill] sm:$0xff] %v5843_v8  ;;  %v1949_v33 = vpop.f32.mrb[94].mxu1  ;;  %v2111_v42 = vmax.f32 %v5841_v18, %v5843_v8 }
 0x3d9   : > { %v5847_v3 = vmul.f32 0.125, %v1949_v33  ;;  %v1951_v51 = vpop.f32.mrb[95].mxu1 }
 0x3da   : > { %v5849_v31 = vmul.f32 0.125, %v1951_v51  ;;  %2112 = vmax.xlane.f32.xlu0 %v2111_v42 }
 0x3db   : > { %6421 = vst [vmem:[#allocation12_spill] sm:$0xff] %v5847_v3 }
 0x3dc   : > { %6422 = vst [vmem:[#allocation13_spill] sm:$0xff] %v5849_v31  ;;  %v1955_v47 = vpop.f32.mrb[96].mxu1  ;;  %v2114_v59 = vmax.f32 %v5847_v3, %v5849_v31 }
 0x3dd   : > { %v5853_v62 = vmul.f32 0.125, %v1955_v47  ;;  %v1957_v48 = vpop.f32.mrb[97].mxu1 }
 0x3de   : > { %v5855_v61 = vmul.f32 0.125, %v1957_v48  ;;  %2115 = vmax.xlane.f32.xlu0 %v2114_v59 }
 0x3e0   : > { %6423 = vst [vmem:[#allocation14_spill] sm:$0xff] %v5855_v61  ;;  %v2117_v49 = vmax.f32 %v5853_v62, %v5855_v61 }
 0x3e2   : > { %2118 = vmax.xlane.f32.xlu0 %v2117_v49 }
 0x3f3   : > { %v2026_v33 = vpop.xlane.xlu0 %2025 }
 0x3f4   : > { %v2120_v8 = vsub.f32 %v5667_v20, %v2026_v33  ;;  %v2121_v51 = vsub.f32 %v5669_v25, %v2026_v33 }
 0x3f6   : > { %v2184_v42 = vmul.f32 1.442695, %v2120_v8  ;;  %v2186_v18 = vmul.f32 1.442695, %v2121_v51 }
 0x3f7   : > { %v2029_v41 = vpop.xlane.xlu0 %2028 }
 0x3f8   : > { %4184 = vpow2.f32 %v2184_v42  ;;  %v2122_v47 = vsub.f32 %v5673_v10, %v2029_v41  ;;  %v2123_v31 = vsub.f32 %v5675_v21, %v2029_v41 }
 0x3f9   : > { %4186 = vpow2.f32 %v2186_v18 }
 0x3fa   : > { %v2188_v48 = vmul.f32 1.442695, %v2122_v47  ;;  %v2190_v59 = vmul.f32 1.442695, %v2123_v31 }
 0x3fb   : > { %v2032_v3 = vpop.xlane.xlu1 %2031 }
 0x3fc   : > { %4188 = vpow2.f32 %v2188_v48  ;;  %v2124_v49 = vsub.f32 %v5679_v13, %v2032_v3  ;;  %v2125_v61 = vsub.f32 %v5681_v7, %v2032_v3 }
 0x3fd   : > { %4190 = vpow2.f32 %v2190_v59 }
 0x3fe   : > { %v2192_v20 = vmul.f32 1.442695, %v2124_v49  ;;  %v2194_v25 = vmul.f32 1.442695, %v2125_v61 }
 0x3ff   : > { %v2035_v8 = vpop.xlane.xlu1 %2034 }
 0x400   : > { %4192 = vpow2.f32 %v2192_v20  ;;  %v2126_v33 = vsub.f32 %v5685_v9, %v2035_v8  ;;  %v2127_v10 = vsub.f32 %v5687_v5, %v2035_v8 }
 0x401   : > { %4194 = vpow2.f32 %v2194_v25 }
 0x402   : > { %v5867_v21 = vpop.eup %4184  ;;  %v2196_v41 = vmul.f32 1.442695, %v2126_v33  ;;  %v2198_v18 = vmul.f32 1.442695, %v2127_v10 }
 0x403   : > { %v5869_v31 = vpop.eup %4186  ;;  %v2038_v51 = vpop.xlane.xlu0 %2037 }
 0x404   : > { %4196 = vpow2.f32 %v2196_v41  ;;  %v2128_v13 = vsub.f32 %v5691_v40, %v2038_v51  ;;  %v2129_v7 = vsub.f32 %v5693_v27, %v2038_v51  ;;  %v2312_v3 = vadd.f32 %v5869_v31, %v5867_v21 }
 0x405   : > { %4198 = vpow2.f32 %v2198_v18 }
 0x406   : > { %v5875_v9 = vpop.eup %4188  ;;  %v2200_v5 = vmul.f32 1.442695, %v2128_v13  ;;  %v2202_v61 = vmul.f32 1.442695, %v2129_v7  ;;  %2313 = vadd.xlane.f32.xlu1 %v2312_v3 }
 0x407   : > { %v5877_v42 = vpop.eup %4190  ;;  %v2041_v47 = vpop.xlane.xlu1 %2040 }
 0x408   : > { %4200 = vpow2.f32 %v2200_v5  ;;  %v2130_v48 = vsub.f32 %v5697_v53, %v2041_v47  ;;  %v2131_v59 = vsub.f32 %v5699_v16, %v2041_v47  ;;  %v2315_v40 = vadd.f32 %v5877_v42, %v5875_v9 }
 0x409   : > { %4202 = vpow2.f32 %v2202_v61 }
 0x40a   : > { %v5883_v27 = vpop.eup %4192  ;;  %v2204_v49 = vmul.f32 1.442695, %v2130_v48  ;;  %v2206_v20 = vmul.f32 1.442695, %v2131_v59  ;;  %2316 = vadd.xlane.f32.xlu1 %v2315_v40 }
 0x40b   : > { %v5885_v25 = vpop.eup %4194  ;;  %v2044_v8 = vpop.xlane.xlu0 %2043 }
 0x40c   : > { %4204 = vpow2.f32 %v2204_v49  ;;  %v2132_v33 = vsub.f32 %v5703_v54, %v2044_v8  ;;  %v2133_v10 = vsub.f32 %v5705_v17, %v2044_v8  ;;  %v2318_v53 = vadd.f32 %v5885_v25, %v5883_v27 }
 0x40d   : > { %4206 = vpow2.f32 %v2206_v20 }
 0x40e   : > { %v5891_v16 = vpop.eup %4196  ;;  %v2208_v41 = vmul.f32 1.442695, %v2132_v33  ;;  %v2210_v18 = vmul.f32 1.442695, %v2133_v10  ;;  %2319 = vadd.xlane.f32.xlu1 %v2318_v53 }
 0x40f   : > { %v5893_v51 = vpop.eup %4198  ;;  %v2047_v13 = vpop.xlane.xlu1 %2046 }
 0x410   : > { %4208 = vpow2.f32 %v2208_v41  ;;  %v2134_v7 = vsub.f32 %v5709_v46, %v2047_v13  ;;  %v2135_v3 = vsub.f32 %v5711_v35, %v2047_v13  ;;  %v2321_v54 = vadd.f32 %v5893_v51, %v5891_v16 }
 0x411   : > { %4210 = vpow2.f32 %v2210_v18 }
 0x412   : > { %v5899_v17 = vpop.eup %4200  ;;  %v2212_v5 = vmul.f32 1.442695, %v2134_v7  ;;  %v2214_v61 = vmul.f32 1.442695, %v2135_v3  ;;  %2322 = vadd.xlane.f32.xlu1 %v2321_v54 }
 0x413   : > { %v5901_v47 = vpop.eup %4202  ;;  %v2050_v48 = vpop.xlane.xlu0 %2049 }
 0x414   : > { %4212 = vpow2.f32 %v2212_v5  ;;  %v2136_v59 = vsub.f32 %v5715_v15, %v2050_v48  ;;  %v2137_v40 = vsub.f32 %v5717_v28, %v2050_v48  ;;  %v2324_v46 = vadd.f32 %v5901_v47, %v5899_v17 }
 0x415   : > { %4214 = vpow2.f32 %v2214_v61 }
 0x416   : > { %v5907_v35 = vpop.eup %4204  ;;  %v2216_v49 = vmul.f32 1.442695, %v2136_v59  ;;  %v2218_v20 = vmul.f32 1.442695, %v2137_v40  ;;  %2325 = vadd.xlane.f32.xlu1 %v2324_v46 }
 0x417   : > { %v5909_v8 = vpop.eup %4206  ;;  %v2053_v33 = vpop.xlane.xlu1 %2052 }
 0x418   : > { %4216 = vpow2.f32 %v2216_v49  ;;  %v2138_v10 = vsub.f32 %v5721_v24, %v2053_v33  ;;  %v2139_v53 = vsub.f32 %v5723_v50, %v2053_v33  ;;  %v2327_v15 = vadd.f32 %v5909_v8, %v5907_v35 }
 0x419   : > { %4218 = vpow2.f32 %v2218_v20 }
 0x41a   : > { %v5915_v28 = vpop.eup %4208  ;;  %v2220_v41 = vmul.f32 1.442695, %v2138_v10  ;;  %v2222_v18 = vmul.f32 1.442695, %v2139_v53  ;;  %2328 = vadd.xlane.f32.xlu1 %v2327_v15 }
 0x41b   : > { %v5917_v13 = vpop.eup %4210  ;;  %v2056_v7 = vpop.xlane.xlu0 %2055 }
 0x41c   : > { %4220 = vpow2.f32 %v2220_v41  ;;  %v2140_v3 = vsub.f32 %v5727_v32, %v2056_v7  ;;  %v2141_v54 = vsub.f32 %v5729_v45, %v2056_v7  ;;  %v2330_v24 = vadd.f32 %v5917_v13, %v5915_v28 }
 0x41d   : > { %4222 = vpow2.f32 %v2222_v18 }
 0x41e   : > { %v5923_v50 = vpop.eup %4212  ;;  %v2224_v5 = vmul.f32 1.442695, %v2140_v3  ;;  %v2226_v61 = vmul.f32 1.442695, %v2141_v54  ;;  %2331 = vadd.xlane.f32.xlu1 %v2330_v24 }
 0x41f   : > { %v5925_v48 = vpop.eup %4214  ;;  %v2059_v59 = vpop.xlane.xlu1 %2058 }
 0x420   : > { %4224 = vpow2.f32 %v2224_v5  ;;  %v2142_v40 = vsub.f32 %v5733_v38, %v2059_v59  ;;  %v2143_v46 = vsub.f32 %v5735_v37, %v2059_v59  ;;  %v2333_v32 = vadd.f32 %v5925_v48, %v5923_v50 }
 0x421   : > { %4226 = vpow2.f32 %v2226_v61 }
 0x422   : > { %v5931_v45 = vpop.eup %4216  ;;  %v2228_v49 = vmul.f32 1.442695, %v2142_v40  ;;  %v2230_v20 = vmul.f32 1.442695, %v2143_v46  ;;  %2334 = vadd.xlane.f32.xlu1 %v2333_v32 }
 0x423   : > { %v5933_v33 = vpop.eup %4218  ;;  %v2062_v10 = vpop.xlane.xlu0 %2061 }
 0x424   : > { %4228 = vpow2.f32 %v2228_v49  ;;  %v2144_v53 = vsub.f32 %v5739_v60, %v2062_v10  ;;  %v2145_v15 = vsub.f32 %v5741_v58, %v2062_v10  ;;  %v2336_v38 = vadd.f32 %v5933_v33, %v5931_v45 }
 0x425   : > { %4230 = vpow2.f32 %v2230_v20 }
 0x426   : > { %v5939_v37 = vpop.eup %4220  ;;  %v2232_v41 = vmul.f32 1.442695, %v2144_v53  ;;  %v2234_v18 = vmul.f32 1.442695, %v2145_v15  ;;  %2337 = vadd.xlane.f32.xlu1 %v2336_v38 }
 0x427   : > { %v5941_v7 = vpop.eup %4222  ;;  %v2065_v3 = vpop.xlane.xlu1 %2064 }
 0x428   : > { %4232 = vpow2.f32 %v2232_v41  ;;  %v2146_v54 = vsub.f32 %v5745_v36, %v2065_v3  ;;  %v2147_v24 = vsub.f32 %v5747_v19, %v2065_v3  ;;  %v2339_v60 = vadd.f32 %v5941_v7, %v5939_v37 }
 0x429   : > { %4234 = vpow2.f32 %v2234_v18 }
 0x42a   : > { %v5947_v58 = vpop.eup %4224  ;;  %v2236_v5 = vmul.f32 1.442695, %v2146_v54  ;;  %v2238_v61 = vmul.f32 1.442695, %v2147_v24  ;;  %2340 = vadd.xlane.f32.xlu1 %v2339_v60 }
 0x42b   : > { %v5949_v59 = vpop.eup %4226  ;;  %v2068_v40 = vpop.xlane.xlu0 %2067 }
 0x42c   : > { %4236 = vpow2.f32 %v2236_v5  ;;  %v2148_v46 = vsub.f32 %v5751_v23, %v2068_v40  ;;  %v2149_v32 = vsub.f32 %v5753_v26, %v2068_v40  ;;  %v2342_v36 = vadd.f32 %v5949_v59, %v5947_v58 }
 0x42d   : > { %4238 = vpow2.f32 %v2238_v61 }
 0x42e   : > { %v5955_v19 = vpop.eup %4228  ;;  %v2240_v49 = vmul.f32 1.442695, %v2148_v46  ;;  %v2242_v20 = vmul.f32 1.442695, %v2149_v32  ;;  %2343 = vadd.xlane.f32.xlu0 %v2342_v36 }
 0x42f   : > { %v5957_v10 = vpop.eup %4230  ;;  %v2071_v53 = vpop.xlane.xlu1 %2070 }
 0x430   : > { %4240 = vpow2.f32 %v2240_v49  ;;  %v2150_v15 = vsub.f32 %v5757_v43, %v2071_v53  ;;  %v2151_v38 = vsub.f32 %v5759_v44, %v2071_v53  ;;  %v2345_v23 = vadd.f32 %v5957_v10, %v5955_v19 }
 0x431   : > { %4242 = vpow2.f32 %v2242_v20 }
 0x432   : > { %v5963_v26 = vpop.eup %4232  ;;  %v2244_v41 = vmul.f32 1.442695, %v2150_v15  ;;  %v2246_v18 = vmul.f32 1.442695, %v2151_v38  ;;  %2346 = vadd.xlane.f32.xlu1 %v2345_v23 }
 0x433   : > { %v5965_v3 = vpop.eup %4234  ;;  %v2074_v54 = vpop.xlane.xlu0 %2073 }
 0x434   : > { %4244 = vpow2.f32 %v2244_v41  ;;  %v2152_v24 = vsub.f32 %v5763_v34, %v2074_v54  ;;  %v2153_v60 = vsub.f32 %v5765_v6, %v2074_v54  ;;  %v2348_v43 = vadd.f32 %v5965_v3, %v5963_v26 }
 0x435   : > { %4246 = vpow2.f32 %v2246_v18 }
 0x436   : > { %v5971_v44 = vpop.eup %4236  ;;  %v2248_v5 = vmul.f32 1.442695, %v2152_v24  ;;  %v2250_v61 = vmul.f32 1.442695, %v2153_v60  ;;  %2349 = vadd.xlane.f32.xlu0 %v2348_v43 }
 0x437   : > { %v5973_v40 = vpop.eup %4238  ;;  %v2077_v46 = vpop.xlane.xlu1 %2076 }
 0x438   : > { %4248 = vpow2.f32 %v2248_v5  ;;  %v2154_v32 = vsub.f32 %v5769_v29, %v2077_v46  ;;  %v2155_v36 = vsub.f32 %v5771_v2, %v2077_v46  ;;  %v2351_v34 = vadd.f32 %v5973_v40, %v5971_v44 }
 0x439   : > { %4250 = vpow2.f32 %v2250_v61 }
 0x43a   : > { %v5979_v6 = vpop.eup %4240  ;;  %v2252_v49 = vmul.f32 1.442695, %v2154_v32  ;;  %v2254_v20 = vmul.f32 1.442695, %v2155_v36  ;;  %2352 = vadd.xlane.f32.xlu1 %v2351_v34 }
 0x43b   : > { %v5981_v53 = vpop.eup %4242  ;;  %v2080_v15 = vpop.xlane.xlu0 %2079 }
 0x43c   : > { %4252 = vpow2.f32 %v2252_v49  ;;  %v2156_v38 = vsub.f32 %v5775_v12, %v2080_v15  ;;  %v2157_v23 = vsub.f32 %v5777_v0, %v2080_v15  ;;  %v2354_v29 = vadd.f32 %v5981_v53, %v5979_v6 }
 0x43d   : > { %4254 = vpow2.f32 %v2254_v20 }
 0x43e   : > { %v5987_v2 = vpop.eup %4244  ;;  %v2256_v41 = vmul.f32 1.442695, %v2156_v38  ;;  %v2258_v18 = vmul.f32 1.442695, %v2157_v23  ;;  %2355 = vadd.xlane.f32.xlu0 %v2354_v29 }
 0x43f   : > { %v5989_v54 = vpop.eup %4246  ;;  %v2083_v24 = vpop.xlane.xlu1 %2082 }
 0x440   : > { %4256 = vpow2.f32 %v2256_v41  ;;  %v2158_v60 = vsub.f32 %v5781_v56, %v2083_v24  ;;  %v2159_v43 = vsub.f32 %v5783_v30, %v2083_v24  ;;  %v2357_v12 = vadd.f32 %v5989_v54, %v5987_v2 }
 0x441   : > { %4258 = vpow2.f32 %v2258_v18 }
 0x442   : > { %v5995_v0 = vpop.eup %4248  ;;  %v2260_v5 = vmul.f32 1.442695, %v2158_v60  ;;  %v2262_v61 = vmul.f32 1.442695, %v2159_v43  ;;  %2358 = vadd.xlane.f32.xlu1 %v2357_v12 }
 0x443   : > { %v5997_v46 = vpop.eup %4250  ;;  %v2086_v32 = vpop.xlane.xlu0 %2085 }
 0x444   : > { %4260 = vpow2.f32 %v2260_v5  ;;  %v2160_v36 = vsub.f32 %v5787_v63, %v2086_v32  ;;  %v2161_v34 = vsub.f32 %v5789_v55, %v2086_v32  ;;  %v2360_v56 = vadd.f32 %v5997_v46, %v5995_v0 }
 0x445   : > { %4262 = vpow2.f32 %v2262_v61 }
 0x446   : > { %v6003_v30 = vpop.eup %4252  ;;  %v2264_v49 = vmul.f32 1.442695, %v2160_v36  ;;  %v2266_v20 = vmul.f32 1.442695, %v2161_v34  ;;  %2361 = vadd.xlane.f32.xlu0 %v2360_v56 }
 0x447   : > { %v6005_v15 = vpop.eup %4254  ;;  %v2089_v38 = vpop.xlane.xlu1 %2088 }
 0x448   : > { %4264 = vpow2.f32 %v2264_v49  ;;  %v2162_v23 = vsub.f32 %v5793_v57, %v2089_v38  ;;  %v2163_v29 = vsub.f32 %v5795_v1, %v2089_v38  ;;  %v2363_v63 = vadd.f32 %v6005_v15, %v6003_v30 }
 0x449   : > { %4266 = vpow2.f32 %v2266_v20 }
 0x44a   : > { %v6011_v55 = vpop.eup %4256  ;;  %v2268_v41 = vmul.f32 1.442695, %v2162_v23  ;;  %v2270_v18 = vmul.f32 1.442695, %v2163_v29  ;;  %2364 = vadd.xlane.f32.xlu1 %v2363_v63 }
 0x44b   : > { %v6013_v24 = vpop.eup %4258  ;;  %v2092_v60 = vpop.xlane.xlu0 %2091 }
 0x44c   : > { %4268 = vpow2.f32 %v2268_v41  ;;  %v2164_v43 = vsub.f32 %v5799_v39, %v2092_v60  ;;  %v2165_v12 = vsub.f32 %v5801_v11, %v2092_v60  ;;  %v2366_v57 = vadd.f32 %v6013_v24, %v6011_v55 }
 0x44d   : > { %4270 = vpow2.f32 %v2270_v18 }
 0x44e   : > { %v6019_v1 = vpop.eup %4260  ;;  %v2272_v5 = vmul.f32 1.442695, %v2164_v43  ;;  %v2274_v61 = vmul.f32 1.442695, %v2165_v12  ;;  %2367 = vadd.xlane.f32.xlu0 %v2366_v57  ;;  %v6424_v12 = vld [vmem:[#allocation2_spill] sm:$0xff] }
 0x44f   : > { %v6021_v32 = vpop.eup %4262  ;;  %v2095_v36 = vpop.xlane.xlu0 %2094 }
 0x450   : > { %4272 = vpow2.f32 %v2272_v5  ;;  %v2166_v34 = vsub.f32 %v5805_v4, %v2095_v36  ;;  %v2167_v56 = vsub.f32 %v5807_v22, %v2095_v36  ;;  %v2369_v39 = vadd.f32 %v6021_v32, %v6019_v1  ;;  %v6425_v5 = vld [vmem:[#allocation3_spill] sm:$0xff] }
 0x451   : > { %4274 = vpow2.f32 %v2274_v61 }
 0x452   : > { %v6027_v11 = vpop.eup %4264  ;;  %v2276_v49 = vmul.f32 1.442695, %v2166_v34  ;;  %v2278_v20 = vmul.f32 1.442695, %v2167_v56  ;;  %2370 = vadd.xlane.f32.xlu1 %v2369_v39 }
 0x453   : > { %v6029_v38 = vpop.eup %4266  ;;  %v2098_v23 = vpop.xlane.xlu0 %2097 }
 0x454   : > { %4276 = vpow2.f32 %v2276_v49  ;;  %v2168_v29 = vsub.f32 %v5811_v14, %v2098_v23  ;;  %v2169_v63 = vsub.f32 %v5813_v52, %v2098_v23  ;;  %v2372_v4 = vadd.f32 %v6029_v38, %v6027_v11  ;;  %v6427_v49 = vld [vmem:[#allocation4_spill] sm:$0xff]  ;;  %v6428_v23 = vld [vmem:[#allocation5_spill] sm:$0xff] }
 0x455   : > { %4278 = vpow2.f32 %v2278_v20 }
 0x456   : > { %v6035_v22 = vpop.eup %4268  ;;  %v2280_v41 = vmul.f32 1.442695, %v2168_v29  ;;  %v2282_v18 = vmul.f32 1.442695, %v2169_v63  ;;  %2373 = vadd.xlane.f32.xlu0 %v2372_v4 }
 0x457   : > { %v6037_v60 = vpop.eup %4270  ;;  %v2101_v43 = vpop.xlane.xlu0 %2100 }
 0x458   : > { %4280 = vpow2.f32 %v2280_v41  ;;  %v2170_v57 = vsub.f32 %v6424_v12, %v2101_v43  ;;  %v2171_v61 = vsub.f32 %v6425_v5, %v2101_v43  ;;  %v2375_v14 = vadd.f32 %v6037_v60, %v6035_v22 }
 0x459   : > { %4282 = vpow2.f32 %v2282_v18 }
 0x45a   : > { %v6043_v52 = vpop.eup %4272  ;;  %v2284_v36 = vmul.f32 1.442695, %v2170_v57  ;;  %v2286_v34 = vmul.f32 1.442695, %v2171_v61  ;;  %2376 = vadd.xlane.f32.xlu1 %v2375_v14  ;;  %v6431_v57 = vld [vmem:[#allocation6_spill] sm:$0xff]  ;;  %v6432_v61 = vld [vmem:[#allocation7_spill] sm:$0xff] }
 0x45b   : > { %6426 = vst [vmem:[#allocation2_spill] sm:$0xff] %v6043_v52  ;;  %v6045_v56 = vpop.eup %4274  ;;  %v2104_v39 = vpop.xlane.xlu0 %2103 }
 0x45c   : > { %4284 = vpow2.f32 %v2284_v36  ;;  %v2172_v20 = vsub.f32 %v6427_v49, %v2104_v39  ;;  %v2173_v29 = vsub.f32 %v6428_v23, %v2104_v39  ;;  %v2378_v63 = vadd.f32 %v6045_v56, %v6043_v52 }
 0x45d   : > { %4286 = vpow2.f32 %v2286_v34 }
 0x45e   : > { %v6051_v4 = vpop.eup %4276  ;;  %v2288_v41 = vmul.f32 1.442695, %v2172_v20  ;;  %v2290_v18 = vmul.f32 1.442695, %v2173_v29  ;;  %2379 = vadd.xlane.f32.xlu0 %v2378_v63  ;;  %v6435_v29 = vld [vmem:[#allocation8_spill] sm:$0xff] }
 0x45f   : > { %6429 = vst [vmem:[#allocation3_spill] sm:$0xff] %v6051_v4  ;;  %v6053_v43 = vpop.eup %4278  ;;  %v2107_v12 = vpop.xlane.xlu0 %2106 }
 0x460   : > { %6430 = vst [vmem:[#allocation4_spill] sm:$0xff] %v6053_v43  ;;  %4288 = vpow2.f32 %v2288_v41  ;;  %v2174_v5 = vsub.f32 %v6431_v57, %v2107_v12  ;;  %v2175_v14 = vsub.f32 %v6432_v61, %v2107_v12  ;;  %v2381_v36 = vadd.f32 %v6053_v43, %v6051_v4  ;;  %v6436_v41 = vld [vmem:[#allocation9_spill] sm:$0xff] }
 0x461   : > { %4290 = vpow2.f32 %v2290_v18 }
 0x462   : > { %v6059_v39 = vpop.eup %4280  ;;  %v2292_v34 = vmul.f32 1.442695, %v2174_v5  ;;  %v2294_v49 = vmul.f32 1.442695, %v2175_v14  ;;  %2382 = vadd.xlane.f32.xlu1 %v2381_v36  ;;  %v6438_v36 = vld [vmem:[#allocation10_spill] sm:$0xff] }
 0x463   : > { %6433 = vst [vmem:[#allocation5_spill] sm:$0xff] %v6059_v39  ;;  %v6061_v20 = vpop.eup %4282  ;;  %v2110_v23 = vpop.xlane.xlu0 %2109 }
 0x464   : > { %6434 = vst [vmem:[#allocation6_spill] sm:$0xff] %v6061_v20  ;;  %4292 = vpow2.f32 %v2292_v34  ;;  %v2176_v63 = vsub.f32 %v6435_v29, %v2110_v23  ;;  %v2177_v52 = vsub.f32 %v6436_v41, %v2110_v23  ;;  %v2384_v12 = vadd.f32 %v6061_v20, %v6059_v39  ;;  %v6439_v34 = vld [vmem:[#allocation11_spill] sm:$0xff] }
 0x465   : > { %4294 = vpow2.f32 %v2294_v49 }
 0x466   : > { %v6067_v57 = vpop.eup %4284  ;;  %v2296_v18 = vmul.f32 1.442695, %v2176_v63  ;;  %v2298_v61 = vmul.f32 1.442695, %v2177_v52  ;;  %2385 = vadd.xlane.f32.xlu0 %v2384_v12  ;;  %v6440_v12 = vld [vmem:[#allocation12_spill] sm:$0xff] }
 0x467   : > { %6437 = vst [vmem:[#allocation7_spill] sm:$0xff] %v6067_v57  ;;  %v6069_v5 = vpop.eup %4286  ;;  %v2113_v14 = vpop.xlane.xlu0 %2112 }
 0x468   : > { %4296 = vpow2.f32 %v2296_v18  ;;  %v2178_v4 = vsub.f32 %v6438_v36, %v2113_v14  ;;  %v2179_v43 = vsub.f32 %v6439_v34, %v2113_v14  ;;  %v2387_v23 = vadd.f32 %v6069_v5, %v6067_v57  ;;  %v6441_v18 = vld [vmem:[#allocation13_spill] sm:$0xff] }
 0x469   : > { %4298 = vpow2.f32 %v2298_v61 }
 0x46a   : > { %v6075_v29 = vpop.eup %4288  ;;  %v2300_v49 = vmul.f32 1.442695, %v2178_v4  ;;  %v2302_v41 = vmul.f32 1.442695, %v2179_v43  ;;  %2388 = vadd.xlane.f32.xlu1 %v2387_v23 }
 0x46b   : > { %v6077_v63 = vpop.eup %4290  ;;  %v2116_v52 = vpop.xlane.xlu0 %2115 }
 0x46c   : > { %4300 = vpow2.f32 %v2300_v49  ;;  %v2180_v39 = vsub.f32 %v6440_v12, %v2116_v52  ;;  %v2181_v20 = vsub.f32 %v6441_v18, %v2116_v52  ;;  %v2390_v14 = vadd.f32 %v6077_v63, %v6075_v29  ;;  %v6442_v49 = vld [vmem:[#allocation14_spill] sm:$0xff] }
 0x46d   : > { %4302 = vpow2.f32 %v2302_v41 }
 0x46e   : > { %v6083_v36 = vpop.eup %4292  ;;  %v2304_v61 = vmul.f32 1.442695, %v2180_v39  ;;  %v2306_v34 = vmul.f32 1.442695, %v2181_v20  ;;  %2391 = vadd.xlane.f32.xlu0 %v2390_v14 }
 0x46f   : > { %v6085_v4 = vpop.eup %4294  ;;  %v2119_v43 = vpop.xlane.xlu0 %2118 }
 0x470   : > { %4304 = vpow2.f32 %v2304_v61  ;;  %v2182_v23 = vsub.f32 %v5853_v62, %v2119_v43  ;;  %v2183_v57 = vsub.f32 %v6442_v49, %v2119_v43  ;;  %v2393_v52 = vadd.f32 %v6085_v4, %v6083_v36 }
 0x471   : > { %4306 = vpow2.f32 %v2306_v34 }
 0x472   : > { %v6091_v12 = vpop.eup %4296  ;;  %v2308_v41 = vmul.f32 1.442695, %v2182_v23  ;;  %v2310_v18 = vmul.f32 1.442695, %v2183_v57  ;;  %2394 = vadd.xlane.f32.xlu1 %v2393_v52 }
 0x473   : > { %v6093_v39 = vpop.eup %4298 }
 0x474   : > { %4308 = vpow2.f32 %v2308_v41  ;;  %v2396_v20 = vadd.f32 %v6093_v39, %v6091_v12 }
 0x475   : > { %4310 = vpow2.f32 %v2310_v18 }
 0x476   : > { %v6097_v14 = vpop.eup %4300  ;;  %2397 = vadd.xlane.f32.xlu0 %v2396_v20 }
 0x477   : > { %6443 = vst [vmem:[#allocation8_spill] sm:$0xff] %v6097_v14  ;;  %v6099_v62 = vpop.eup %4302 }
 0x478   : > { %6444 = vst [vmem:[#allocation9_spill] sm:$0xff] %v6099_v62  ;;  %v2399_v61 = vadd.f32 %v6099_v62, %v6097_v14  ;;  %v3378_v14 = vld [vmem:[%s6381_s3 + $0xe0] sm:$0xff]  ;;  %v3379_v62 = vld [vmem:[%s6381_s3 + $0xe8] sm:$0xff] }
 0x47a   : > { %v6103_v34 = vpop.eup %4304  ;;  %2400 = vadd.xlane.f32.xlu1 %v2399_v61 }
 0x47b   : > { %6445 = vst [vmem:[#allocation10_spill] sm:$0xff] %v6103_v34  ;;  %v6105_v57 = vpop.eup %4306 }
 0x47c   : > { %6446 = vst [vmem:[#allocation11_spill] sm:$0xff] %v6105_v57  ;;  %v2402_v43 = vadd.f32 %v6105_v57, %v6103_v34  ;;  %v3374_v34 = vld [vmem:[%s6381_s3 + $0xc0] sm:$0xff] }
 0x47e   : > { %v6109_v23 = vpop.eup %4308  ;;  %2403 = vadd.xlane.f32.xlu0 %v2402_v43  ;;  %v3375_v43 = vld [vmem:[%s6381_s3 + $0xc8] sm:$0xff] }
 0x47f   : > { %6447 = vst [vmem:[#allocation12_spill] sm:$0xff] %v6109_v23  ;;  %v6111_v49 = vpop.eup %4310 }
 0x480   : > { %6448 = vst [vmem:[#allocation13_spill] sm:$0xff] %v6111_v49  ;;  %v2405_v52 = vadd.f32 %v6111_v49, %v6109_v23  ;;  %v3376_v23 = vld [vmem:[%s6381_s3 + $0xd0] sm:$0xff]  ;;  %v4155_v49 = vpack.c.bf16 %v3375_v43, %v3374_v34 }
 0x482   : > { %2406 = vadd.xlane.f32.xlu1 %v2405_v52  ;;  %4156 = vmatprep.subr.bf16.mxu1 %v4155_v49 }
 0x483   : > { %4158 = vmatpush3.bf16.msra.mxu1 %v4155_v49 }
 0x493   : > { %v2314_v41 = vpop.xlane.xlu1 %2313 }
 0x494   : > { %4312 = vrcp.f32 %v2314_v41 }
 0x497   : > { %v2317_v18 = vpop.xlane.xlu1 %2316 }
 0x498   : > { %4314 = vrcp.f32 %v2317_v18 }
 0x49b   : > { %v2320_v20 = vpop.xlane.xlu1 %2319 }
 0x49c   : > { %4316 = vrcp.f32 %v2320_v20  ;;  %v3377_v20 = vld [vmem:[%s6381_s3 + $0xd8] sm:$0xff] }
 0x49d   : > { %v4159_v57 = vpack.c.bf16 %v3377_v20, %v3376_v23  ;;  %v4163_v23 = vpack.c.bf16 %v3379_v62, %v3378_v14 }
 0x49e   : > { %v4313_v61 = vpop.eup %4312 }
 0x49f   : > { %v2409_v52 = vmul.f32 %v4313_v61, %v5867_v21  ;;  %v2323_v41 = vpop.xlane.xlu1 %2322  ;;  %v2410_v18 = vmul.f32 %v4313_v61, %v5869_v31  ;;  %4160 = vmatprep.subr.bf16.mxu1 %v4159_v57 }
 0x4a0   : > { %4318 = vrcp.f32 %v2323_v41  ;;  %4162 = vmatpush3.bf16.msra.mxu1 %v4159_v57 }
 0x4a1   : > { %2568 = vmatprep.mubr.f32.mxu0 %v2410_v18  ;;  %4164 = vmatprep.subr.bf16.mxu1 %v4163_v23 }
 0x4a2   : > { %v4315_v21 = vpop.eup %4314  ;;  %2569 = vmatmul.mubr.f32.vlgmr.msra.gmra.mrb[66].mxu0 %v2409_v52 }
 0x4a3   : > { %v2326_v31 = vpop.xlane.xlu1 %2325  ;;  %v2413_v34 = vmul.f32 %v4315_v21, %v5877_v42  ;;  %v2412_v61 = vmul.f32 %v4315_v21, %v5875_v9 }
 0x4a4   : > { %4320 = vrcp.f32 %v2326_v31  ;;  %4166 = vmatpush3.bf16.msra.mxu1 %v4163_v23 }
 0x4a5   : > { %2573 = vmatprep.mubr.f32.mxu0 %v2413_v34 }
 0x4a6   : > { %v4317_v43 = vpop.eup %4316  ;;  %2574 = vmatmul.mubr.f32.gmra.mrb[68].mxu0 %v2412_v61 }
 0x4a7   : > { %v2329_v41 = vpop.xlane.xlu1 %2328  ;;  %v2416_v20 = vmul.f32 %v4317_v43, %v5885_v25  ;;  %v2415_v18 = vmul.f32 %v4317_v43, %v5883_v27 }
 0x4a8   : > { %4322 = vrcp.f32 %v2329_v41 }
 0x4a9   : > { %2578 = vmatprep.mubr.f32.mxu0 %v2416_v20 }
 0x4aa   : > { %v4319_v49 = vpop.eup %4318  ;;  %2579 = vmatmul.mubr.f32.gmra.mrb[70].mxu0 %v2415_v18 }
 0x4ab   : > { %v2332_v42 = vpop.xlane.xlu1 %2331  ;;  %v2419_v9 = vmul.f32 %v4319_v49, %v5893_v51  ;;  %v2418_v14 = vmul.f32 %v4319_v49, %v5891_v16 }
 0x4ac   : > { %4324 = vrcp.f32 %v2332_v42 }
 0x4ad   : > { %2583 = vmatprep.mubr.f32.mxu0 %v2419_v9 }
 0x4ae   : > { %v4321_v62 = vpop.eup %4320  ;;  %2584 = vmatmul.mubr.f32.gmra.mrb[72].mxu0 %v2418_v14 }
 0x4af   : > { %v2335_v57 = vpop.xlane.xlu1 %2334  ;;  %v2422_v25 = vmul.f32 %v4321_v62, %v5901_v47  ;;  %v2421_v27 = vmul.f32 %v4321_v62, %v5899_v17 }
 0x4b0   : > { %4326 = vrcp.f32 %v2335_v57 }
 0x4b1   : > { %2588 = vmatprep.mubr.f32.mxu0 %v2422_v25 }
 0x4b2   : > { %v4323_v52 = vpop.eup %4322  ;;  %2589 = vmatmul.mubr.f32.gmra.mrb[74].mxu0 %v2421_v27 }
 0x4b3   : > { %v2338_v21 = vpop.xlane.xlu1 %2337  ;;  %v2425_v31 = vmul.f32 %v4323_v52, %v5909_v8  ;;  %v2424_v51 = vmul.f32 %v4323_v52, %v5907_v35 }
 0x4b4   : > { %4328 = vrcp.f32 %v2338_v21 }
 0x4b5   : > { %2593 = vmatprep.mubr.f32.mxu0 %v2425_v31 }
 0x4b6   : > { %v4325_v16 = vpop.eup %4324  ;;  %2594 = vmatmul.mubr.f32.gmra.mrb[76].mxu0 %v2424_v51 }
 0x4b7   : > { %v2341_v34 = vpop.xlane.xlu1 %2340  ;;  %v2428_v61 = vmul.f32 %v4325_v16, %v5917_v13  ;;  %v2427_v47 = vmul.f32 %v4325_v16, %v5915_v28 }
 0x4b8   : > { %4330 = vrcp.f32 %v2341_v34 }
 0x4b9   : > { %2598 = vmatprep.mubr.f32.mxu0 %v2428_v61 }
 0x4ba   : > { %v4327_v17 = vpop.eup %4326  ;;  %2599 = vmatmul.mubr.f32.gmra.mrb[78].mxu0 %v2427_v47 }
 0x4bb   : > { %v2344_v23 = vpop.xlane.xlu0 %2343  ;;  %v2431_v43 = vmul.f32 %v4327_v17, %v5925_v48  ;;  %v2430_v8 = vmul.f32 %v4327_v17, %v5923_v50 }
 0x4bc   : > { %4332 = vrcp.f32 %v2344_v23 }
 0x4bd   : > { %2603 = vmatprep.mubr.f32.mxu0 %v2431_v43 }
 0x4be   : > { %v4329_v35 = vpop.eup %4328  ;;  %2604 = vmatmul.mubr.f32.gmra.mrb[80].mxu0 %v2430_v8 }
 0x4bf   : > { %v2347_v41 = vpop.xlane.xlu1 %2346  ;;  %v2434_v20 = vmul.f32 %v4329_v35, %v5933_v33  ;;  %v2433_v13 = vmul.f32 %v4329_v35, %v5931_v45 }
 0x4c0   : > { %4334 = vrcp.f32 %v2347_v41 }
 0x4c1   : > { %2608 = vmatprep.mubr.f32.mxu0 %v2434_v20 }
 0x4c2   : > { %v4331_v28 = vpop.eup %4330  ;;  %2609 = vmatmul.mubr.f32.gmra.mrb[82].mxu0 %v2433_v13 }
 0x4c3   : > { %v2350_v18 = vpop.xlane.xlu0 %2349  ;;  %v2437_v49 = vmul.f32 %v4331_v28, %v5941_v7  ;;  %v2436_v48 = vmul.f32 %v4331_v28, %v5939_v37 }
 0x4c4   : > { %4336 = vrcp.f32 %v2350_v18  ;;  %v3380_v18 = vld [vmem:[%s6381_s3 + $0xf0] sm:$0xff] }
 0x4c5   : > { %2613 = vmatprep.mubr.f32.mxu0 %v2437_v49 }
 0x4c6   : > { %v4333_v50 = vpop.eup %4332  ;;  %2614 = vmatmul.mubr.f32.gmra.mrb[84].mxu0 %v2436_v48  ;;  %v6449_v48 = vld [vmem:[#allocation2_spill] sm:$0xff] }
 0x4c7   : > { %v2353_v42 = vpop.xlane.xlu1 %2352  ;;  %v2440_v9 = vmul.f32 %v4333_v50, %v5949_v59  ;;  %v2439_v33 = vmul.f32 %v4333_v50, %v5947_v58 }
 0x4c8   : > { %4338 = vrcp.f32 %v2353_v42 }
 0x4c9   : > { %2618 = vmatprep.mubr.f32.mxu0 %v2440_v9  ;;  %v6450_v9 = vld [vmem:[#allocation4_spill] sm:$0xff] }
 0x4ca   : > { %v4335_v45 = vpop.eup %4334  ;;  %2619 = vmatmul.mubr.f32.gmra.mrb[86].mxu0 %v2439_v33 }
 0x4cb   : > { %v2356_v14 = vpop.xlane.xlu0 %2355  ;;  %v2443_v62 = vmul.f32 %v4335_v45, %v5957_v10  ;;  %v2442_v7 = vmul.f32 %v4335_v45, %v5955_v19  ;;  %v6451_v45 = vld [vmem:[#allocation3_spill] sm:$0xff] }
 0x4cc   : > { %4340 = vrcp.f32 %v2356_v14 }
 0x4cd   : > { %2623 = vmatprep.mubr.f32.mxu0 %v2443_v62 }
 0x4ce   : > { %v4337_v37 = vpop.eup %4336  ;;  %2624 = vmatmul.mubr.f32.gmra.mrb[88].mxu0 %v2442_v7 }
 0x4cf   : > { %v2359_v57 = vpop.xlane.xlu1 %2358  ;;  %v2446_v25 = vmul.f32 %v4337_v37, %v5965_v3  ;;  %v2445_v59 = vmul.f32 %v4337_v37, %v5963_v26 }
 0x4d0   : > { %4342 = vrcp.f32 %v2359_v57  ;;  %v6453_v57 = vld [vmem:[#allocation5_spill] sm:$0xff] }
 0x4d1   : > { %2628 = vmatprep.mubr.f32.mxu0 %v2446_v25 }
 0x4d2   : > { %v4339_v58 = vpop.eup %4338  ;;  %2629 = vmatmul.mubr.f32.gmra.mrb[90].mxu0 %v2445_v59 }
 0x4d3   : > { %v2362_v27 = vpop.xlane.xlu0 %2361  ;;  %v2449_v52 = vmul.f32 %v4339_v58, %v5973_v40  ;;  %v2448_v10 = vmul.f32 %v4339_v58, %v5971_v44 }
 0x4d4   : > { %4344 = vrcp.f32 %v2362_v27 }
 0x4d5   : > { %2633 = vmatprep.mubr.f32.mxu0 %v2449_v52  ;;  %v6454_v52 = vld [vmem:[#allocation7_spill] sm:$0xff] }
 0x4d6   : > { %v4341_v19 = vpop.eup %4340  ;;  %2634 = vmatmul.mubr.f32.gmra.mrb[92].mxu0 %v2448_v10 }
 0x4d7   : > { %v2365_v21 = vpop.xlane.xlu1 %2364  ;;  %v2452_v31 = vmul.f32 %v4341_v19, %v5981_v53  ;;  %v2451_v3 = vmul.f32 %v4341_v19, %v5979_v6 }
 0x4d8   : > { %4346 = vrcp.f32 %v2365_v21 }
 0x4d9   : > { %2638 = vmatprep.mubr.f32.mxu0 %v2452_v31 }
 0x4da   : > { %v4343_v26 = vpop.eup %4342  ;;  %2639 = vmatmul.mubr.f32.gmra.mrb[94].mxu0 %v2451_v3 }
 0x4db   : > { %v2368_v51 = vpop.xlane.xlu0 %2367  ;;  %v2455_v16 = vmul.f32 %v4343_v26, %v5989_v54  ;;  %v2454_v40 = vmul.f32 %v4343_v26, %v5987_v2 }
 0x4dc   : > { %4348 = vrcp.f32 %v2368_v51 }
 0x4dd   : > { %2643 = vmatprep.mubr.f32.mxu0 %v2455_v16 }
 0x4de   : > { %v4345_v44 = vpop.eup %4344  ;;  %2644 = vmatmul.mubr.f32.gmra.mrb[96].mxu0 %v2454_v40 }
 0x4df   : > { %v2371_v34 = vpop.xlane.xlu1 %2370  ;;  %v2458_v61 = vmul.f32 %v4345_v44, %v5997_v46  ;;  %v2457_v53 = vmul.f32 %v4345_v44, %v5995_v0 }
 0x4e0   : > { %4350 = vrcp.f32 %v2371_v34 }
 0x4e1   : > { %2648 = vmatprep.mubr.f32.mxu0 %v2458_v61  ;;  %v6455_v61 = vld [vmem:[#allocation9_spill] sm:$0xff] }
 0x4e2   : > { %v4347_v6 = vpop.eup %4346  ;;  %2649 = vmatmul.mubr.f32.gmra.mrb[98].mxu0 %v2457_v53 }
 0x4e3   : > { %v2374_v47 = vpop.xlane.xlu0 %2373  ;;  %v2461_v17 = vmul.f32 %v4347_v6, %v6005_v15  ;;  %v2460_v54 = vmul.f32 %v4347_v6, %v6003_v30  ;;  %v6456_v6 = vld [vmem:[#allocation8_spill] sm:$0xff] }
 0x4e4   : > { %4352 = vrcp.f32 %v2374_v47 }
 0x4e5   : > { %2653 = vmatprep.mubr.f32.mxu0 %v2461_v17 }
 0x4e6   : > { %v4349_v2 = vpop.eup %4348  ;;  %2654 = vmatmul.mubr.f32.gmra.mrb[100].mxu0 %v2460_v54  ;;  %v6458_v54 = vld [vmem:[#allocation10_spill] sm:$0xff] }
 0x4e7   : > { %v2377_v23 = vpop.xlane.xlu1 %2376  ;;  %v2464_v43 = vmul.f32 %v4349_v2, %v6013_v24  ;;  %v2463_v46 = vmul.f32 %v4349_v2, %v6011_v55 }
 0x4e8   : > { %4354 = vrcp.f32 %v2377_v23 }
 0x4e9   : > { %2658 = vmatprep.mubr.f32.mxu0 %v2464_v43  ;;  %v6460_v43 = vld [vmem:[#allocation12_spill] sm:$0xff] }
 0x4ea   : > { %v4351_v0 = vpop.eup %4350  ;;  %2659 = vmatmul.mubr.f32.gmra.mrb[102].mxu0 %v2463_v46 }
 0x4eb   : > { %v2380_v8 = vpop.xlane.xlu0 %2379  ;;  %v2467_v35 = vmul.f32 %v4351_v0, %v6021_v32  ;;  %v2466_v15 = vmul.f32 %v4351_v0, %v6019_v1 }
 0x4ec   : > { %4356 = vrcp.f32 %v2380_v8 }
 0x4ed   : > { %2663 = vmatprep.mubr.f32.mxu0 %v2467_v35 }
 0x4ee   : > { %v4353_v30 = vpop.eup %4352  ;;  %2664 = vmatmul.mubr.f32.gmra.mrb[104].mxu0 %v2466_v15 }
 0x4ef   : > { %v2383_v41 = vpop.xlane.xlu1 %2382  ;;  %v2470_v20 = vmul.f32 %v4353_v30, %v6029_v38  ;;  %v2469_v24 = vmul.f32 %v4353_v30, %v6027_v11  ;;  %v3381_v11 = vld [vmem:[%s6381_s3 + $0xf8] sm:$0xff] }
 0x4f0   : > { %4358 = vrcp.f32 %v2383_v41 }
 0x4f1   : > { %2668 = vmatprep.mubr.f32.mxu0 %v2470_v20 }
 0x4f2   : > { %v4355_v55 = vpop.eup %4354  ;;  %2669 = vmatmul.mubr.f32.gmra.mrb[106].mxu0 %v2469_v24 }
 0x4f3   : > { %v2386_v13 = vpop.xlane.xlu0 %2385  ;;  %v2473_v28 = vmul.f32 %v4355_v55, %v6037_v60  ;;  %v2472_v32 = vmul.f32 %v4355_v55, %v6035_v22  ;;  %v4167_v60 = vpack.c.bf16 %v3381_v11, %v3380_v18 }
 0x4f4   : > { %4360 = vrcp.f32 %v2386_v13 }
 0x4f5   : > { %2673 = vmatprep.mubr.f32.mxu0 %v2473_v28  ;;  %4168 = vmatprep.subr.bf16.mxu1 %v4167_v60 }
 0x4f6   : > { %v4357_v1 = vpop.eup %4356  ;;  %2674 = vmatmul.mubr.f32.gmra.mrb[108].mxu0 %v2472_v32  ;;  %4170 = vmatpush3.bf16.msra.mxu1 %v4167_v60 }
 0x4f7   : > { %v2389_v38 = vpop.xlane.xlu1 %2388  ;;  %v2476_v49 = vmul.f32 %v4357_v1, %v6045_v56  ;;  %v2475_v50 = vmul.f32 %v4357_v1, %v6449_v48  ;;  %v6452_v56 = vld [vmem:[#allocation6_spill] sm:$0xff] }
 0x4f8   : > { %4362 = vrcp.f32 %v2389_v38 }
 0x4f9   : > { %2678 = vmatprep.mubr.f32.mxu0 %v2476_v49 }
 0x4fa   : > { %v4359_v22 = vpop.eup %4358  ;;  %2679 = vmatmul.mubr.f32.gmra.mrb[110].mxu0 %v2475_v50 }
 0x4fb   : > { %v2392_v42 = vpop.xlane.xlu0 %2391  ;;  %v2479_v33 = vmul.f32 %v4359_v22, %v6450_v9  ;;  %v2478_v14 = vmul.f32 %v4359_v22, %v6451_v45 }
 0x4fc   : > { %4364 = vrcp.f32 %v2392_v42 }
 0x4fd   : > { %2683 = vmatprep.mubr.f32.mxu0 %v2479_v33 }
 0x4fe   : > { %v4361_v62 = vpop.eup %4360  ;;  %2684 = vmatmul.mubr.f32.gmra.mrb[112].mxu0 %v2478_v14 }
 0x4ff   : > { %v2395_v7 = vpop.xlane.xlu1 %2394  ;;  %v2482_v37 = vmul.f32 %v4361_v62, %v6452_v56  ;;  %v2481_v25 = vmul.f32 %v4361_v62, %v6453_v57 }
 0x500   : > { %4366 = vrcp.f32 %v2395_v7 }
 0x501   : > { %2688 = vmatprep.mubr.f32.mxu0 %v2482_v37 }
 0x502   : > { %v4363_v59 = vpop.eup %4362  ;;  %2689 = vmatmul.mubr.f32.gmra.mrb[114].mxu0 %v2481_v25 }
 0x503   : > { %v2398_v58 = vpop.xlane.xlu0 %2397  ;;  %v2485_v27 = vmul.f32 %v4363_v59, %v6069_v5  ;;  %v2484_v10 = vmul.f32 %v4363_v59, %v6454_v52 }
 0x504   : > { %4368 = vrcp.f32 %v2398_v58 }
 0x505   : > { %2693 = vmatprep.mubr.f32.mxu0 %v2485_v27 }
 0x506   : > { %v4365_v19 = vpop.eup %4364  ;;  %2694 = vmatmul.mubr.f32.gmra.mrb[116].mxu0 %v2484_v10 }
 0x507   : > { %v2401_v21 = vpop.xlane.xlu1 %2400  ;;  %v2488_v31 = vmul.f32 %v4365_v19, %v6077_v63  ;;  %v2487_v3 = vmul.f32 %v4365_v19, %v6075_v29 }
 0x508   : > { %4370 = vrcp.f32 %v2401_v21 }
 0x509   : > { %2698 = vmatprep.mubr.f32.mxu0 %v2488_v31 }
 0x50a   : > { %v4367_v26 = vpop.eup %4366  ;;  %2699 = vmatmul.mubr.f32.gmra.mrb[118].mxu0 %v2487_v3 }
 0x50b   : > { %v2404_v51 = vpop.xlane.xlu0 %2403  ;;  %v2491_v16 = vmul.f32 %v4367_v26, %v6085_v4  ;;  %v2490_v5 = vmul.f32 %v4367_v26, %v6083_v36  ;;  %v6457_v36 = vld [vmem:[#allocation11_spill] sm:$0xff] }
 0x50c   : > { %4372 = vrcp.f32 %v2404_v51 }
 0x50d   : > { %2703 = vmatprep.mubr.f32.mxu0 %v2491_v16 }
 0x50e   : > { %v4369_v40 = vpop.eup %4368  ;;  %2704 = vmatmul.mubr.f32.gmra.mrb[120].mxu0 %v2490_v5 }
 0x50f   : > { %v2407_v44 = vpop.xlane.xlu1 %2406  ;;  %v2494_v34 = vmul.f32 %v4369_v40, %v6093_v39  ;;  %v2493_v63 = vmul.f32 %v4369_v40, %v6091_v12  ;;  %v6459_v39 = vld [vmem:[#allocation13_spill] sm:$0xff] }
 0x510   : > { %4374 = vrcp.f32 %v2407_v44 }
 0x511   : > { %2708 = vmatprep.mubr.f32.mxu0 %v2494_v34 }
 0x512   : > { %v4371_v29 = vpop.eup %4370  ;;  %2709 = vmatmul.mubr.f32.gmra.mrb[122].mxu0 %v2493_v63 }
 0x513   : > { %v2497_v53 = vmul.f32 %v4371_v29, %v6455_v61  ;;  %v2496_v47 = vmul.f32 %v4371_v29, %v6456_v6 }
 0x515   : > { %2713 = vmatprep.mubr.f32.mxu0 %v2497_v53 }
 0x516   : > { %v4373_v4 = vpop.eup %4372  ;;  %2714 = vmatmul.mubr.f32.gmra.mrb[124].mxu0 %v2496_v47 }
 0x517   : > { %v2500_v17 = vmul.f32 %v4373_v4, %v6457_v36  ;;  %v2499_v2 = vmul.f32 %v4373_v4, %v6458_v54 }
 0x519   : > { %2718 = vmatprep.mubr.f32.mxu0 %v2500_v17 }
 0x51a   : > { %v4375_v23 = vpop.eup %4374  ;;  %2719 = vmatmul.mubr.f32.gmra.mrb[126].mxu0 %v2499_v2 }
 0x51b   : > { %v2503_v12 = vmul.f32 %v4375_v23, %v6459_v39  ;;  %v2502_v46 = vmul.f32 %v4375_v23, %v6460_v43 }
 0x51d   : > { %2723 = vmatprep.mubr.f32.mxu0 %v2503_v12 }
 0x51e   : > { %2724 = vmatmul.mubr.f32.gmra.mrb[128].mxu0 %v2502_v46 }
 0x575   : > { %v2570_v0 = vpop.f32.mrb[66].mxu0 }
 0x576   : > { %v2572_v8 = vpop.f32.mrb[67].mxu0  ;;  %3939 = vmatprep.mubr.msk.f32.mxu1 %vm257_vm1, %v2570_v0  ;;  %v6238_v0 = vld [vmem:[%s6382_s4 + $0x3] ss:$0 sm:$0xff] }
 0x579   : > { %v2575_v35 = vpop.f32.mrb[68].mxu0 }
 0x57a   : > { %v2577_v15 = vpop.f32.mrb[69].mxu0  ;;  %3940 = vmatmul.mubr.msk.f32.vlgmr.msra.gmra.mrb[98].mxu1 %vm257_vm1, %v2575_v35 }
 0x57d   : > { %v2580_v30 = vpop.f32.mrb[70].mxu0 }
 0x57e   : > { %v2582_v41 = vpop.f32.mrb[71].mxu0  ;;  %3942 = vmatprep.mubr.msk.f32.mxu1 %vm257_vm1, %v2580_v30 }
 0x57f   : > { %v4376_v41 = vld [vmem:[%s4487_s10 + $0x8] sm:$0xff] }
 0x581   : > { %v2585_v20 = vpop.f32.mrb[72].mxu0 }
 0x582   : > { %v2587_v24 = vpop.f32.mrb[73].mxu0  ;;  %3943 = vmatmul.mubr.msk.f32.gmra.mrb[100].mxu1 %vm257_vm1, %v2585_v20 }
 0x583   : > { %v4377_v24 = vld [vmem:[%s4487_s10] sm:$0xff] }
 0x585   : > { %v2590_v55 = vpop.f32.mrb[74].mxu0 }
 0x586   : > { %v2592_v13 = vpop.f32.mrb[75].mxu0  ;;  %3945 = vmatprep.mubr.msk.f32.mxu1 %vm257_vm1, %v2590_v55 }
 0x589   : > { %v2595_v28 = vpop.f32.mrb[76].mxu0 }
 0x58a   : > { %v2597_v32 = vpop.f32.mrb[77].mxu0  ;;  %3946 = vmatmul.mubr.msk.f32.gmra.mrb[102].mxu1 %vm257_vm1, %v2595_v28 }
 0x58d   : > { %v2600_v1 = vpop.f32.mrb[78].mxu0 }
 0x58e   : > { %v2602_v18 = vpop.f32.mrb[79].mxu0  ;;  %3948 = vmatprep.mubr.msk.f32.mxu1 %vm257_vm1, %v2600_v1 }
 0x58f   : > { %v4378_v18 = vld [vmem:[%s4487_s10 + $0x18] sm:$0xff] }
 0x591   : > { %v2605_v11 = vpop.f32.mrb[80].mxu0 }
 0x592   : > { %v2607_v38 = vpop.f32.mrb[81].mxu0  ;;  %3949 = vmatmul.mubr.msk.f32.gmra.mrb[104].mxu1 %vm257_vm1, %v2605_v11 }
 0x593   : > { %v4379_v38 = vld [vmem:[%s4487_s10 + $0x10] sm:$0xff] }
 0x595   : > { %v2610_v49 = vpop.f32.mrb[82].mxu0 }
 0x596   : > { %v2612_v48 = vpop.f32.mrb[83].mxu0  ;;  %3951 = vmatprep.mubr.msk.f32.mxu1 %vm257_vm1, %v2610_v49 }
 0x599   : > { %v2615_v50 = vpop.f32.mrb[84].mxu0 }
 0x59a   : > { %v2617_v60 = vpop.f32.mrb[85].mxu0  ;;  %3952 = vmatmul.mubr.msk.f32.gmra.mrb[106].mxu1 %vm257_vm1, %v2615_v50 }
 0x59d   : > { %v2620_v22 = vpop.f32.mrb[86].mxu0 }
 0x59e   : > { %v2622_v42 = vpop.f32.mrb[87].mxu0  ;;  %3954 = vmatprep.mubr.msk.f32.mxu1 %vm257_vm1, %v2620_v22 }
 0x59f   : > { %v4380_v42 = vld [vmem:[%s4487_s10 + $0x28] sm:$0xff] }
 0x5a1   : > { %v2625_v9 = vpop.f32.mrb[88].mxu0 }
 0x5a2   : > { %v2627_v33 = vpop.f32.mrb[89].mxu0  ;;  %3955 = vmatmul.mubr.msk.f32.gmra.mrb[108].mxu1 %vm257_vm1, %v2625_v9 }
 0x5a3   : > { %v4381_v33 = vld [vmem:[%s4487_s10 + $0x20] sm:$0xff] }
 0x5a5   : > { %v2630_v45 = vpop.f32.mrb[90].mxu0 }
 0x5a6   : > { %v2632_v14 = vpop.f32.mrb[91].mxu0  ;;  %3957 = vmatprep.mubr.msk.f32.mxu1 %vm257_vm1, %v2630_v45 }
 0x5a9   : > { %v2635_v62 = vpop.f32.mrb[92].mxu0 }
 0x5aa   : > { %v2637_v7 = vpop.f32.mrb[93].mxu0  ;;  %3958 = vmatmul.mubr.msk.f32.gmra.mrb[110].mxu1 %vm257_vm1, %v2635_v62 }
 0x5ad   : > { %v2640_v56 = vpop.f32.mrb[94].mxu0 }
 0x5ae   : > { %v2642_v37 = vpop.f32.mrb[95].mxu0  ;;  %3960 = vmatprep.mubr.msk.f32.mxu1 %vm257_vm1, %v2640_v56 }
 0x5af   : > { %v4382_v37 = vld [vmem:[%s4487_s10 + $0x38] sm:$0xff] }
 0x5b1   : > { %v2645_v57 = vpop.f32.mrb[96].mxu0 }
 0x5b2   : > { %v2647_v25 = vpop.f32.mrb[97].mxu0  ;;  %3961 = vmatmul.mubr.msk.f32.gmra.mrb[112].mxu1 %vm257_vm1, %v2645_v57 }
 0x5b3   : > { %v4383_v25 = vld [vmem:[%s4487_s10 + $0x30] sm:$0xff] }
 0x5b5   : > { %v2650_v59 = vpop.f32.mrb[98].mxu0 }
 0x5b6   : > { %v2652_v58 = vpop.f32.mrb[99].mxu0  ;;  %3963 = vmatprep.mubr.msk.f32.mxu1 %vm257_vm1, %v2650_v59 }
 0x5b9   : > { %v2655_v27 = vpop.f32.mrb[100].mxu0 }
 0x5ba   : > { %v2657_v52 = vpop.f32.mrb[101].mxu0  ;;  %3964 = vmatmul.mubr.msk.f32.gmra.mrb[114].mxu1 %vm257_vm1, %v2655_v27 }
 0x5bd   : > { %v2660_v10 = vpop.f32.mrb[102].mxu0 }
 0x5be   : > { %v2662_v19 = vpop.f32.mrb[103].mxu0  ;;  %3966 = vmatprep.mubr.msk.f32.mxu1 %vm257_vm1, %v2660_v10 }
 0x5bf   : > { %v4384_v19 = vld [vmem:[%s4487_s10 + $0x48] sm:$0xff] }
 0x5c1   : > { %v2665_v21 = vpop.f32.mrb[104].mxu0 }
 0x5c2   : > { %v2667_v31 = vpop.f32.mrb[105].mxu0  ;;  %3967 = vmatmul.mubr.msk.f32.gmra.mrb[116].mxu1 %vm257_vm1, %v2665_v21 }
 0x5c3   : > { %v4385_v31 = vld [vmem:[%s4487_s10 + $0x40] sm:$0xff] }
 0x5c5   : > { %v2670_v3 = vpop.f32.mrb[106].mxu0 }
 0x5c6   : > { %v2672_v26 = vpop.f32.mrb[107].mxu0  ;;  %3969 = vmatprep.mubr.msk.f32.mxu1 %vm257_vm1, %v2670_v3 }
 0x5c9   : > { %v2675_v51 = vpop.f32.mrb[108].mxu0 }
 0x5ca   : > { %v2677_v16 = vpop.f32.mrb[109].mxu0  ;;  %3970 = vmatmul.mubr.msk.f32.gmra.mrb[118].mxu1 %vm257_vm1, %v2675_v51 }
 0x5cd   : > { %v2680_v5 = vpop.f32.mrb[110].mxu0 }
 0x5ce   : > { %v2682_v40 = vpop.f32.mrb[111].mxu0  ;;  %3972 = vmatprep.mubr.msk.f32.mxu1 %vm257_vm1, %v2680_v5 }
 0x5cf   : > { %v4386_v40 = vld [vmem:[%s4487_s10 + $0x58] sm:$0xff] }
 0x5d1   : > { %v2685_v44 = vpop.f32.mrb[112].mxu0 }
 0x5d2   : > { %v2687_v34 = vpop.f32.mrb[113].mxu0  ;;  %3973 = vmatmul.mubr.msk.f32.gmra.mrb[120].mxu1 %vm257_vm1, %v2685_v44 }
 0x5d3   : > { %v4387_v34 = vld [vmem:[%s4487_s10 + $0x50] sm:$0xff] }
 0x5d5   : > { %v2690_v63 = vpop.f32.mrb[114].mxu0 }
 0x5d6   : > { %v2692_v29 = vpop.f32.mrb[115].mxu0  ;;  %3975 = vmatprep.mubr.msk.f32.mxu1 %vm257_vm1, %v2690_v63 }
 0x5d9   : > { %v2695_v61 = vpop.f32.mrb[116].mxu0 }
 0x5da   : > { %v2697_v53 = vpop.f32.mrb[117].mxu0  ;;  %3976 = vmatmul.mubr.msk.f32.gmra.mrb[122].mxu1 %vm257_vm1, %v2695_v61 }
 0x5dd   : > { %v2700_v6 = vpop.f32.mrb[118].mxu0 }
 0x5de   : > { %v2702_v47 = vpop.f32.mrb[119].mxu0  ;;  %3978 = vmatprep.mubr.msk.f32.mxu1 %vm257_vm1, %v2700_v6 }
 0x5df   : > { %v4388_v47 = vld [vmem:[%s4487_s10 + $0x68] sm:$0xff] }
 0x5e1   : > { %v2705_v4 = vpop.f32.mrb[120].mxu0 }
 0x5e2   : > { %v2707_v36 = vpop.f32.mrb[121].mxu0  ;;  %3979 = vmatmul.mubr.msk.f32.gmra.mrb[124].mxu1 %vm257_vm1, %v2705_v4 }
 0x5e3   : > { %v4389_v36 = vld [vmem:[%s4487_s10 + $0x60] sm:$0xff] }
 0x5e5   : > { %v2710_v17 = vpop.f32.mrb[122].mxu0 }
 0x5e6   : > { %v2712_v54 = vpop.f32.mrb[123].mxu0  ;;  %3981 = vmatprep.mubr.msk.f32.mxu1 %vm257_vm1, %v2710_v17 }
 0x5e9   : > { %v2715_v2 = vpop.f32.mrb[124].mxu0 }
 0x5ea   : > { %v2717_v23 = vpop.f32.mrb[125].mxu0  ;;  %3982 = vmatmul.mubr.msk.f32.gmra.mrb[126].mxu1 %vm257_vm1, %v2715_v2 }
 0x5ed   : > { %v2720_v39 = vpop.f32.mrb[126].mxu0 }
 0x5ee   : > { %v2722_v12 = vpop.f32.mrb[127].mxu0  ;;  %3984 = vmatprep.mubr.msk.f32.mxu1 %vm257_vm1, %v2720_v39 }
 0x5ef   : > { %v4390_v12 = vld [vmem:[%s4487_s10 + $0x78] sm:$0xff] }
 0x5f1   : > { %v2725_v43 = vpop.f32.mrb[128].mxu0 }
 0x5f2   : > { %v2727_v46 = vpop.f32.mrb[129].mxu0  ;;  %3985 = vmatmul.mubr.msk.f32.gmra.mrb[128].mxu1 %vm257_vm1, %v2725_v43 }
 0x5f3   : > { %v4391_v46 = vld [vmem:[%s4487_s10 + $0x70] sm:$0xff] }
 0x64d   : > { %v3941_v8 = vpop.f32.mrb[98].mxu1 }
 0x64e   : > { %v2911_v35 = vadd.f32 %v3941_v8, %v6238_v0  ;;  %v2905_v15 = vpop.f32.mrb[99].mxu1 }
 0x64f   : > { %v2906_v30 = vadd.f32 %v6238_v0, %v2905_v15 }
 0x650   : > { %v3065_v20 = vadd.f32 %v4376_v41, %v2911_v35 }
 0x651   : > { %v3064_v55 = vadd.f32 %v4377_v24, %v2906_v30 }
 0x652   : > { %3097 = vst.msk [vmem:[%s6246_s8 + $0x8] sm:$0xff] %vm257_vm1, %v3065_v20  ;;  %v4392_v20 = vld [vmem:[%s4487_s10 + $0x88] sm:$0xff] }
 0x653   : > { %3096 = vst.msk [vmem:[%s6246_s8] sm:$0xff] %vm257_vm1, %v3064_v55  ;;  %v4393_v55 = vld [vmem:[%s4487_s10 + $0x80] sm:$0xff] }
 0x655   : > { %v3944_v13 = vpop.f32.mrb[100].mxu1 }
 0x656   : > { %v2921_v28 = vadd.f32 %v3944_v13, %v6238_v0  ;;  %v2915_v32 = vpop.f32.mrb[101].mxu1 }
 0x657   : > { %v2916_v1 = vadd.f32 %v6238_v0, %v2915_v32 }
 0x658   : > { %v3067_v11 = vadd.f32 %v4378_v18, %v2921_v28 }
 0x659   : > { %v3066_v49 = vadd.f32 %v4379_v38, %v2916_v1 }
 0x65a   : > { %3099 = vst.msk [vmem:[%s6246_s8 + $0x18] sm:$0xff] %vm257_vm1, %v3067_v11  ;;  %v4394_v11 = vld [vmem:[%s4487_s10 + $0x98] sm:$0xff] }
 0x65b   : > { %3098 = vst.msk [vmem:[%s6246_s8 + $0x10] sm:$0xff] %vm257_vm1, %v3066_v49  ;;  %v4395_v49 = vld [vmem:[%s4487_s10 + $0x90] sm:$0xff] }
 0x65d   : > { %v3947_v48 = vpop.f32.mrb[102].mxu1 }
 0x65e   : > { %v2931_v50 = vadd.f32 %v3947_v48, %v6238_v0  ;;  %v2925_v60 = vpop.f32.mrb[103].mxu1 }
 0x65f   : > { %v2926_v22 = vadd.f32 %v6238_v0, %v2925_v60 }
 0x660   : > { %v3069_v9 = vadd.f32 %v4380_v42, %v2931_v50 }
 0x661   : > { %v3068_v45 = vadd.f32 %v4381_v33, %v2926_v22 }
 0x662   : > { %3101 = vst.msk [vmem:[%s6246_s8 + $0x28] sm:$0xff] %vm257_vm1, %v3069_v9  ;;  %v4396_v9 = vld [vmem:[%s4487_s10 + $0xa8] sm:$0xff] }
 0x663   : > { %3100 = vst.msk [vmem:[%s6246_s8 + $0x20] sm:$0xff] %vm257_vm1, %v3068_v45  ;;  %v4397_v45 = vld [vmem:[%s4487_s10 + $0xa0] sm:$0xff] }
 0x665   : > { %v3950_v14 = vpop.f32.mrb[104].mxu1 }
 0x666   : > { %v2941_v62 = vadd.f32 %v3950_v14, %v6238_v0  ;;  %v2935_v7 = vpop.f32.mrb[105].mxu1 }
 0x667   : > { %v2936_v56 = vadd.f32 %v6238_v0, %v2935_v7 }
 0x668   : > { %v3071_v57 = vadd.f32 %v4382_v37, %v2941_v62 }
 0x669   : > { %v3070_v59 = vadd.f32 %v4383_v25, %v2936_v56 }
 0x66a   : > { %3103 = vst.msk [vmem:[%s6246_s8 + $0x38] sm:$0xff] %vm257_vm1, %v3071_v57  ;;  %v4398_v57 = vld [vmem:[%s4487_s10 + $0xb8] sm:$0xff] }
 0x66b   : > { %3102 = vst.msk [vmem:[%s6246_s8 + $0x30] sm:$0xff] %vm257_vm1, %v3070_v59  ;;  %v4399_v59 = vld [vmem:[%s4487_s10 + $0xb0] sm:$0xff] }
 0x66d   : > { %v3953_v58 = vpop.f32.mrb[106].mxu1 }
 0x66e   : > { %v2951_v27 = vadd.f32 %v3953_v58, %v6238_v0  ;;  %v2945_v52 = vpop.f32.mrb[107].mxu1 }
 0x66f   : > { %v2946_v10 = vadd.f32 %v6238_v0, %v2945_v52 }
 0x670   : > { %v3073_v21 = vadd.f32 %v4384_v19, %v2951_v27 }
 0x671   : > { %v3072_v3 = vadd.f32 %v4385_v31, %v2946_v10 }
 0x672   : > { %3105 = vst.msk [vmem:[%s6246_s8 + $0x48] sm:$0xff] %vm257_vm1, %v3073_v21  ;;  %v4400_v21 = vld [vmem:[%s4487_s10 + $0xc8] sm:$0xff] }
 0x673   : > { %3104 = vst.msk [vmem:[%s6246_s8 + $0x40] sm:$0xff] %vm257_vm1, %v3072_v3  ;;  %v4401_v3 = vld [vmem:[%s4487_s10 + $0xc0] sm:$0xff] }
 0x675   : > { %v3956_v26 = vpop.f32.mrb[108].mxu1 }
 0x676   : > { %v2961_v51 = vadd.f32 %v3956_v26, %v6238_v0  ;;  %v2955_v16 = vpop.f32.mrb[109].mxu1 }
 0x677   : > { %v2956_v5 = vadd.f32 %v6238_v0, %v2955_v16 }
 0x678   : > { %v3075_v44 = vadd.f32 %v4386_v40, %v2961_v51 }
 0x679   : > { %v3074_v63 = vadd.f32 %v4387_v34, %v2956_v5 }
 0x67a   : > { %3107 = vst.msk [vmem:[%s6246_s8 + $0x58] sm:$0xff] %vm257_vm1, %v3075_v44  ;;  %v4402_v44 = vld [vmem:[%s4487_s10 + $0xd8] sm:$0xff] }
 0x67b   : > { %3106 = vst.msk [vmem:[%s6246_s8 + $0x50] sm:$0xff] %vm257_vm1, %v3074_v63  ;;  %v4403_v63 = vld [vmem:[%s4487_s10 + $0xd0] sm:$0xff] }
 0x67d   : > { %v3959_v29 = vpop.f32.mrb[110].mxu1 }
 0x67e   : > { %v2971_v61 = vadd.f32 %v3959_v29, %v6238_v0  ;;  %v2965_v53 = vpop.f32.mrb[111].mxu1 }
 0x67f   : > { %v2966_v6 = vadd.f32 %v6238_v0, %v2965_v53 }
 0x680   : > { %v3077_v4 = vadd.f32 %v4388_v47, %v2971_v61 }
 0x681   : > { %v3076_v17 = vadd.f32 %v4389_v36, %v2966_v6 }
 0x682   : > { %3109 = vst.msk [vmem:[%s6246_s8 + $0x68] sm:$0xff] %vm257_vm1, %v3077_v4  ;;  %v4404_v4 = vld [vmem:[%s4487_s10 + $0xe8] sm:$0xff] }
 0x683   : > { %3108 = vst.msk [vmem:[%s6246_s8 + $0x60] sm:$0xff] %vm257_vm1, %v3076_v17  ;;  %v4405_v17 = vld [vmem:[%s4487_s10 + $0xe0] sm:$0xff] }
 0x685   : > { %v3962_v54 = vpop.f32.mrb[112].mxu1 }
 0x686   : > { %v2981_v2 = vadd.f32 %v3962_v54, %v6238_v0  ;;  %v2975_v23 = vpop.f32.mrb[113].mxu1 }
 0x687   : > { %v2976_v39 = vadd.f32 %v6238_v0, %v2975_v23 }
 0x688   : > { %v3079_v43 = vadd.f32 %v4390_v12, %v2981_v2 }
 0x689   : > { %v3078_v8 = vadd.f32 %v4391_v46, %v2976_v39 }
 0x68a   : > { %3111 = vst.msk [vmem:[%s6246_s8 + $0x78] sm:$0xff] %vm257_vm1, %v3079_v43  ;;  %v4406_v43 = vld [vmem:[%s4487_s10 + $0xf8] sm:$0xff] }
 0x68b   : > { %3110 = vst.msk [vmem:[%s6246_s8 + $0x70] sm:$0xff] %vm257_vm1, %v3078_v8  ;;  %v4407_v8 = vld [vmem:[%s4487_s10 + $0xf0] sm:$0xff] }
 0x68d   : > { %v3965_v35 = vpop.f32.mrb[114].mxu1 }
 0x68e   : > { %v2991_v15 = vadd.f32 %v3965_v35, %v6238_v0  ;;  %v2985_v30 = vpop.f32.mrb[115].mxu1 }
 0x68f   : > { %v2986_v41 = vadd.f32 %v6238_v0, %v2985_v30 }
 0x690   : > { %v3081_v24 = vadd.f32 %v4392_v20, %v2991_v15 }
 0x691   : > { %v3080_v13 = vadd.f32 %v4393_v55, %v2986_v41 }
 0x692   : > { %3113 = vst.msk [vmem:[%s6246_s8 + $0x88] sm:$0xff] %vm257_vm1, %v3081_v24 }
 0x693   : > { %3112 = vst.msk [vmem:[%s6246_s8 + $0x80] sm:$0xff] %vm257_vm1, %v3080_v13 }
 0x695   : > { %v3968_v28 = vpop.f32.mrb[116].mxu1 }
 0x696   : > { %v3001_v32 = vadd.f32 %v3968_v28, %v6238_v0  ;;  %v2995_v1 = vpop.f32.mrb[117].mxu1 }
 0x697   : > { %v2996_v18 = vadd.f32 %v6238_v0, %v2995_v1 }
 0x698   : > { %v3083_v38 = vadd.f32 %v4394_v11, %v3001_v32 }
 0x699   : > { %v3082_v48 = vadd.f32 %v4395_v49, %v2996_v18 }
 0x69a   : > { %3115 = vst.msk [vmem:[%s6246_s8 + $0x98] sm:$0xff] %vm257_vm1, %v3083_v38 }
 0x69b   : > { %3114 = vst.msk [vmem:[%s6246_s8 + $0x90] sm:$0xff] %vm257_vm1, %v3082_v48 }
 0x69d   : > { %v3971_v50 = vpop.f32.mrb[118].mxu1 }
 0x69e   : > { %v3011_v60 = vadd.f32 %v3971_v50, %v6238_v0  ;;  %v3005_v22 = vpop.f32.mrb[119].mxu1 }
 0x69f   : > { %v3006_v42 = vadd.f32 %v6238_v0, %v3005_v22 }
 0x6a0   : > { %v3085_v33 = vadd.f32 %v4396_v9, %v3011_v60 }
 0x6a1   : > { %v3084_v14 = vadd.f32 %v4397_v45, %v3006_v42 }
 0x6a2   : > { %3117 = vst.msk [vmem:[%s6246_s8 + $0xa8] sm:$0xff] %vm257_vm1, %v3085_v33 }
 0x6a3   : > { %3116 = vst.msk [vmem:[%s6246_s8 + $0xa0] sm:$0xff] %vm257_vm1, %v3084_v14 }
 0x6a5   : > { %v3974_v62 = vpop.f32.mrb[120].mxu1 }
 0x6a6   : > { %v3021_v7 = vadd.f32 %v3974_v62, %v6238_v0  ;;  %v3015_v56 = vpop.f32.mrb[121].mxu1 }
 0x6a7   : > { %v3016_v37 = vadd.f32 %v6238_v0, %v3015_v56 }
 0x6a8   : > { %v3087_v25 = vadd.f32 %v4398_v57, %v3021_v7 }
 0x6a9   : > { %v3086_v58 = vadd.f32 %v4399_v59, %v3016_v37 }
 0x6aa   : > { %3119 = vst.msk [vmem:[%s6246_s8 + $0xb8] sm:$0xff] %vm257_vm1, %v3087_v25 }
 0x6ab   : > { %3118 = vst.msk [vmem:[%s6246_s8 + $0xb0] sm:$0xff] %vm257_vm1, %v3086_v58 }
 0x6ad   : > { %v3977_v27 = vpop.f32.mrb[122].mxu1 }
 0x6ae   : > { %v3031_v52 = vadd.f32 %v3977_v27, %v6238_v0  ;;  %v3025_v10 = vpop.f32.mrb[123].mxu1 }
 0x6af   : > { %v3026_v19 = vadd.f32 %v6238_v0, %v3025_v10 }
 0x6b0   : > { %v3089_v31 = vadd.f32 %v4400_v21, %v3031_v52 }
 0x6b1   : > { %v3088_v26 = vadd.f32 %v4401_v3, %v3026_v19 }
 0x6b2   : > { %3121 = vst.msk [vmem:[%s6246_s8 + $0xc8] sm:$0xff] %vm257_vm1, %v3089_v31 }
 0x6b3   : > { %3120 = vst.msk [vmem:[%s6246_s8 + $0xc0] sm:$0xff] %vm257_vm1, %v3088_v26 }
 0x6b5   : > { %v3980_v51 = vpop.f32.mrb[124].mxu1 }
 0x6b6   : > { %v3041_v16 = vadd.f32 %v3980_v51, %v6238_v0  ;;  %v3035_v5 = vpop.f32.mrb[125].mxu1 }
 0x6b7   : > { %v3036_v40 = vadd.f32 %v6238_v0, %v3035_v5 }
 0x6b8   : > { %v3091_v34 = vadd.f32 %v4402_v44, %v3041_v16 }
 0x6b9   : > { %v3090_v29 = vadd.f32 %v4403_v63, %v3036_v40 }
 0x6ba   : > { %3123 = vst.msk [vmem:[%s6246_s8 + $0xd8] sm:$0xff] %vm257_vm1, %v3091_v34 }
 0x6bb   : > { %3122 = vst.msk [vmem:[%s6246_s8 + $0xd0] sm:$0xff] %vm257_vm1, %v3090_v29 }
 0x6bd   : > { %v3983_v61 = vpop.f32.mrb[126].mxu1 }
 0x6be   : > { %v3051_v53 = vadd.f32 %v3983_v61, %v6238_v0  ;;  %v3045_v6 = vpop.f32.mrb[127].mxu1 }
 0x6bf   : > { %v3046_v47 = vadd.f32 %v6238_v0, %v3045_v6 }
 0x6c0   : > { %v3093_v36 = vadd.f32 %v4404_v4, %v3051_v53 }
 0x6c1   : > { %v3092_v54 = vadd.f32 %v4405_v17, %v3046_v47 }
 0x6c2   : > { %3125 = vst.msk [vmem:[%s6246_s8 + $0xe8] sm:$0xff] %vm257_vm1, %v3093_v36 }
 0x6c3   : > { %3124 = vst.msk [vmem:[%s6246_s8 + $0xe0] sm:$0xff] %vm257_vm1, %v3092_v54 }
 0x6c5   : > { %v3986_v2 = vpop.f32.mrb[128].mxu1 }
 0x6c6   : > { %v3061_v23 = vadd.f32 %v3986_v2, %v6238_v0  ;;  %v3055_v39 = vpop.f32.mrb[129].mxu1 }
 0x6c7   : > { %v3056_v12 = vadd.f32 %v6238_v0, %v3055_v39 }
 0x6c8   : > { %v3095_v46 = vadd.f32 %v4406_v43, %v3061_v23 }
 0x6c9   : > { %v3094_v35 = vadd.f32 %v4407_v8, %v3056_v12 }
 0x6ca   : > { %3127 = vst.msk [vmem:[%s6246_s8 + $0xf8] sm:$0xff] %vm257_vm1, %v3095_v46 }
 0x6cb   : > { %3126 = vst.msk [vmem:[%s6246_s8 + $0xf0] sm:$0xff] %vm257_vm1, %v3094_v35 }
 0x6cc PF: > { %s15_s18 = sadd.s32 1, %s4414_s18  }
 0x6cd   : > { %p12_p4 = scmp.ge.s32.totalorder %s15_s18, 4  }
 0x6cf   :  { %14 = sbr.rel (!%p12_p4) target bundleno = 1 (0x1), region = 73 }

</bundles_post_ra>
